<compile_context>
chip_gen: v7x
topology: tpu7x:2x2x1
jax: 0.10.0
libtpu: 0.0.40
codegen_flags: <defaults>
</compile_context>

<pallas_src>
import math
from functools import partial

import numpy as np
import jax
import jax.numpy as jnp
from jax.experimental import pallas as pl
from jax.experimental.pallas import tpu as pltpu
from jax.scipy.special import erf

_LN_EPS = 1e-5
_HEAD_PAD = 128            # each attention head padded to a full 128-lane slab


# ------------------------------ in-kernel math ------------------------------

def _ln(x, g, b):
    """LayerNorm over the last dim (f32, torch eps=1e-5, biased variance)."""
    mu = jnp.mean(x, axis=-1, keepdims=True)
    var = jnp.mean(jnp.square(x - mu), axis=-1, keepdims=True)
    return (x - mu) * jax.lax.rsqrt(var + _LN_EPS) * g + b


def _gelu_tanh(x):
    # tanh-approx GELU (tanh -> EUP slot). Max ~3e-3 abs diff vs exact erf.
    c = math.sqrt(2.0 / math.pi)
    return 0.5 * x * (1.0 + jnp.tanh(c * (x + 0.044715 * x * x * x)))


def _mm(a16, w16):
    """MXU matmul: bf16 operands, f32 accumulation."""
    return jnp.dot(a16, w16, preferred_element_type=jnp.float32)


# ------------------------------- fused kernel -------------------------------

def _block_kernel(*refs, num_heads, sr_ratio):
    HP = _HEAD_PAD
    if sr_ratio > 1:
        (x_ref, psel_ref, n1g_ref, n1b_ref, qw_ref,
         srw_ref, srb_ref, sng_ref, snb_ref,
         kvw_ref, pw_ref, pb_ref, n2g_ref, n2b_ref,
         f1w_ref, f1b_ref, f2w_ref, f2b_ref, o_ref) = refs
    else:
        (x_ref, n1g_ref, n1b_ref, qw_ref,
         kvw_ref, pw_ref, pb_ref, n2g_ref, n2b_ref,
         f1w_ref, f1b_ref, f2w_ref, f2b_ref, o_ref) = refs

    N, C = x_ref.shape                         # one batch element per grid step

    x = x_ref[...]                             # (N, C) f32 -- residual stream
    xn = _ln(x, n1g_ref[...], n1b_ref[...])    # norm1
    xn16 = xn.astype(jnp.bfloat16)

    # --- q projection: scale already folded into the padded weight ----------
    q16 = _mm(xn16, qw_ref[...]).astype(jnp.bfloat16)      # (N, nh*128)

    # --- K/V source tokens ---------------------------------------------------
    if sr_ratio > 1:
        sr2 = sr_ratio * sr_ratio
        # Offset regrouping of the sr (kernel==stride) conv as a one-hot
        # selection matmul (MXU) — no wrapper transpose, no second x DMA.
        grp = _mm(psel_ref[...], xn16)                      # (sr2*M, C) f32
        M = grp.shape[0] // sr2
        acc = srb_ref[...] + _mm(grp[0:M].astype(jnp.bfloat16), srw_ref[0])
        for t in range(1, sr2):
            acc = acc + _mm(grp[t * M:(t + 1) * M].astype(jnp.bfloat16),
                            srw_ref[t])
        kv_in16 = _ln(acc, sng_ref[...], snb_ref[...]).astype(jnp.bfloat16)
    else:
        kv_in16 = xn16                                      # (N, C)

    kv16 = _mm(kv_in16, kvw_ref[...]).astype(jnp.bfloat16)  # (M, 2*nh*128)

    # --- attention core: per-head 128-lane slabs, accumulate straight into
    # --- proj(+bias)+residual (no concat, no scratch) ------------------------
    x1 = x + pb_ref[...]
    for h in range(num_heads):
        qh = q16[:, h * HP:(h + 1) * HP]                             # (N, 128)
        kh = kv16[:, h * HP:(h + 1) * HP]                            # (M, 128)
        vh = kv16[:, (num_heads + h) * HP:(num_heads + h + 1) * HP]  # (M, 128)
        s = jax.lax.dot_general(qh, kh, (((1,), (1,)), ((), ())),
                                preferred_element_type=jnp.float32)  # (N, M)
        s = s - jnp.max(s, axis=-1, keepdims=True)
        p = jnp.exp(s)
        p = p * pl.reciprocal(jnp.sum(p, axis=-1, keepdims=True), approx=True)
        oh = _mm(p.astype(jnp.bfloat16), vh)                         # (N, 128)
        x1 = x1 + _mm(oh.astype(jnp.bfloat16),
                      pw_ref[pl.ds(h * HP, HP), :])

    # --- MLP + residual (Dropout / DropPath p=0.0 -> identity, omitted) -----
    xn2 = _ln(x1, n2g_ref[...], n2b_ref[...])
    h1 = _gelu_tanh(_mm(xn2.astype(jnp.bfloat16), f1w_ref[...]) + f1b_ref[...])
    o_ref[...] = x1 + _mm(h1.astype(jnp.bfloat16), f2w_ref[...]) + f2b_ref[...]


# --------------------------------- wrapper -----------------------------------

def _make_psel(H, W, sr):
    """One-hot selection matrix grouping a batch's tokens by intra-patch
    offset t = kh*sr + kw; row (t*M + m) selects token (i*sr+kh)*W + j*sr+kw
    of patch m = i*Ws + j."""
    Hs, Ws = H // sr, W // sr
    M = Hs * Ws
    P = np.zeros((sr * sr * M, H * W), np.float32)
    for kh in range(sr):
        for kw in range(sr):
            t = kh * sr + kw
            for i in range(Hs):
                for j in range(Ws):
                    P[t * M + i * Ws + j, (i * sr + kh) * W + (j * sr + kw)] = 1.0
    return P


@partial(jax.jit, static_argnames=("H", "W", "num_heads", "sr_ratio"))
def block_forward(x, params, *, H, W, num_heads, sr_ratio):
    """x: (B, N, C) token tensor with N == H*W. One fused pallas_call."""
    B, N, C = x.shape
    assert N == H * W and C % num_heads == 0
    assert N % 8 == 0 and C % 128 == 0
    x2d = x.reshape(B * N, C)

    def resident(arr):
        zeros = (0,) * arr.ndim
        return pl.BlockSpec(tuple(arr.shape), lambda b: zeros)

    row_spec = pl.BlockSpec((N, C), lambda b: (b, 0))

    inputs, specs = [x2d], [row_spec]
    if sr_ratio > 1:
        assert H % sr_ratio == 0 and W % sr_ratio == 0
        psel = jnp.asarray(_make_psel(H, W, sr_ratio), jnp.bfloat16)
        inputs.append(psel)
        specs.append(resident(psel))

    names = ["norm1_g", "norm1_b", "q_wT"]
    if sr_ratio > 1:
        names += ["sr_wT", "sr_b", "srnorm_g", "srnorm_b"]
    names += ["kv_wT", "proj_wT", "proj_b", "norm2_g", "norm2_b",
              "fc1_wT", "fc1_b", "fc2_wT", "fc2_b"]
    for n in names:
        inputs.append(params[n])
        specs.append(resident(params[n]))

    # Rough cost estimate (helps XLA schedule around the fused call).
    M = N if sr_ratio == 1 else (H // sr_ratio) * (W // sr_ratio)
    hidden = int(params["fc1_wT"].shape[1])
    HPn = num_heads * _HEAD_PAD
    flops = B * (2 * N * C * HPn                       # q
                 + 2 * M * C * 2 * HPn                 # kv
                 + num_heads * (4 * N * M * _HEAD_PAD  # logits + p@v
                                + 2 * N * _HEAD_PAD * C)   # proj
                 + 4 * N * C * hidden)                 # fc1 + fc2
    if sr_ratio > 1:
        sr2 = sr_ratio * sr_ratio
        flops += B * (2 * sr2 * M * N * C + 2 * sr2 * M * C * C)
    trans = B * (num_heads * N * M + N * hidden)
    bytes_acc = sum(int(a.size) * a.dtype.itemsize for a in inputs) + B * N * C * 4

    out = pl.pallas_call(
        partial(_block_kernel, num_heads=num_heads, sr_ratio=sr_ratio),
        out_shape=jax.ShapeDtypeStruct((B * N, C), jnp.float32),
        grid=(B,),
        in_specs=specs,
        out_specs=row_spec,
        input_output_aliases={0: 0},
        compiler_params=pltpu.CompilerParams(dimension_semantics=("parallel",)),
        cost_estimate=pl.CostEstimate(flops=int(flops),
                                      transcendentals=int(trans),
                                      bytes_accessed=int(bytes_acc)),
    )(*inputs)
    return out.reshape(B, N, C)


# ------------------------------ parameter init -------------------------------

def _trunc_normal(key, shape, std=0.02):
    return std * jax.random.truncated_normal(key, -2.0, 2.0, shape, jnp.float32)


def init_block_raw(key, dim, num_heads, mlp_ratio, sr_ratio):
    """Raw f32 parameters in PyTorch layout (weights are (out, in))."""
    hidden = int(dim * mlp_ratio)
    ks = iter(jax.random.split(key, 24))
    nk = lambda: next(ks)
    raw = {
        "norm1_g": 1.0 + _trunc_normal(nk(), (dim,), 0.1),
        "norm1_b": _trunc_normal(nk(), (dim,), 0.05),
        "q_w": _trunc_normal(nk(), (dim, dim)),        # qkv_bias=False
        "kv_w": _trunc_normal(nk(), (2 * dim, dim)),   # qkv_bias=False
        "proj_w": _trunc_normal(nk(), (dim, dim)),
        "proj_b": _trunc_normal(nk(), (dim,)),
        "norm2_g": 1.0 + _trunc_normal(nk(), (dim,), 0.1),
        "norm2_b": _trunc_normal(nk(), (dim,), 0.05),
        "fc1_w": _trunc_normal(nk(), (hidden, dim)),
        "fc1_b": _trunc_normal(nk(), (hidden,)),
        "fc2_w": _trunc_normal(nk(), (dim, hidden)),
        "fc2_b": _trunc_normal(nk(), (dim,)),
    }
    if sr_ratio > 1:
        fan_in = dim * sr_ratio * sr_ratio
        bound = 1.0 / math.sqrt(fan_in)
        kw, kb = jax.random.split(nk())
        raw["sr_w"] = jax.random.uniform(kw, (dim, dim, sr_ratio, sr_ratio),
                                         jnp.float32, -bound, bound)
        raw["sr_b"] = jax.random.uniform(kb, (dim,), jnp.float32, -bound, bound)
        raw["srnorm_g"] = 1.0 + _trunc_normal(nk(), (dim,), 0.1)
        raw["srnorm_b"] = _trunc_normal(nk(), (dim,), 0.05)
    return raw


def prepare_block_params(raw, num_heads, sr_ratio):
    """One-time host-side re-layout: pre-transpose, fold the attention scale
    into q (in f32), zero-pad each head to a 128-lane slab, cast matmul
    weights to bf16."""
    bf = jnp.bfloat16
    C = int(raw["q_w"].shape[0])
    d = C // num_heads
    HP = _HEAD_PAD
    scale = float(d) ** -0.5
    row = lambda v: jnp.asarray(v).reshape(1, -1)

    def pad_head_cols(wT):                       # (C_in, nh*d) -> (C_in, nh*HP)
        out = np.zeros((wT.shape[0], num_heads * HP), np.float32)
        for h in range(num_heads):
            out[:, h * HP:h * HP + d] = wT[:, h * d:(h + 1) * d]
        return out

    q_pad = pad_head_cols(np.asarray(raw["q_w"], np.float32).T * scale)

    kvT = np.asarray(raw["kv_w"], np.float32).T              # (C, 2C) = [k | v]
    kv_pad = np.concatenate([pad_head_cols(kvT[:, :C]),
                             pad_head_cols(kvT[:, C:])], axis=1)

    projT = np.asarray(raw["proj_w"], np.float32).T           # (C, C)
    proj_pad = np.zeros((num_heads * HP, C), np.float32)
    for h in range(num_heads):
        proj_pad[h * HP:h * HP + d, :] = projT[h * d:(h + 1) * d, :]

    p = {
        "norm1_g": row(raw["norm1_g"]), "norm1_b": row(raw["norm1_b"]),
        "q_wT": jnp.asarray(q_pad, bf),
        "kv_wT": jnp.asarray(kv_pad, bf),
        "proj_wT": jnp.asarray(proj_pad, bf), "proj_b": row(raw["proj_b"]),
        "norm2_g": row(raw["norm2_g"]), "norm2_b": row(raw["norm2_b"]),
        "fc1_wT": jnp.asarray(np.asarray(raw["fc1_w"], np.float32).T, bf),
        "fc1_b": row(raw["fc1_b"]),
        "fc2_wT": jnp.asarray(np.asarray(raw["fc2_w"], np.float32).T, bf),
        "fc2_b": row(raw["fc2_b"]),
    }
    if sr_ratio > 1:
        sr_w = np.asarray(raw["sr_w"], np.float32)             # (Co, Ci, kh, kw)
        p["sr_wT"] = jnp.asarray(sr_w.transpose(2, 3, 1, 0)     # (kh,kw,Ci,Co)
                                 .reshape(sr_ratio * sr_ratio, C, C), bf)
        p["sr_b"] = row(raw["sr_b"])
        p["srnorm_g"] = row(raw["srnorm_g"])
        p["srnorm_b"] = row(raw["srnorm_b"])
    return p


# ------------------------- pure-JAX reference (spec) --------------------------

def block_reference(raw, x, H, W, num_heads, sr_ratio):
    """Faithful f32 port of the PyTorch Block.forward (exact-erf GELU)."""
    B, N, C = x.shape
    d = C // num_heads
    scale = d ** (-0.5)

    def ln(t, g, b):
        mu = jnp.mean(t, axis=-1, keepdims=True)
        var = jnp.mean(jnp.square(t - mu), axis=-1, keepdims=True)
        return (t - mu) / jnp.sqrt(var + _LN_EPS) * g + b

    xn = ln(x, raw["norm1_g"], raw["norm1_b"])
    q = (xn @ raw["q_w"].T).reshape(B, N, num_heads, d).transpose(0, 2, 1, 3)
    if sr_ratio > 1:
        x_img = xn.transpose(0, 2, 1).reshape(B, C, H, W)
        y = jax.lax.conv_general_dilated(
            x_img, raw["sr_w"], window_strides=(sr_ratio, sr_ratio),
            padding="VALID", dimension_numbers=("NCHW", "OIHW", "NCHW"))
        y = y + raw["sr_b"].reshape(1, C, 1, 1)
        x_kv = ln(y.reshape(B, C, -1).transpose(0, 2, 1),
                  raw["srnorm_g"], raw["srnorm_b"])
    else:
        x_kv = xn
    M = x_kv.shape[1]
    kv = (x_kv @ raw["kv_w"].T).reshape(B, M, 2, num_heads, d)
    kv = kv.transpose(2, 0, 3, 1, 4)
    k, v = kv[0], kv[1]
    attn = jnp.einsum("bhnd,bhmd->bhnm", q, k) * scale
    attn = jax.nn.softmax(attn, axis=-1)
    o = jnp.einsum("bhnm,bhmd->bhnd", attn, v).transpose(0, 2, 1, 3)
    o = o.reshape(B, N, C) @ raw["proj_w"].T + raw["proj_b"]
    x = x + o
    xn2 = ln(x, raw["norm2_g"], raw["norm2_b"])
    h = xn2 @ raw["fc1_w"].T + raw["fc1_b"]
    h = 0.5 * h * (1.0 + erf(h / math.sqrt(2.0)))
    return x + (h @ raw["fc2_w"].T + raw["fc2_b"])


# ----------------------------------- main ------------------------------------

if __name__ == "__main__":
    key = jax.random.PRNGKey(0)
    B, H, W, C = 2, 8, 8, 128            # C=128 keeps every output lane-dense
    N = H * W
    kx, k1, k2 = jax.random.split(key, 3)
    x = jax.random.normal(kx, (B, N, C), jnp.float32)

    configs = [
        dict(num_heads=2, mlp_ratio=4, sr_ratio=2, key=k1),   # sr-conv path
        dict(num_heads=4, mlp_ratio=4, sr_ratio=1, key=k2),   # plain path
    ]
    for cfg in configs:
        raw = init_block_raw(cfg["key"], C, cfg["num_heads"],
                             cfg["mlp_ratio"], cfg["sr_ratio"])
        kparams = prepare_block_params(raw, cfg["num_heads"], cfg["sr_ratio"])
        out = block_forward(x, kparams, H=H, W=W,
                            num_heads=cfg["num_heads"],
                            sr_ratio=cfg["sr_ratio"])
        out = jax.block_until_ready(out)
        assert out.shape == (B, N, C), out.shape
        assert bool(jnp.all(jnp.isfinite(out)))
        ref = block_reference(raw, x, H, W, cfg["num_heads"], cfg["sr_ratio"])
        err = float(jnp.max(jnp.abs(out - ref)))
        assert err < 5e-2, f"max abs err {err} (sr_ratio={cfg['sr_ratio']})"
    print("KERNEL_OK")
</pallas_src>

<mosaic_0001>
module attributes {stable_mosaic.version = 11 : i64} {
  func.func @_block_kernel(%arg0: i32, %arg1: memref<64x128xf32, #tpu.memory_space<vmem>>, %arg2: memref<64x64xbf16, #tpu.memory_space<vmem>>, %arg3: memref<1x128xf32, #tpu.memory_space<vmem>>, %arg4: memref<1x128xf32, #tpu.memory_space<vmem>>, %arg5: memref<128x256xbf16, #tpu.memory_space<vmem>>, %arg6: memref<4x128x128xbf16, #tpu.memory_space<vmem>>, %arg7: memref<1x128xf32, #tpu.memory_space<vmem>>, %arg8: memref<1x128xf32, #tpu.memory_space<vmem>>, %arg9: memref<1x128xf32, #tpu.memory_space<vmem>>, %arg10: memref<128x512xbf16, #tpu.memory_space<vmem>>, %arg11: memref<256x128xbf16, #tpu.memory_space<vmem>>, %arg12: memref<1x128xf32, #tpu.memory_space<vmem>>, %arg13: memref<1x128xf32, #tpu.memory_space<vmem>>, %arg14: memref<1x128xf32, #tpu.memory_space<vmem>>, %arg15: memref<128x512xbf16, #tpu.memory_space<vmem>>, %arg16: memref<1x512xf32, #tpu.memory_space<vmem>>, %arg17: memref<512x128xbf16, #tpu.memory_space<vmem>>, %arg18: memref<1x128xf32, #tpu.memory_space<vmem>>, %arg19: memref<64x128xf32, #tpu.memory_space<vmem>>) attributes {dimension_semantics = [#tpu.dimension_semantics<parallel>], iteration_bounds = array<i64: 2>, scalar_prefetch = 0 : i64, scratch_operands = 0 : i64, tpu.core_type = #tpu.core_type<tc>, window_params = [{transform_indices = @transform_0, window_bounds = array<i64: 64, 128>}, {pipeline_mode = #tpu.pipeline_mode<synchronous>, transform_indices = @transform_1, window_bounds = array<i64: 64, 64>}, {pipeline_mode = #tpu.pipeline_mode<synchronous>, transform_indices = @transform_2, window_bounds = array<i64: 1, 128>}, {pipeline_mode = #tpu.pipeline_mode<synchronous>, transform_indices = @transform_3, window_bounds = array<i64: 1, 128>}, {pipeline_mode = #tpu.pipeline_mode<synchronous>, transform_indices = @transform_4, window_bounds = array<i64: 128, 256>}, {pipeline_mode = #tpu.pipeline_mode<synchronous>, transform_indices = @transform_5, window_bounds = array<i64: 4, 128, 128>}, {pipeline_mode = #tpu.pipeline_mode<synchronous>, transform_indices = @transform_6, window_bounds = array<i64: 1, 128>}, {pipeline_mode = #tpu.pipeline_mode<synchronous>, transform_indices = @transform_7, window_bounds = array<i64: 1, 128>}, {pipeline_mode = #tpu.pipeline_mode<synchronous>, transform_indices = @transform_8, window_bounds = array<i64: 1, 128>}, {pipeline_mode = #tpu.pipeline_mode<synchronous>, transform_indices = @transform_9, window_bounds = array<i64: 128, 512>}, {pipeline_mode = #tpu.pipeline_mode<synchronous>, transform_indices = @transform_10, window_bounds = array<i64: 256, 128>}, {pipeline_mode = #tpu.pipeline_mode<synchronous>, transform_indices = @transform_11, window_bounds = array<i64: 1, 128>}, {pipeline_mode = #tpu.pipeline_mode<synchronous>, transform_indices = @transform_12, window_bounds = array<i64: 1, 128>}, {pipeline_mode = #tpu.pipeline_mode<synchronous>, transform_indices = @transform_13, window_bounds = array<i64: 1, 128>}, {pipeline_mode = #tpu.pipeline_mode<synchronous>, transform_indices = @transform_14, window_bounds = array<i64: 128, 512>}, {pipeline_mode = #tpu.pipeline_mode<synchronous>, transform_indices = @transform_15, window_bounds = array<i64: 1, 512>}, {pipeline_mode = #tpu.pipeline_mode<synchronous>, transform_indices = @transform_16, window_bounds = array<i64: 512, 128>}, {pipeline_mode = #tpu.pipeline_mode<synchronous>, transform_indices = @transform_17, window_bounds = array<i64: 1, 128>}, {transform_indices = @transform_18, window_bounds = array<i64: 64, 128>}]} {
    %c0 = arith.constant 0 : index
    %c0_0 = arith.constant 0 : index
    %0 = vector.load %arg1[%c0, %c0_0] : memref<64x128xf32, #tpu.memory_space<vmem>>, vector<64x128xf32>
    %c0_1 = arith.constant 0 : index
    %c0_2 = arith.constant 0 : index
    %1 = vector.load %arg3[%c0_1, %c0_2] : memref<1x128xf32, #tpu.memory_space<vmem>>, vector<1x128xf32>
    %c0_3 = arith.constant 0 : index
    %c0_4 = arith.constant 0 : index
    %2 = vector.load %arg4[%c0_3, %c0_4] : memref<1x128xf32, #tpu.memory_space<vmem>>, vector<1x128xf32>
    %cst = arith.constant dense<0.000000e+00> : vector<64xf32>
    %3 = vector.multi_reduction <add>, %0, %cst [1] : vector<64x128xf32> to vector<64xf32>
    %4 = vector.shape_cast %3 : vector<64xf32> to vector<64x1xf32>
    %cst_5 = arith.constant 1.280000e+02 : f32
    %5 = vector.broadcast %cst_5 : f32 to vector<64x1xf32>
    %6 = arith.divf %4, %5 : vector<64x1xf32>
    %7 = vector.broadcast %6 : vector<64x1xf32> to vector<64x128xf32>
    %8 = arith.subf %0, %7 : vector<64x128xf32>
    %9 = arith.mulf %8, %8 : vector<64x128xf32>
    %cst_6 = arith.constant dense<0.000000e+00> : vector<64xf32>
    %10 = vector.multi_reduction <add>, %9, %cst_6 [1] : vector<64x128xf32> to vector<64xf32>
    %11 = vector.shape_cast %10 : vector<64xf32> to vector<64x1xf32>
    %cst_7 = arith.constant 1.280000e+02 : f32
    %12 = vector.broadcast %cst_7 : f32 to vector<64x1xf32>
    %13 = arith.divf %11, %12 : vector<64x1xf32>
    %14 = vector.broadcast %6 : vector<64x1xf32> to vector<64x128xf32>
    %15 = arith.subf %0, %14 : vector<64x128xf32>
    %cst_8 = arith.constant 9.99999974E-6 : f32
    %16 = vector.broadcast %cst_8 : f32 to vector<64x1xf32>
    %17 = arith.addf %13, %16 : vector<64x1xf32>
    %18 = math.rsqrt %17 : vector<64x1xf32>
    %19 = vector.broadcast %18 : vector<64x1xf32> to vector<64x128xf32>
    %20 = arith.mulf %15, %19 : vector<64x128xf32>
    %21 = vector.broadcast %1 : vector<1x128xf32> to vector<64x128xf32>
    %22 = arith.mulf %20, %21 : vector<64x128xf32>
    %23 = vector.broadcast %2 : vector<1x128xf32> to vector<64x128xf32>
    %24 = arith.addf %22, %23 : vector<64x128xf32>
    %25 = arith.truncf %24 : vector<64x128xf32> to vector<64x128xbf16>
    %c0_9 = arith.constant 0 : index
    %c0_10 = arith.constant 0 : index
    %26 = vector.load %arg5[%c0_9, %c0_10] : memref<128x256xbf16, #tpu.memory_space<vmem>>, vector<128x256xbf16>
    %cst_11 = arith.constant dense<0.000000e+00> : vector<64x256xf32>
    %27 = tpu.matmul %25, %26, %cst_11 {dimension_numbers = #tpu.dot_dimension_numbers<[1], [0], [0], [1], [0, 0, 1, 1], [], []>} : vector<64x128xbf16>, vector<128x256xbf16>, vector<64x256xf32> -> vector<64x256xf32>
    %28 = arith.truncf %27 : vector<64x256xf32> to vector<64x256xbf16>
    %c0_12 = arith.constant 0 : index
    %c0_13 = arith.constant 0 : index
    %29 = vector.load %arg2[%c0_12, %c0_13] : memref<64x64xbf16, #tpu.memory_space<vmem>>, vector<64x64xbf16>
    %cst_14 = arith.constant dense<0.000000e+00> : vector<64x128xf32>
    %30 = tpu.matmul %29, %25, %cst_14 {dimension_numbers = #tpu.dot_dimension_numbers<[1], [0], [0], [1], [0, 0, 1, 1], [], []>} : vector<64x64xbf16>, vector<64x128xbf16>, vector<64x128xf32> -> vector<64x128xf32>
    %c0_15 = arith.constant 0 : index
    %c0_16 = arith.constant 0 : index
    %31 = vector.load %arg7[%c0_15, %c0_16] : memref<1x128xf32, #tpu.memory_space<vmem>>, vector<1x128xf32>
    %32 = vector.extract_strided_slice %30 {offsets = [0, 0], sizes = [16, 128], strides = [1, 1]} : vector<64x128xf32> to vector<16x128xf32>
    %33 = arith.truncf %32 : vector<16x128xf32> to vector<16x128xbf16>
    %c0_17 = arith.constant 0 : index
    %c0_18 = arith.constant 0 : index
    %c0_19 = arith.constant 0 : index
    %34 = vector.load %arg6[%c0_17, %c0_18, %c0_19] : memref<4x128x128xbf16, #tpu.memory_space<vmem>>, vector<1x128x128xbf16>
    %35 = vector.shape_cast %34 : vector<1x128x128xbf16> to vector<128x128xbf16>
    %cst_20 = arith.constant dense<0.000000e+00> : vector<16x128xf32>
    %36 = tpu.matmul %33, %35, %cst_20 {dimension_numbers = #tpu.dot_dimension_numbers<[1], [0], [0], [1], [0, 0, 1, 1], [], []>} : vector<16x128xbf16>, vector<128x128xbf16>, vector<16x128xf32> -> vector<16x128xf32>
    %37 = vector.broadcast %31 : vector<1x128xf32> to vector<16x128xf32>
    %38 = arith.addf %37, %36 : vector<16x128xf32>
    %39 = vector.extract_strided_slice %30 {offsets = [16, 0], sizes = [16, 128], strides = [1, 1]} : vector<64x128xf32> to vector<16x128xf32>
    %40 = arith.truncf %39 : vector<16x128xf32> to vector<16x128xbf16>
    %c1 = arith.constant 1 : index
    %c0_21 = arith.constant 0 : index
    %c0_22 = arith.constant 0 : index
    %41 = vector.load %arg6[%c1, %c0_21, %c0_22] : memref<4x128x128xbf16, #tpu.memory_space<vmem>>, vector<1x128x128xbf16>
    %42 = vector.shape_cast %41 : vector<1x128x128xbf16> to vector<128x128xbf16>
    %cst_23 = arith.constant dense<0.000000e+00> : vector<16x128xf32>
    %43 = tpu.matmul %40, %42, %cst_23 {dimension_numbers = #tpu.dot_dimension_numbers<[1], [0], [0], [1], [0, 0, 1, 1], [], []>} : vector<16x128xbf16>, vector<128x128xbf16>, vector<16x128xf32> -> vector<16x128xf32>
    %44 = arith.addf %38, %43 : vector<16x128xf32>
    %45 = vector.extract_strided_slice %30 {offsets = [32, 0], sizes = [16, 128], strides = [1, 1]} : vector<64x128xf32> to vector<16x128xf32>
    %46 = arith.truncf %45 : vector<16x128xf32> to vector<16x128xbf16>
    %c2 = arith.constant 2 : index
    %c0_24 = arith.constant 0 : index
    %c0_25 = arith.constant 0 : index
    %47 = vector.load %arg6[%c2, %c0_24, %c0_25] : memref<4x128x128xbf16, #tpu.memory_space<vmem>>, vector<1x128x128xbf16>
    %48 = vector.shape_cast %47 : vector<1x128x128xbf16> to vector<128x128xbf16>
    %cst_26 = arith.constant dense<0.000000e+00> : vector<16x128xf32>
    %49 = tpu.matmul %46, %48, %cst_26 {dimension_numbers = #tpu.dot_dimension_numbers<[1], [0], [0], [1], [0, 0, 1, 1], [], []>} : vector<16x128xbf16>, vector<128x128xbf16>, vector<16x128xf32> -> vector<16x128xf32>
    %50 = arith.addf %44, %49 : vector<16x128xf32>
    %51 = vector.extract_strided_slice %30 {offsets = [48, 0], sizes = [16, 128], strides = [1, 1]} : vector<64x128xf32> to vector<16x128xf32>
    %52 = arith.truncf %51 : vector<16x128xf32> to vector<16x128xbf16>
    %c3 = arith.constant 3 : index
    %c0_27 = arith.constant 0 : index
    %c0_28 = arith.constant 0 : index
    %53 = vector.load %arg6[%c3, %c0_27, %c0_28] : memref<4x128x128xbf16, #tpu.memory_space<vmem>>, vector<1x128x128xbf16>
    %54 = vector.shape_cast %53 : vector<1x128x128xbf16> to vector<128x128xbf16>
    %cst_29 = arith.constant dense<0.000000e+00> : vector<16x128xf32>
    %55 = tpu.matmul %52, %54, %cst_29 {dimension_numbers = #tpu.dot_dimension_numbers<[1], [0], [0], [1], [0, 0, 1, 1], [], []>} : vector<16x128xbf16>, vector<128x128xbf16>, vector<16x128xf32> -> vector<16x128xf32>
    %56 = arith.addf %50, %55 : vector<16x128xf32>
    %c0_30 = arith.constant 0 : index
    %c0_31 = arith.constant 0 : index
    %57 = vector.load %arg8[%c0_30, %c0_31] : memref<1x128xf32, #tpu.memory_space<vmem>>, vector<1x128xf32>
    %c0_32 = arith.constant 0 : index
    %c0_33 = arith.constant 0 : index
    %58 = vector.load %arg9[%c0_32, %c0_33] : memref<1x128xf32, #tpu.memory_space<vmem>>, vector<1x128xf32>
    %cst_34 = arith.constant dense<0.000000e+00> : vector<16xf32>
    %59 = vector.multi_reduction <add>, %56, %cst_34 [1] : vector<16x128xf32> to vector<16xf32>
    %60 = vector.shape_cast %59 : vector<16xf32> to vector<16x1xf32>
    %cst_35 = arith.constant 1.280000e+02 : f32
    %61 = vector.broadcast %cst_35 : f32 to vector<16x1xf32>
    %62 = arith.divf %60, %61 : vector<16x1xf32>
    %63 = vector.broadcast %62 : vector<16x1xf32> to vector<16x128xf32>
    %64 = arith.subf %56, %63 : vector<16x128xf32>
    %65 = arith.mulf %64, %64 : vector<16x128xf32>
    %cst_36 = arith.constant dense<0.000000e+00> : vector<16xf32>
    %66 = vector.multi_reduction <add>, %65, %cst_36 [1] : vector<16x128xf32> to vector<16xf32>
    %67 = vector.shape_cast %66 : vector<16xf32> to vector<16x1xf32>
    %cst_37 = arith.constant 1.280000e+02 : f32
    %68 = vector.broadcast %cst_37 : f32 to vector<16x1xf32>
    %69 = arith.divf %67, %68 : vector<16x1xf32>
    %70 = vector.broadcast %62 : vector<16x1xf32> to vector<16x128xf32>
    %71 = arith.subf %56, %70 : vector<16x128xf32>
    %cst_38 = arith.constant 9.99999974E-6 : f32
    %72 = vector.broadcast %cst_38 : f32 to vector<16x1xf32>
    %73 = arith.addf %69, %72 : vector<16x1xf32>
    %74 = math.rsqrt %73 : vector<16x1xf32>
    %75 = vector.broadcast %74 : vector<16x1xf32> to vector<16x128xf32>
    %76 = arith.mulf %71, %75 : vector<16x128xf32>
    %77 = vector.broadcast %57 : vector<1x128xf32> to vector<16x128xf32>
    %78 = arith.mulf %76, %77 : vector<16x128xf32>
    %79 = vector.broadcast %58 : vector<1x128xf32> to vector<16x128xf32>
    %80 = arith.addf %78, %79 : vector<16x128xf32>
    %81 = arith.truncf %80 : vector<16x128xf32> to vector<16x128xbf16>
    %c0_39 = arith.constant 0 : index
    %c0_40 = arith.constant 0 : index
    %82 = vector.load %arg10[%c0_39, %c0_40] : memref<128x512xbf16, #tpu.memory_space<vmem>>, vector<128x512xbf16>
    %cst_41 = arith.constant dense<0.000000e+00> : vector<16x512xf32>
    %83 = tpu.matmul %81, %82, %cst_41 {dimension_numbers = #tpu.dot_dimension_numbers<[1], [0], [0], [1], [0, 0, 1, 1], [], []>} : vector<16x128xbf16>, vector<128x512xbf16>, vector<16x512xf32> -> vector<16x512xf32>
    %84 = arith.truncf %83 : vector<16x512xf32> to vector<16x512xbf16>
    %c0_42 = arith.constant 0 : index
    %c0_43 = arith.constant 0 : index
    %85 = vector.load %arg12[%c0_42, %c0_43] : memref<1x128xf32, #tpu.memory_space<vmem>>, vector<1x128xf32>
    %86 = vector.broadcast %85 : vector<1x128xf32> to vector<64x128xf32>
    %87 = arith.addf %0, %86 : vector<64x128xf32>
    %88 = vector.extract_strided_slice %28 {offsets = [0, 0], sizes = [64, 128], strides = [1, 1]} : vector<64x256xbf16> to vector<64x128xbf16>
    %89 = vector.extract_strided_slice %84 {offsets = [0, 0], sizes = [16, 128], strides = [1, 1]} : vector<16x512xbf16> to vector<16x128xbf16>
    %90 = vector.extract_strided_slice %84 {offsets = [0, 256], sizes = [16, 128], strides = [1, 1]} : vector<16x512xbf16> to vector<16x128xbf16>
    %cst_44 = arith.constant dense<0.000000e+00> : vector<64x16xf32>
    %91 = tpu.matmul %88, %89, %cst_44 {dimension_numbers = #tpu.dot_dimension_numbers<[1], [1], [0], [0], [0, 0, 1, 0], [], []>} : vector<64x128xbf16>, vector<16x128xbf16>, vector<64x16xf32> -> vector<64x16xf32>
    %cst_45 = arith.constant dense<0xFF800000> : vector<64xf32>
    %92 = vector.multi_reduction <maximumf>, %91, %cst_45 [1] : vector<64x16xf32> to vector<64xf32>
    %93 = vector.shape_cast %92 : vector<64xf32> to vector<64x1xf32>
    %94 = vector.broadcast %93 : vector<64x1xf32> to vector<64x16xf32>
    %95 = arith.subf %91, %94 : vector<64x16xf32>
    %96 = math.exp %95 : vector<64x16xf32>
    %cst_46 = arith.constant dense<0.000000e+00> : vector<64xf32>
    %97 = vector.multi_reduction <add>, %96, %cst_46 [1] : vector<64x16xf32> to vector<64xf32>
    %98 = vector.shape_cast %97 : vector<64xf32> to vector<64x1xf32>
    %99 = tpu.reciprocal %98 {approx = true} : vector<64x1xf32> -> vector<64x1xf32>
    %100 = vector.broadcast %99 : vector<64x1xf32> to vector<64x16xf32>
    %101 = arith.mulf %96, %100 : vector<64x16xf32>
    %102 = arith.truncf %101 : vector<64x16xf32> to vector<64x16xbf16>
    %cst_47 = arith.constant dense<0.000000e+00> : vector<64x128xf32>
    %103 = tpu.matmul %102, %90, %cst_47 {dimension_numbers = #tpu.dot_dimension_numbers<[1], [0], [0], [1], [0, 0, 1, 1], [], []>} : vector<64x16xbf16>, vector<16x128xbf16>, vector<64x128xf32> -> vector<64x128xf32>
    %104 = arith.truncf %103 : vector<64x128xf32> to vector<64x128xbf16>
    %c0_48 = arith.constant 0 : index
    %c0_49 = arith.constant 0 : index
    %105 = vector.load %arg11[%c0_48, %c0_49] : memref<256x128xbf16, #tpu.memory_space<vmem>>, vector<128x128xbf16>
    %cst_50 = arith.constant dense<0.000000e+00> : vector<64x128xf32>
    %106 = tpu.matmul %104, %105, %cst_50 {dimension_numbers = #tpu.dot_dimension_numbers<[1], [0], [0], [1], [0, 0, 1, 1], [], []>} : vector<64x128xbf16>, vector<128x128xbf16>, vector<64x128xf32> -> vector<64x128xf32>
    %107 = arith.addf %87, %106 : vector<64x128xf32>
    %108 = vector.extract_strided_slice %28 {offsets = [0, 128], sizes = [64, 128], strides = [1, 1]} : vector<64x256xbf16> to vector<64x128xbf16>
    %109 = vector.extract_strided_slice %84 {offsets = [0, 128], sizes = [16, 128], strides = [1, 1]} : vector<16x512xbf16> to vector<16x128xbf16>
    %110 = vector.extract_strided_slice %84 {offsets = [0, 384], sizes = [16, 128], strides = [1, 1]} : vector<16x512xbf16> to vector<16x128xbf16>
    %cst_51 = arith.constant dense<0.000000e+00> : vector<64x16xf32>
    %111 = tpu.matmul %108, %109, %cst_51 {dimension_numbers = #tpu.dot_dimension_numbers<[1], [1], [0], [0], [0, 0, 1, 0], [], []>} : vector<64x128xbf16>, vector<16x128xbf16>, vector<64x16xf32> -> vector<64x16xf32>
    %cst_52 = arith.constant dense<0xFF800000> : vector<64xf32>
    %112 = vector.multi_reduction <maximumf>, %111, %cst_52 [1] : vector<64x16xf32> to vector<64xf32>
    %113 = vector.shape_cast %112 : vector<64xf32> to vector<64x1xf32>
    %114 = vector.broadcast %113 : vector<64x1xf32> to vector<64x16xf32>
    %115 = arith.subf %111, %114 : vector<64x16xf32>
    %116 = math.exp %115 : vector<64x16xf32>
    %cst_53 = arith.constant dense<0.000000e+00> : vector<64xf32>
    %117 = vector.multi_reduction <add>, %116, %cst_53 [1] : vector<64x16xf32> to vector<64xf32>
    %118 = vector.shape_cast %117 : vector<64xf32> to vector<64x1xf32>
    %119 = tpu.reciprocal %118 {approx = true} : vector<64x1xf32> -> vector<64x1xf32>
    %120 = vector.broadcast %119 : vector<64x1xf32> to vector<64x16xf32>
    %121 = arith.mulf %116, %120 : vector<64x16xf32>
    %122 = arith.truncf %121 : vector<64x16xf32> to vector<64x16xbf16>
    %cst_54 = arith.constant dense<0.000000e+00> : vector<64x128xf32>
    %123 = tpu.matmul %122, %110, %cst_54 {dimension_numbers = #tpu.dot_dimension_numbers<[1], [0], [0], [1], [0, 0, 1, 1], [], []>} : vector<64x16xbf16>, vector<16x128xbf16>, vector<64x128xf32> -> vector<64x128xf32>
    %124 = arith.truncf %123 : vector<64x128xf32> to vector<64x128xbf16>
    %c128 = arith.constant 128 : index
    %c0_55 = arith.constant 0 : index
    %125 = vector.load %arg11[%c128, %c0_55] : memref<256x128xbf16, #tpu.memory_space<vmem>>, vector<128x128xbf16>
    %cst_56 = arith.constant dense<0.000000e+00> : vector<64x128xf32>
    %126 = tpu.matmul %124, %125, %cst_56 {dimension_numbers = #tpu.dot_dimension_numbers<[1], [0], [0], [1], [0, 0, 1, 1], [], []>} : vector<64x128xbf16>, vector<128x128xbf16>, vector<64x128xf32> -> vector<64x128xf32>
    %127 = arith.addf %107, %126 : vector<64x128xf32>
    %c0_57 = arith.constant 0 : index
    %c0_58 = arith.constant 0 : index
    %128 = vector.load %arg13[%c0_57, %c0_58] : memref<1x128xf32, #tpu.memory_space<vmem>>, vector<1x128xf32>
    %c0_59 = arith.constant 0 : index
    %c0_60 = arith.constant 0 : index
    %129 = vector.load %arg14[%c0_59, %c0_60] : memref<1x128xf32, #tpu.memory_space<vmem>>, vector<1x128xf32>
    %cst_61 = arith.constant dense<0.000000e+00> : vector<64xf32>
    %130 = vector.multi_reduction <add>, %127, %cst_61 [1] : vector<64x128xf32> to vector<64xf32>
    %131 = vector.shape_cast %130 : vector<64xf32> to vector<64x1xf32>
    %cst_62 = arith.constant 1.280000e+02 : f32
    %132 = vector.broadcast %cst_62 : f32 to vector<64x1xf32>
    %133 = arith.divf %131, %132 : vector<64x1xf32>
    %134 = vector.broadcast %133 : vector<64x1xf32> to vector<64x128xf32>
    %135 = arith.subf %127, %134 : vector<64x128xf32>
    %136 = arith.mulf %135, %135 : vector<64x128xf32>
    %cst_63 = arith.constant dense<0.000000e+00> : vector<64xf32>
    %137 = vector.multi_reduction <add>, %136, %cst_63 [1] : vector<64x128xf32> to vector<64xf32>
    %138 = vector.shape_cast %137 : vector<64xf32> to vector<64x1xf32>
    %cst_64 = arith.constant 1.280000e+02 : f32
    %139 = vector.broadcast %cst_64 : f32 to vector<64x1xf32>
    %140 = arith.divf %138, %139 : vector<64x1xf32>
    %141 = vector.broadcast %133 : vector<64x1xf32> to vector<64x128xf32>
    %142 = arith.subf %127, %141 : vector<64x128xf32>
    %cst_65 = arith.constant 9.99999974E-6 : f32
    %143 = vector.broadcast %cst_65 : f32 to vector<64x1xf32>
    %144 = arith.addf %140, %143 : vector<64x1xf32>
    %145 = math.rsqrt %144 : vector<64x1xf32>
    %146 = vector.broadcast %145 : vector<64x1xf32> to vector<64x128xf32>
    %147 = arith.mulf %142, %146 : vector<64x128xf32>
    %148 = vector.broadcast %128 : vector<1x128xf32> to vector<64x128xf32>
    %149 = arith.mulf %147, %148 : vector<64x128xf32>
    %150 = vector.broadcast %129 : vector<1x128xf32> to vector<64x128xf32>
    %151 = arith.addf %149, %150 : vector<64x128xf32>
    %152 = arith.truncf %151 : vector<64x128xf32> to vector<64x128xbf16>
    %c0_66 = arith.constant 0 : index
    %c0_67 = arith.constant 0 : index
    %153 = vector.load %arg15[%c0_66, %c0_67] : memref<128x512xbf16, #tpu.memory_space<vmem>>, vector<128x512xbf16>
    %cst_68 = arith.constant dense<0.000000e+00> : vector<64x512xf32>
    %154 = tpu.matmul %152, %153, %cst_68 {dimension_numbers = #tpu.dot_dimension_numbers<[1], [0], [0], [1], [0, 0, 1, 1], [], []>} : vector<64x128xbf16>, vector<128x512xbf16>, vector<64x512xf32> -> vector<64x512xf32>
    %c0_69 = arith.constant 0 : index
    %c0_70 = arith.constant 0 : index
    %155 = vector.load %arg16[%c0_69, %c0_70] : memref<1x512xf32, #tpu.memory_space<vmem>>, vector<1x512xf32>
    %156 = vector.broadcast %155 : vector<1x512xf32> to vector<64x512xf32>
    %157 = arith.addf %154, %156 : vector<64x512xf32>
    %cst_71 = arith.constant 5.000000e-01 : f32
    %158 = vector.broadcast %cst_71 : f32 to vector<64x512xf32>
    %159 = arith.mulf %158, %157 : vector<64x512xf32>
    %cst_72 = arith.constant 4.471500e-02 : f32
    %160 = vector.broadcast %cst_72 : f32 to vector<64x512xf32>
    %161 = arith.mulf %160, %157 : vector<64x512xf32>
    %162 = arith.mulf %161, %157 : vector<64x512xf32>
    %163 = arith.mulf %162, %157 : vector<64x512xf32>
    %164 = arith.addf %157, %163 : vector<64x512xf32>
    %cst_73 = arith.constant 0.797884583 : f32
    %165 = vector.broadcast %cst_73 : f32 to vector<64x512xf32>
    %166 = arith.mulf %165, %164 : vector<64x512xf32>
    %167 = math.tanh %166 : vector<64x512xf32>
    %cst_74 = arith.constant 1.000000e+00 : f32
    %168 = vector.broadcast %cst_74 : f32 to vector<64x512xf32>
    %169 = arith.addf %168, %167 : vector<64x512xf32>
    %170 = arith.mulf %159, %169 : vector<64x512xf32>
    %171 = arith.truncf %170 : vector<64x512xf32> to vector<64x512xbf16>
    %c0_75 = arith.constant 0 : index
    %c0_76 = arith.constant 0 : index
    %172 = vector.load %arg17[%c0_75, %c0_76] : memref<512x128xbf16, #tpu.memory_space<vmem>>, vector<512x128xbf16>
    %cst_77 = arith.constant dense<0.000000e+00> : vector<64x128xf32>
    %173 = tpu.matmul %171, %172, %cst_77 {dimension_numbers = #tpu.dot_dimension_numbers<[1], [0], [0], [1], [0, 0, 1, 1], [], []>} : vector<64x512xbf16>, vector<512x128xbf16>, vector<64x128xf32> -> vector<64x128xf32>
    %174 = arith.addf %127, %173 : vector<64x128xf32>
    %c0_78 = arith.constant 0 : index
    %c0_79 = arith.constant 0 : index
    %175 = vector.load %arg18[%c0_78, %c0_79] : memref<1x128xf32, #tpu.memory_space<vmem>>, vector<1x128xf32>
    %176 = vector.broadcast %175 : vector<1x128xf32> to vector<64x128xf32>
    %177 = arith.addf %174, %176 : vector<64x128xf32>
    %c0_80 = arith.constant 0 : index
    %c0_81 = arith.constant 0 : index
    %178 = vector.load %arg19[%c0_80, %c0_81] : memref<64x128xf32, #tpu.memory_space<vmem>>, vector<64x128xf32>
    tpu.vector_store %arg19[%c0_80, %c0_81], %177 {strides = array<i32>} : memref<64x128xf32, #tpu.memory_space<vmem>>, vector<64x128xf32>,
    return
  }
  func.func @transform_0(%arg0: i32) -> (i32, i32) {
    %c0_i32 = arith.constant 0 : i32
    %c0_i32_0 = arith.constant 0 : i32
    return %arg0, %c0_i32 : i32, i32
  }
  func.func @transform_1(%arg0: i32) -> (i32, i32) {
    %c0_i32 = arith.constant 0 : i32
    %c0_i32_0 = arith.constant 0 : i32
    %c0_i32_1 = arith.constant 0 : i32
    return %c0_i32, %c0_i32_0 : i32, i32
  }
  func.func @transform_2(%arg0: i32) -> (i32, i32) {
    %c0_i32 = arith.constant 0 : i32
    %c0_i32_0 = arith.constant 0 : i32
    %c0_i32_1 = arith.constant 0 : i32
    return %c0_i32, %c0_i32_0 : i32, i32
  }
  func.func @transform_3(%arg0: i32) -> (i32, i32) {
    %c0_i32 = arith.constant 0 : i32
    %c0_i32_0 = arith.constant 0 : i32
    %c0_i32_1 = arith.constant 0 : i32
    return %c0_i32, %c0_i32_0 : i32, i32
  }
  func.func @transform_4(%arg0: i32) -> (i32, i32) {
    %c0_i32 = arith.constant 0 : i32
    %c0_i32_0 = arith.constant 0 : i32
    %c0_i32_1 = arith.constant 0 : i32
    return %c0_i32, %c0_i32_0 : i32, i32
  }
  func.func @transform_5(%arg0: i32) -> (i32, i32, i32) {
    %c0_i32 = arith.constant 0 : i32
    %c0_i32_0 = arith.constant 0 : i32
    %c0_i32_1 = arith.constant 0 : i32
    %c0_i32_2 = arith.constant 0 : i32
    return %c0_i32, %c0_i32_0, %c0_i32_1 : i32, i32, i32
  }
  func.func @transform_6(%arg0: i32) -> (i32, i32) {
    %c0_i32 = arith.constant 0 : i32
    %c0_i32_0 = arith.constant 0 : i32
    %c0_i32_1 = arith.constant 0 : i32
    return %c0_i32, %c0_i32_0 : i32, i32
  }
  func.func @transform_7(%arg0: i32) -> (i32, i32) {
    %c0_i32 = arith.constant 0 : i32
    %c0_i32_0 = arith.constant 0 : i32
    %c0_i32_1 = arith.constant 0 : i32
    return %c0_i32, %c0_i32_0 : i32, i32
  }
  func.func @transform_8(%arg0: i32) -> (i32, i32) {
    %c0_i32 = arith.constant 0 : i32
    %c0_i32_0 = arith.constant 0 : i32
    %c0_i32_1 = arith.constant 0 : i32
    return %c0_i32, %c0_i32_0 : i32, i32
  }
  func.func @transform_9(%arg0: i32) -> (i32, i32) {
    %c0_i32 = arith.constant 0 : i32
    %c0_i32_0 = arith.constant 0 : i32
    %c0_i32_1 = arith.constant 0 : i32
    return %c0_i32, %c0_i32_0 : i32, i32
  }
  func.func @transform_10(%arg0: i32) -> (i32, i32) {
    %c0_i32 = arith.constant 0 : i32
    %c0_i32_0 = arith.constant 0 : i32
    %c0_i32_1 = arith.constant 0 : i32
    return %c0_i32, %c0_i32_0 : i32, i32
  }
  func.func @transform_11(%arg0: i32) -> (i32, i32) {
    %c0_i32 = arith.constant 0 : i32
    %c0_i32_0 = arith.constant 0 : i32
    %c0_i32_1 = arith.constant 0 : i32
    return %c0_i32, %c0_i32_0 : i32, i32
  }
  func.func @transform_12(%arg0: i32) -> (i32, i32) {
    %c0_i32 = arith.constant 0 : i32
    %c0_i32_0 = arith.constant 0 : i32
    %c0_i32_1 = arith.constant 0 : i32
    return %c0_i32, %c0_i32_0 : i32, i32
  }
  func.func @transform_13(%arg0: i32) -> (i32, i32) {
    %c0_i32 = arith.constant 0 : i32
    %c0_i32_0 = arith.constant 0 : i32
    %c0_i32_1 = arith.constant 0 : i32
    return %c0_i32, %c0_i32_0 : i32, i32
  }
  func.func @transform_14(%arg0: i32) -> (i32, i32) {
    %c0_i32 = arith.constant 0 : i32
    %c0_i32_0 = arith.constant 0 : i32
    %c0_i32_1 = arith.constant 0 : i32
    return %c0_i32, %c0_i32_0 : i32, i32
  }
  func.func @transform_15(%arg0: i32) -> (i32, i32) {
    %c0_i32 = arith.constant 0 : i32
    %c0_i32_0 = arith.constant 0 : i32
    %c0_i32_1 = arith.constant 0 : i32
    return %c0_i32, %c0_i32_0 : i32, i32
  }
  func.func @transform_16(%arg0: i32) -> (i32, i32) {
    %c0_i32 = arith.constant 0 : i32
    %c0_i32_0 = arith.constant 0 : i32
    %c0_i32_1 = arith.constant 0 : i32
    return %c0_i32, %c0_i32_0 : i32, i32
  }
  func.func @transform_17(%arg0: i32) -> (i32, i32) {
    %c0_i32 = arith.constant 0 : i32
    %c0_i32_0 = arith.constant 0 : i32
    %c0_i32_1 = arith.constant 0 : i32
    return %c0_i32, %c0_i32_0 : i32, i32
  }
  func.func @transform_18(%arg0: i32) -> (i32, i32) {
    %c0_i32 = arith.constant 0 : i32
    %c0_i32_0 = arith.constant 0 : i32
    return %arg0, %c0_i32 : i32, i32
  }
}

</mosaic_0001>

<bundles_post_ra>
// kernel: block_forward.1
= control target key start
LH: loop header
LB: loop body
LE: loop exit
PB: predicated region body
PF: predicated region fallthrough
CT: control target
= control target key end

     0   :  { %s6542_s0 = inlined_call_operand.vmem [shape: f32[128,128], index: 0, kind: input, shape index: {}, may-alias: {0,18}]   ;;  %s6543_s1 = inlined_call_operand.vmem [shape: bf16[64,64], index: 1, kind: input, shape index: {}]   ;;  %s6544_s2 = inlined_call_operand.vmem [shape: f32[1,128], index: 2, kind: input, shape index: {}]   ;;  %s6545_s3 = inlined_call_operand.vmem [shape: f32[1,128], index: 3, kind: input, shape index: {}]   ;;  %s6546_s4 = inlined_call_operand.vmem [shape: bf16[128,256], index: 4, kind: input, shape index: {}]   ;;  %s6547_s5 = inlined_call_operand.hbm [shape: bf16[4,128,128], index: 5, kind: input, shape index: {}]   ;;  %s6548_s6 = inlined_call_operand.vmem [shape: f32[1,128], index: 6, kind: input, shape index: {}]   ;;  %s6549_s7 = inlined_call_operand.vmem [shape: f32[1,128], index: 7, kind: input, shape index: {}]   ;;  %s6550_s8 = inlined_call_operand.vmem [shape: f32[1,128], index: 8, kind: input, shape index: {}]   ;;  %s6551_s9 = inlined_call_operand.hbm [shape: bf16[128,512], index: 9, kind: input, shape index: {}]   ;;  %s6552_s10 = inlined_call_operand.hbm [shape: bf16[256,128], index: 10, kind: input, shape index: {}]   ;;  %s6553_s11 = inlined_call_operand.vmem [shape: f32[1,128], index: 11, kind: input, shape index: {}]   ;;  %s6554_s12 = inlined_call_operand.vmem [shape: f32[1,128], index: 12, kind: input, shape index: {}]   ;;  %s6555_s13 = inlined_call_operand.hbm [shape: f32[1,128], index: 13, kind: input, shape index: {}]   ;;  %s6556_s14 = inlined_call_operand.hbm [shape: bf16[128,512], index: 14, kind: input, shape index: {}]   ;;  %s6557_s15 = inlined_call_operand.hbm [shape: f32[1,512], index: 15, kind: input, shape index: {}]   ;;  %s6558_s16 = inlined_call_operand.hbm [shape: bf16[512,128], index: 16, kind: input, shape index: {}]   ;;  %s6559_s17 = inlined_call_operand.hbm [shape: f32[1,128], index: 17, kind: input, shape index: {}]   ;;  %s6560_s18 = inlined_call_operand.vmem [shape: f32[128,128], index: 18, kind: output, shape index: {}, may-alias: {0,18}]  }
   0x1   :  { %6569 = sst [smem:[#allocation20_spill]] %s6542_s0 }
   0x2   :  { %6570 = sst [smem:[#allocation21_spill]] %s6543_s1 }
   0x3   :  { %6571 = sst [smem:[#allocation22_spill]] %s6544_s2 }
   0x4   :  { %6572 = sst [smem:[#allocation23_spill]] %s6549_s7 }
   0x5   :  { %6573 = sst [smem:[#allocation24_spill]] %s6550_s8 }
   0x6   :  { %6574 = sst [smem:[#allocation25_spill]] %s6551_s9 }
   0x7   :  { %6575 = sst [smem:[#allocation26_spill]] %s6553_s11 }
   0x8   :  { %6576 = sst [smem:[#allocation27_spill]] %s6554_s12 }
   0x9   :  { %6577 = sst [smem:[#allocation28_spill]] %s6560_s18 }
   0xa   :  { %23 = vsyncpa [#allocation3], 0 }
   0xb   :  { %24 = vsyncpa [#allocation5], 0 }
   0xc   :  { %25 = vsyncpa [#allocation8], 0 }
   0xd   :  { %26 = vsyncpa [#allocation11], 0 }
   0xe   :  { %27 = vsyncpa [#allocation14], 0  ;;  %s5418_s27 = smov 0  }
   0xf LB: > { %s5308_s28 = smov [#allocation4]   ;;  %s6562_s30 = sadd.s32 4294967295, %s5306_s27   ;;  %s5306_s27 = sphi %s5418_s27, %s33_s27  }
  0x10   : > { %s493_s29 = sshll.u32 %s5308_s28, 4  ;;  %p3976_p0 = scmp.ge.s32.totalorder %s5306_s27, 1  ;;  %s5432_s29 = int_to_ptr.vmem [resolvable:$true] %s493_s29 }
  0x11   : > { %p447_p1 = scmp.lt.s32.totalorder %s5306_s27, 3  ;;  %p5428_p2 = scmp.eq.s32.totalorder %s6562_s30, 0 }
  0x12   : > { %s5309_s1 = smov [#allocation7]   ;;  %s5310_s22 = smov [#allocation10]  }
  0x13   : > { %s6578_s0 = scalar_select %p5428_p2, 1, 0 }
  0x14   : > { %p5434_p3 = pnand %p3976_p0, %p447_p1  ;;  %s526_s20 = sshll.u32 %s5309_s1, 4  ;;  %s5440_s20 = int_to_ptr.vmem [resolvable:$true] %s526_s20 }
  0x15   : > { %s550_s2 = sshll.u32 %s5310_s22, 4  ;;  %s5311_s23 = smov [#allocation2]   ;;  %s5448_s2 = int_to_ptr.vmem [resolvable:$true] %s550_s2 }
  0x16   : > { %s6579_s19 = scalar_select %p5434_p3, 1, 0 }
  0x17   : > { %p4616_p4 = pneg %p5434_p3  ;;  %s5450_s24 = sshll.u32 %s5311_s23, 4  ;;  %s472_s24 = int_to_ptr.vmem [resolvable:$true] %s5450_s24 }
  0x18   : > { %s6581_s9 = sld [smem:[#allocation25_spill]] }
  0x19   : > { %p5444_p5 = pnand %p5428_p2, %p4616_p4 }
  0x1b   : > { %p5460_p7 = pneg %p5444_p5 }
  0x1e   : > { %s5056_s28 = scalar_lea.hbm %s6581_s9, 4096 }
  0x1f   : > { %p5057_p6 = scmp.ne.s32.totalorder %s6581_s9, %s5056_s28  ;;  %p5063_p10 = scmp.lt.u32.totalorder %s5056_s28, %s6581_s9 }
  0x21   : > { %p5059_p8 = pnand %p5460_p7, %p5057_p6 }
  0x23   : > { %p5060_p9 = pneg %p5059_p8 }
  0x25   : > { %p5065_p11 = pnand %p5063_p10, %p5060_p9 }
  0x27   : > { %5068 = shalt.err (!%p5065_p11)
}
  0x28   : > { %s5069_s30 = scalar_lea.vmem %s5432_s29, 4096  ;;  %p5077_p1 = scmp.lt.s32.totalorder %s5432_s29, %s5432_s29 }
  0x29   : > { %p5070_p12 = scmp.ne.s32.totalorder %s5432_s29, %s5069_s30  ;;  %p5078_p4 = scmp.lt.s32.totalorder %s5069_s30, %s5069_s30 }
  0x2b   : > { %p5072_p13 = pnand %p5070_p12, %p5460_p7  ;;  %p5079_p6 = por %p5078_p4, %p5077_p1 }
  0x2d   : > { %p5073_p0 = pneg %p5072_p13 }
  0x2f   : > { %p5080_p8 = pnand %p5079_p6, %p5073_p0 }
  0x31   : > { %5083 = shalt.err (!%p5080_p8)
}
  0x32   : > { %s6566_s25 = smov 256   ;;  %s6567_s26 = smov 16  }
  0x33   : > { %4622 = dma.hbm_to_vmem [thread:$0]  (!%p5444_p5), %s6581_s9, 4096, %s5432_s29, [#allocation5], %s6566_s25, %s6566_s25, %s6567_s26  }
  0x34   : > { %s5084_s30 = scalar_lea.hbm %s6555_s13, 16 }
  0x35   : > { %p5085_p9 = scmp.ne.s32.totalorder %s6555_s13, %s5084_s30  ;;  %p5091_p12 = scmp.lt.u32.totalorder %s5084_s30, %s6555_s13 }
  0x37   : > { %p5087_p10 = pnand %p5085_p9, %p5460_p7 }
  0x39   : > { %p5088_p11 = pneg %p5087_p10 }
  0x3b   : > { %p5093_p13 = pnand %p5091_p12, %p5088_p11 }
  0x3d   : > { %5096 = shalt.err (!%p5093_p13)
}
  0x3e   : > { %s5097_s29 = scalar_lea.vmem %s5440_s20, 16  ;;  %s5104_s11 = scalar_lea.vmem %s5440_s20, 32 }
  0x3f   : > { %p5098_p0 = scmp.ne.s32.totalorder %s5440_s20, %s5097_s29  ;;  %p5105_p6 = scmp.lt.s32.totalorder %s5440_s20, %s5440_s20 }
  0x40   : > { %p5106_p8 = scmp.lt.s32.totalorder %s5104_s11, %s5097_s29 }
  0x41   : > { %p5100_p1 = pnand %p5098_p0, %p5460_p7 }
  0x42   : > { %p5107_p9 = por %p5106_p8, %p5105_p6 }
  0x43   : > { %p5101_p4 = pneg %p5100_p1 }
  0x45   : > { %p5108_p10 = pnand %p5107_p9, %p5101_p4 }
  0x47   : > { %5111 = shalt.err (!%p5108_p10)
}
  0x48   : > { %4628 = dma.hbm_to_vmem [thread:$0]  (!%p5444_p5), %s6555_s13, 16, %s5440_s20, [#allocation8]  }
  0x49   : > { %s5112_s1 = scalar_lea.hbm %s6557_s15, 64 }
  0x4a   : > { %p5113_p11 = scmp.ne.s32.totalorder %s6557_s15, %s5112_s1  ;;  %p5119_p0 = scmp.lt.u32.totalorder %s5112_s1, %s6557_s15 }
  0x4c   : > { %p5115_p12 = pnand %p5113_p11, %p5460_p7 }
  0x4e   : > { %p5116_p13 = pneg %p5115_p12 }
  0x50   : > { %p5121_p1 = pnand %p5119_p0, %p5116_p13 }
  0x52   : > { %5124 = shalt.err (!%p5121_p1)
}
  0x53   : > { %s5125_s20 = scalar_lea.vmem %s5448_s2, 64  ;;  %p5133_p9 = scmp.lt.s32.totalorder %s5448_s2, %s5448_s2 }
  0x54   : > { %p5126_p4 = scmp.ne.s32.totalorder %s5448_s2, %s5125_s20  ;;  %p5134_p10 = scmp.lt.s32.totalorder %s5125_s20, %s5125_s20 }
  0x56   : > { %p5128_p6 = pnand %p5126_p4, %p5460_p7  ;;  %p5135_p11 = por %p5134_p10, %p5133_p9 }
  0x58   : > { %p5129_p8 = pneg %p5128_p6 }
  0x5a   : > { %p5136_p12 = pnand %p5135_p11, %p5129_p8 }
  0x5c   : > { %5139 = shalt.err (!%p5136_p12)
}
  0x5d   : > { %4634 = dma.hbm_to_vmem [thread:$0]  (!%p5444_p5), %s6557_s15, 64, %s5448_s2, [#allocation11]  }
  0x5e   : > { %s5140_s28 = scalar_lea.hbm %s6547_s5, 4096 }
  0x5f   : > { %p5141_p13 = scmp.ne.s32.totalorder %s6547_s5, %s5140_s28  ;;  %p5147_p4 = scmp.lt.u32.totalorder %s5140_s28, %s6547_s5 }
  0x61   : > { %p5143_p0 = pnand %p5141_p13, %p5460_p7 }
  0x63   : > { %p5144_p1 = pneg %p5143_p0 }
  0x65   : > { %p5149_p6 = pnand %p5147_p4, %p5144_p1 }
  0x67   : > { %5152 = shalt.err (!%p5149_p6)
}
  0x68   : > { %s5153_s29 = scalar_lea.vmem %s472_s24, 4096  ;;  %p5161_p11 = scmp.lt.s32.totalorder %s472_s24, %s472_s24 }
  0x69   : > { %p5154_p8 = scmp.ne.s32.totalorder %s472_s24, %s5153_s29  ;;  %p5162_p12 = scmp.lt.s32.totalorder %s5153_s29, %s5153_s29 }
  0x6b   : > { %p5156_p9 = pnand %p5154_p8, %p5460_p7  ;;  %p5163_p2 = por %p5162_p12, %p5161_p11 }
  0x6d   : > { %p5157_p10 = pneg %p5156_p9 }
  0x6f   : > { %p5164_p3 = pnand %p5163_p2, %p5157_p10 }
  0x71   : > { %5167 = shalt.err (!%p5164_p3)
}
  0x72   : > { %s6568_s2 = smov 64   ;;  %s5315_s20 = smov 4  }
  0x73   : > { %4619 = dma.hbm_to_vmem [thread:$0]  (!%p5444_p5), %s6547_s5, 4096, %s472_s24, [#allocation3], %s6568_s2, %s6568_s2, %s5315_s20  }
  0x74   : > { %s5316_s8 = smov [#allocation6]   ;;  %s5317_s28 = smov [#allocation9]  }
  0x75   : > { %s506_s12 = sshll.u32 %s5316_s8, 4  ;;  %s536_s1 = sshll.u32 %s5317_s28, 4  ;;  %s507_s12 = int_to_ptr.vmem [resolvable:$true] %s506_s12  ;;  %s537_s1 = int_to_ptr.vmem [resolvable:$true] %s536_s1 }
  0x76   : > { %s5168_s30 = scalar_lea.hbm %s6552_s10, 2048 }
  0x77   : > { %p5169_p2 = scmp.ne.s32.totalorder %s6552_s10, %s5168_s30  ;;  %p5175_p0 = scmp.lt.u32.totalorder %s5168_s30, %s6552_s10 }
  0x79   : > { %p5171_p3 = pnand %p5169_p2, %p5460_p7 }
  0x7b   : > { %p5172_p13 = pneg %p5171_p3 }
  0x7d   : > { %p5177_p1 = pnand %p5175_p0, %p5172_p13 }
  0x7f   : > { %5180 = shalt.err (!%p5177_p1)
}
  0x80   : > { %s5181_s24 = scalar_lea.vmem %s507_s12, 2048  ;;  %p5189_p9 = scmp.lt.s32.totalorder %s507_s12, %s507_s12 }
  0x81   : > { %p5182_p4 = scmp.ne.s32.totalorder %s507_s12, %s5181_s24  ;;  %p5190_p10 = scmp.lt.s32.totalorder %s5181_s24, %s5181_s24 }
  0x83   : > { %p5184_p6 = pnand %p5182_p4, %p5460_p7  ;;  %p5191_p11 = por %p5190_p10, %p5189_p9 }
  0x85   : > { %p5185_p8 = pneg %p5184_p6 }
  0x87   : > { %p5192_p12 = pnand %p5191_p11, %p5185_p8 }
  0x89   : > { %5195 = shalt.err (!%p5192_p12)
}
  0x8a   : > { %4625 = dma.hbm_to_vmem [thread:$0]  (!%p5444_p5), %s6552_s10, 2048, %s507_s12, [#allocation5], %s6568_s2, %s6568_s2, %s5315_s20  }
  0x8b   : > { %s5196_s7 = scalar_lea.hbm %s6556_s14, 4096 }
  0x8c   : > { %p5197_p2 = scmp.ne.s32.totalorder %s6556_s14, %s5196_s7  ;;  %p5203_p0 = scmp.lt.u32.totalorder %s5196_s7, %s6556_s14 }
  0x8e   : > { %p5199_p3 = pnand %p5197_p2, %p5460_p7 }
  0x90   : > { %p5200_p13 = pneg %p5199_p3 }
  0x92   : > { %p5205_p1 = pnand %p5203_p0, %p5200_p13 }
  0x94   : > { %5208 = shalt.err (!%p5205_p1)
}
  0x95   : > { %s5209_s30 = scalar_lea.vmem %s537_s1, 4096  ;;  %p5217_p9 = scmp.lt.s32.totalorder %s537_s1, %s537_s1 }
  0x96   : > { %p5210_p4 = scmp.ne.s32.totalorder %s537_s1, %s5209_s30  ;;  %p5218_p10 = scmp.lt.s32.totalorder %s5209_s30, %s5209_s30 }
  0x98   : > { %p5212_p6 = pnand %p5210_p4, %p5460_p7  ;;  %p5219_p11 = por %p5218_p10, %p5217_p9 }
  0x9a   : > { %p5213_p8 = pneg %p5212_p6 }
  0x9c   : > { %p5220_p12 = pnand %p5219_p11, %p5213_p8 }
  0x9e   : > { %5223 = shalt.err (!%p5220_p12)
}
  0x9f   : > { %s6583_s12 = smov 16   ;;  %s6584_s29 = smov 256  }
  0xa0   : > { %4631 = dma.hbm_to_vmem [thread:$0]  (!%p5444_p5), %s6556_s14, 4096, %s537_s1, [#allocation8], %s6584_s29, %s6584_s29, %s6583_s12  }
  0xa1   : > { %s5318_s25 = smov [#allocation12]   ;;  %s5319_s11 = smov [#allocation13]  }
  0xa2   : > { %s560_s26 = sshll.u32 %s5318_s25, 4  ;;  %s574_s7 = sshll.u32 %s5319_s11, 4  ;;  %s561_s26 = int_to_ptr.vmem [resolvable:$true] %s560_s26  ;;  %s575_s7 = int_to_ptr.vmem [resolvable:$true] %s574_s7 }
  0xa3   : > { %s5224_s22 = scalar_lea.hbm %s6558_s16, 4096 }
  0xa4   : > { %p5225_p2 = scmp.ne.s32.totalorder %s6558_s16, %s5224_s22  ;;  %p5231_p0 = scmp.lt.u32.totalorder %s5224_s22, %s6558_s16 }
  0xa6   : > { %p5227_p3 = pnand %p5225_p2, %p5460_p7 }
  0xa8   : > { %p5228_p13 = pneg %p5227_p3 }
  0xaa   : > { %p5233_p1 = pnand %p5231_p0, %p5228_p13 }
  0xac   : > { %5236 = shalt.err (!%p5233_p1)
}
  0xad   : > { %s5237_s1 = scalar_lea.vmem %s561_s26, 4096  ;;  %p5245_p9 = scmp.lt.s32.totalorder %s561_s26, %s561_s26 }
  0xae   : > { %p5238_p4 = scmp.ne.s32.totalorder %s561_s26, %s5237_s1  ;;  %p5246_p10 = scmp.lt.s32.totalorder %s5237_s1, %s5237_s1 }
  0xb0   : > { %p5240_p6 = pnand %p5238_p4, %p5460_p7  ;;  %p5247_p11 = por %p5246_p10, %p5245_p9 }
  0xb2   : > { %p5241_p8 = pneg %p5240_p6 }
  0xb4   : > { %p5248_p12 = pnand %p5247_p11, %p5241_p8 }
  0xb6   : > { %5251 = shalt.err (!%p5248_p12)
}
  0xb7   : > { %s6585_s12 = smov 64   ;;  %s5252_s11 = scalar_lea.hbm %s6559_s17, 16 }
  0xb8   : > { %4637 = dma.hbm_to_vmem [thread:$0]  (!%p5444_p5), %s6558_s16, 4096, %s561_s26, [#allocation11], %s6585_s12, %s6585_s12, %s5315_s20  }
  0xb9   : > { %p5253_p2 = scmp.ne.s32.totalorder %s6559_s17, %s5252_s11  ;;  %p5259_p0 = scmp.lt.u32.totalorder %s5252_s11, %s6559_s17 }
  0xbb   : > { %p5255_p3 = pnand %p5253_p2, %p5460_p7 }
  0xbd   : > { %p5256_p13 = pneg %p5255_p3 }
  0xbf   : > { %p5261_p1 = pnand %p5259_p0, %p5256_p13 }
  0xc1   : > { %5264 = shalt.err (!%p5261_p1)
}
  0xc2   : > { %s5265_s30 = scalar_lea.vmem %s575_s7, 16  ;;  %s5272_s20 = scalar_lea.vmem %s575_s7, 32 }
  0xc3   : > { %p5266_p4 = scmp.ne.s32.totalorder %s575_s7, %s5265_s30  ;;  %p5273_p9 = scmp.lt.s32.totalorder %s575_s7, %s575_s7 }
  0xc4   : > { %p5274_p10 = scmp.lt.s32.totalorder %s5272_s20, %s5265_s30 }
  0xc5   : > { %p5268_p6 = pnand %p5266_p4, %p5460_p7 }
  0xc6   : > { %p5275_p11 = por %p5274_p10, %p5273_p9 }
  0xc7   : > { %p5269_p8 = pneg %p5268_p6 }
  0xc9   : > { %p5276_p12 = pnand %p5275_p11, %p5269_p8 }
  0xcb   : > { %5279 = shalt.err (!%p5276_p12)
}
  0xcc   : > { %4640 = dma.hbm_to_vmem [thread:$0]  (!%p5444_p5), %s6559_s17, 16, %s575_s7, [#allocation14]  }
  0xcd   : > { %p6586_p2 = scmp.ne.s32.totalorder %s6579_s19, 0 }
  0xce   : > { %p6587_p3 = scmp.ne.s32.totalorder (!%p6586_p2), %s6578_s0, 0 }
  0xcf   : > { %596 = sbr.rel (%p6586_p2) target bundleno = 3688 (0xe68), region = 92 }
  0xd6   : > { %5285 = dma.done.wait (%p6587_p3), [#allocation3], 4096  }
  0xd7   : > { %5287 = vsyncadd (%p6587_p3), [#allocation3], 4294963200 }
  0xd8   : > { %5289 = dma.done.wait (%p6587_p3), [#allocation5], 6144  }
  0xd9   : > { %5291 = vsyncadd (%p6587_p3), [#allocation5], 4294961152 }
  0xda   : > { %5293 = dma.done.wait (%p6587_p3), [#allocation8], 4112  }
  0xdb   : > { %5295 = vsyncadd (%p6587_p3), [#allocation8], 4294963184 }
  0xdc   : > { %5297 = dma.done.wait (%p6587_p3), [#allocation11], 4160  }
  0xdd   : > { %5299 = vsyncadd (%p6587_p3), [#allocation11], 4294963136 }
  0xde   : > { %5301 = dma.done.wait (%p6587_p3), [#allocation14], 16  }
  0xdf   : > { %5303 = vsyncadd (%p6587_p3), [#allocation14], 4294967280  ;;  %s6588_s18 = sadd.s32 4294967295, %s5306_s27   ;;  %s6589_s12 = sld [smem:[#allocation20_spill]]  ;;  %v4680_v8 = vld [vmem:[%s6546_s4 + $0x4] ss:$8 sps:$4 sm:$0xff]  }
  0xe0   : > { %s3995_s19 = sshll.u32 %s6588_s18, 3  ;;  %v4682_v9 = vld [vmem:[%s6546_s4] ss:$8 sps:$4 sm:$0xff]   ;;  %v4683_v10 = vld [vmem:[%s6546_s4 + $0x14] ss:$8 sps:$4 sm:$0xff]   ;;  %918 = vmatprep.subr.bf16.mxu0 %v4680_v8  ;;  %v5320_v56 = vmov 0  }
  0xe1   : > { %p679_p5 = scmp.lt.s32.totalorder %s3995_s19, 15  ;;  %919 = vmatpush1.bf16.msra.mxu0 %v4682_v9  ;;  %v4685_v43 = vld [vmem:[%s6546_s4 + $0x10] ss:$8 sps:$4 sm:$0xff]   ;;  %v4686_v44 = vld [vmem:[%s6546_s4 + $0x24] ss:$8 sps:$4 sm:$0xff]   ;;  %950 = vmatprep.mubr.bf16.mxu0 %v5320_v56  ;;  %s6590_s0 = sld [smem:[#allocation21_spill]] }
  0xe2   : > { %920 = vmatprep.subr.bf16.mxu0 %v4683_v10  ;;  %v4688_v45 = vld [vmem:[%s6546_s4 + $0x20] ss:$8 sps:$4 sm:$0xff]   ;;  %v4689_v46 = vld [vmem:[%s6546_s4 + $0x34] ss:$8 sps:$4 sm:$0xff]   ;;  %v4691_v47 = vld [vmem:[%s6546_s4 + $0x30] ss:$8 sps:$4 sm:$0xff]  }
  0xe3   : > { %s6598_s19 = smov (!%p679_p5, %s3995_s19), 15  ;;  %v4692_v48 = vld [vmem:[%s6546_s4 + $0x44] ss:$8 sps:$4 sm:$0xff]   ;;  %v4694_v49 = vld [vmem:[%s6546_s4 + $0x40] ss:$8 sps:$4 sm:$0xff]   ;;  %vm1027_vm0 = vcmask 523264  }
  0xe4   : > { %s3996_s21 = sshll.u32 %s6598_s19, 3  ;;  %v4695_v50 = vld [vmem:[%s6546_s4 + $0x54] ss:$8 sps:$4 sm:$0xff]   ;;  %v4697_v51 = vld [vmem:[%s6546_s4 + $0x50] ss:$8 sps:$4 sm:$0xff]   ;;  %s6591_s25 = sld [smem:[#allocation22_spill]] }
  0xe5   : > { %s5666_s2 = scalar_lea.vmem %s6589_s12, %s3996_s21  ;;  %921 = vmatpush1.bf16.msra.mxu0 %v4685_v43  ;;  %v4698_v52 = vld [vmem:[%s6546_s4 + $0x64] ss:$8 sps:$4 sm:$0xff]   ;;  %v4700_v53 = vld [vmem:[%s6546_s4 + $0x60] ss:$8 sps:$4 sm:$0xff]   ;;  %v4701_v54 = vld [vmem:[%s6546_s4 + $0x74] ss:$8 sps:$4 sm:$0xff]  }
  0xe6   : > { %v691_v0 = vld [vmem:[%s5666_s2] sm:$0xff]  ;;  %v693_v1 = vld [vmem:[%s5666_s2 + $0x10] sm:$0xff]  ;;  %v692_v2 = vld [vmem:[%s5666_s2 + $0x8] sm:$0xff]  ;;  %922 = vmatprep.subr.bf16.mxu0 %v4686_v44  ;;  %vm5322_vm1 = vmmov 0   ;;  %s6592_s12 = sld [smem:[#allocation23_spill]]  ;;  %vm1950_vm2 = vcmask 130048  }
  0xe7   : > { %701 = vadd.xlane.f32.xlu0 %v691_v0  ;;  %705 = vadd.xlane.f32.xlu1 %v693_v1  ;;  %v694_v3 = vld [vmem:[%s5666_s2 + $0x18] sm:$0xff]  ;;  %v695_v4 = vld [vmem:[%s5666_s2 + $0x20] sm:$0xff]  ;;  %v696_v5 = vld [vmem:[%s5666_s2 + $0x28] sm:$0xff]  ;;  %s6594_s28 = sld [smem:[#allocation26_spill]]  ;;  %s6595_s23 = sld [smem:[#allocation27_spill]] }
  0xe8   : > { %v697_v6 = vld [vmem:[%s5666_s2 + $0x30] sm:$0xff]  ;;  %v698_v7 = vld [vmem:[%s5666_s2 + $0x38] sm:$0xff]  ;;  %v4704_v57 = vld [vmem:[%s6590_s0] sm:$0xff]   ;;  %s6596_s26 = sld [smem:[#allocation28_spill]] }
  0xe9   : > { %923 = vmatpush1.bf16.msra.mxu0 %v4688_v45  ;;  %v4703_v55 = vld [vmem:[%s6546_s4 + $0x70] ss:$8 sps:$4 sm:$0xff]   ;;  %4362 = vmatprep.mubr.msk.bf16.mxu1 %vm1027_vm0, %v4704_v57 }
  0xea   : > { %924 = vmatprep.subr.bf16.mxu0 %v4689_v46 }
  0xeb   : > { %703 = vadd.xlane.f32.xlu0 %v692_v2  ;;  %707 = vadd.xlane.f32.xlu1 %v694_v3 }
  0xed   : > { %925 = vmatpush1.bf16.msra.mxu0 %v4691_v47 }
  0xee   : > { %926 = vmatprep.subr.bf16.mxu0 %v4692_v48  ;;  %s6522_s24 = scalar_lea.vmem %s6596_s26, %s3996_s21 }
  0xef   : > { %709 = vadd.xlane.f32.xlu0 %v695_v4  ;;  %711 = vadd.xlane.f32.xlu1 %v696_v5 }
  0xf1   : > { %927 = vmatpush1.bf16.msra.mxu0 %v4694_v49 }
  0xf2   : > { %928 = vmatprep.subr.bf16.mxu0 %v4695_v50 }
  0xf3   : > { %713 = vadd.xlane.f32.xlu0 %v697_v6  ;;  %715 = vadd.xlane.f32.xlu1 %v698_v7 }
  0xf5   : > { %929 = vmatpush1.bf16.msra.mxu0 %v4697_v51 }
  0xf6   : > { %930 = vmatprep.subr.bf16.mxu0 %v4698_v52 }
  0xf9   : > { %931 = vmatpush1.bf16.msra.mxu0 %v4700_v53 }
  0xfa   : > { %932 = vmatprep.subr.bf16.mxu0 %v4701_v54 }
  0xfd   : > { %933 = vmatpush1.bf16.msra.mxu0 %v4703_v55 }
 0x174   : > { %v702_v11 = vpop.xlane.xlu0 %701  ;;  %v706_v12 = vpop.xlane.xlu1 %705 }
 0x175   : > { %v718_v13 = vmul.f32 0.0078125, %v702_v11  ;;  %v720_v14 = vmul.f32 0.0078125, %v706_v12 }
 0x177   : > { %v5685_v15 = vsub.f32 %v691_v0, %v718_v13  ;;  %v5687_v16 = vsub.f32 %v693_v1, %v720_v14 }
 0x178   : > { %v704_v17 = vpop.xlane.xlu0 %703  ;;  %v708_v18 = vpop.xlane.xlu1 %707 }
 0x179   : > { %v719_v19 = vmul.f32 0.0078125, %v704_v17  ;;  %v734_v20 = vmul.f32 %v5685_v15, %v5685_v15  ;;  %v721_v21 = vmul.f32 0.0078125, %v708_v18  ;;  %v736_v24 = vmul.f32 %v5687_v16, %v5687_v16 }
 0x17b   : > { %v5691_v22 = vsub.f32 %v692_v2, %v719_v19  ;;  %742 = vadd.xlane.f32.xlu0 %v734_v20  ;;  %v5693_v23 = vsub.f32 %v694_v3, %v721_v21  ;;  %v3999_v21 = vld [vmem:[%s6591_s25] ss:$0 sm:$0xff]  ;;  %s6593_s25 = sld [smem:[#allocation24_spill]] }
 0x17c   : > { %v710_v25 = vpop.xlane.xlu0 %709  ;;  %v712_v26 = vpop.xlane.xlu1 %711 }
 0x17d   : > { %v722_v27 = vmul.f32 0.0078125, %v710_v25  ;;  %v735_v28 = vmul.f32 %v5691_v22, %v5691_v22  ;;  %v723_v29 = vmul.f32 0.0078125, %v712_v26  ;;  %v737_v32 = vmul.f32 %v5693_v23, %v5693_v23 }
 0x17f   : > { %v5699_v30 = vsub.f32 %v695_v4, %v722_v27  ;;  %746 = vadd.xlane.f32.xlu0 %v736_v24  ;;  %744 = vadd.xlane.f32.xlu1 %v735_v28  ;;  %v5701_v31 = vsub.f32 %v696_v5, %v723_v29  ;;  %v4000_v29 = vld [vmem:[%s6545_s3] ss:$0 sm:$0xff] }
 0x180   : > { %v714_v33 = vpop.xlane.xlu0 %713  ;;  %v716_v34 = vpop.xlane.xlu1 %715 }
 0x181   : > { %v724_v35 = vmul.f32 0.0078125, %v714_v33  ;;  %v738_v36 = vmul.f32 %v5699_v30, %v5699_v30  ;;  %v725_v37 = vmul.f32 0.0078125, %v716_v34  ;;  %v739_v40 = vmul.f32 %v5701_v31, %v5701_v31 }
 0x183   : > { %v5707_v38 = vsub.f32 %v697_v6, %v724_v35  ;;  %748 = vadd.xlane.f32.xlu1 %v737_v32  ;;  %750 = vadd.xlane.f32.xlu0 %v738_v36  ;;  %v5709_v39 = vsub.f32 %v698_v7, %v725_v37 }
 0x185   : > { %v740_v41 = vmul.f32 %v5707_v38, %v5707_v38  ;;  %v741_v42 = vmul.f32 %v5709_v39, %v5709_v39 }
 0x187   : > { %752 = vadd.xlane.f32.xlu1 %v739_v40  ;;  %754 = vadd.xlane.f32.xlu0 %v740_v41 }
 0x18b   : > { %756 = vadd.xlane.f32.xlu1 %v741_v42 }
 0x208   : > { %v743_v58 = vpop.xlane.xlu0 %742 }
 0x209   : > { %v758_v59 = vmul.f32 0.0078125, %v743_v58  ;;  %v4705_v58 = vld [vmem:[%s6590_s0 + $0x8] sm:$0xff]  }
 0x20b   : > { %v766_v60 = vadd.f32 1e-05, %v758_v59  ;;  %v5321_v59 = vmov 0.0  }
 0x20c   : > { %v745_v61 = vpop.xlane.xlu1 %744  ;;  %v747_v62 = vpop.xlane.xlu0 %746 }
 0x20d   : > { %4884 = vrsqrt.f32 %v766_v60  ;;  %v759_v63 = vmul.f32 0.0078125, %v745_v61  ;;  %v760_v0 = vmul.f32 0.0078125, %v747_v62  ;;  %v4708_v60 = vld [vmem:[#allocation2] sm:$0xff]   ;;  %v4709_v61 = vld [vmem:[#allocation2 + $0x8] sm:$0xff]   ;;  %v4707_v62 = vld [vmem:[%s6590_s0 + $0x18] sm:$0xff]  }
 0x20f   : > { %v767_v1 = vadd.f32 1e-05, %v759_v63  ;;  %v768_v2 = vadd.f32 1e-05, %v760_v0  ;;  %v4710_v63 = vld [vmem:[#allocation2 + $0x10] sm:$0xff]   ;;  %v4711_v0 = vld [vmem:[#allocation2 + $0x18] sm:$0xff]  }
 0x210   : > { %v749_v3 = vpop.xlane.xlu1 %748  ;;  %v751_v4 = vpop.xlane.xlu0 %750 }
 0x211   : > { %4886 = vrsqrt.f32 %v767_v1  ;;  %v761_v5 = vmul.f32 0.0078125, %v749_v3  ;;  %v762_v6 = vmul.f32 0.0078125, %v751_v4  ;;  %v4712_v1 = vld [vmem:[#allocation2 + $0x20] sm:$0xff]   ;;  %v4714_v3 = vld [vmem:[#allocation2 + $0x30] sm:$0xff]   ;;  %v4715_v4 = vld [vmem:[#allocation2 + $0x38] sm:$0xff]  }
 0x212   : > { %4888 = vrsqrt.f32 %v768_v2  ;;  %v4713_v2 = vld [vmem:[#allocation2 + $0x28] sm:$0xff]  }
 0x213   : > { %v769_v7 = vadd.f32 1e-05, %v761_v5  ;;  %v770_v8 = vadd.f32 1e-05, %v762_v6 }
 0x214   : > { %v753_v9 = vpop.xlane.xlu1 %752  ;;  %v755_v10 = vpop.xlane.xlu0 %754 }
 0x215   : > { %4890 = vrsqrt.f32 %v769_v7  ;;  %v763_v11 = vmul.f32 0.0078125, %v753_v9  ;;  %v764_v12 = vmul.f32 0.0078125, %v755_v10 }
 0x216   : > { %4892 = vrsqrt.f32 %v770_v8 }
 0x217   : > { %v4885_v13 = vpop.eup %4884  ;;  %v771_v14 = vadd.f32 1e-05, %v763_v11  ;;  %v772_v17 = vadd.f32 1e-05, %v764_v12 }
 0x218   : > { %v757_v18 = vpop.xlane.xlu1 %756  ;;  %v782_v19 = vmul.f32 %v4885_v13, %v5685_v15 }
 0x219   : > { %4894 = vrsqrt.f32 %v771_v14  ;;  %v765_v20 = vmul.f32 0.0078125, %v757_v18 }
 0x21a   : > { %4896 = vrsqrt.f32 %v772_v17  ;;  %v796_v28 = vmul.f32 %v3999_v21, %v782_v19 }
 0x21b   : > { %v4887_v24 = vpop.eup %4886  ;;  %v773_v25 = vadd.f32 1e-05, %v765_v20 }
 0x21c   : > { %v4889_v26 = vpop.eup %4888  ;;  %v783_v27 = vmul.f32 %v4887_v24, %v5691_v22  ;;  %v810_v36 = vadd.f32 %v4000_v29, %v796_v28 }
 0x21d   : > { %4898 = vrsqrt.f32 %v773_v25  ;;  %v784_v15 = vmul.f32 %v4889_v26, %v5687_v16 }
 0x21e   : > { %v797_v32 = vmul.f32 %v3999_v21, %v783_v27 }
 0x21f   : > { %v4891_v33 = vpop.eup %4890  ;;  %v798_v34 = vmul.f32 %v3999_v21, %v784_v15 }
 0x220   : > { %v4893_v35 = vpop.eup %4892  ;;  %v811_v37 = vadd.f32 %v4000_v29, %v797_v32  ;;  %v785_v40 = vmul.f32 %v4891_v33, %v5693_v23  ;;  %v4716_v32 = vld [vmem:[#allocation2 + $0x40] sm:$0xff]  }
 0x221   : > { %v786_v41 = vmul.f32 %v4893_v35, %v5699_v30  ;;  %v812_v44 = vadd.f32 %v4000_v29, %v798_v34  ;;  %v4717_v35 = vld [vmem:[#allocation2 + $0x48] sm:$0xff]  }
 0x222   : > { %v818_v42 = vpack.c.bf16 %v811_v37, %v810_v36  ;;  %v799_v22 = vmul.f32 %v3999_v21, %v785_v40 }
 0x223   : > { %v4895_v43 = vpop.eup %4894  ;;  %v800_v47 = vmul.f32 %v3999_v21, %v786_v41 }
 0x224   : > { %v4897_v45 = vpop.eup %4896  ;;  %951 = vmatmul.mubr.bf16.vlgmr.msra.gmra.mrb[0].mxu0 %v818_v42  ;;  %4354 = vmatprep.subr.bf16.mxu1 %v818_v42  ;;  %v813_v46 = vadd.f32 %v4000_v29, %v799_v22  ;;  %v787_v16 = vmul.f32 %v4895_v43, %v5701_v31 }
 0x225   : > { %4355 = vmatpush3.bf16.msra.mxu1 %v818_v42  ;;  %960 = vmatprep.mubr.bf16.mxu0 %v5320_v56  ;;  %v788_v48 = vmul.f32 %v4897_v45, %v5707_v38  ;;  %v814_v30 = vadd.f32 %v4000_v29, %v800_v47  ;;  %v4718_v45 = vld [vmem:[#allocation2 + $0x50] sm:$0xff]  }
 0x226   : > { %v819_v49 = vpack.c.bf16 %v813_v46, %v812_v44  ;;  %v801_v23 = vmul.f32 %v3999_v21, %v787_v16 }
 0x227   : > { %v4899_v50 = vpop.eup %4898  ;;  %v802_v53 = vmul.f32 %v3999_v21, %v788_v48 }
 0x228   : > { %4356 = vmatprep.subr.bf16.mxu1 %v819_v49  ;;  %v815_v51 = vadd.f32 %v4000_v29, %v801_v23  ;;  %v789_v52 = vmul.f32 %v4899_v50, %v5709_v39  ;;  %v4706_v39 = vld [vmem:[%s6590_s0 + $0x10] sm:$0xff]   ;;  %v4720_v23 = vld [vmem:[#allocation2 + $0x60] sm:$0xff]   ;;  %v4721_v50 = vld [vmem:[#allocation2 + $0x68] sm:$0xff]  }
 0x229   : > { %4357 = vmatpush3.bf16.msra.mxu1 %v819_v49  ;;  %v816_v31 = vadd.f32 %v4000_v29, %v802_v53  ;;  %v4725_v53 = vld [vmem:[#allocation2 + $0x88] sm:$0xff]  }
 0x22a   : > { %v820_v54 = vpack.c.bf16 %v815_v51, %v814_v30  ;;  %v803_v55 = vmul.f32 %v3999_v21, %v789_v52  ;;  %v4722_v30 = vld [vmem:[#allocation2 + $0x70] sm:$0xff]   ;;  %v4723_v51 = vld [vmem:[#allocation2 + $0x78] sm:$0xff]   ;;  %v4724_v52 = vld [vmem:[#allocation2 + $0x80] sm:$0xff]  }
 0x22c   : > { %961 = vmatmul.mubr.bf16.gmra.mrb[4].mxu0 %v819_v49  ;;  %4358 = vmatprep.subr.bf16.mxu1 %v820_v54  ;;  %v817_v57 = vadd.f32 %v4000_v29, %v803_v55  ;;  %v4719_v49 = vld [vmem:[#allocation2 + $0x58] sm:$0xff]  }
 0x22d   : > { %4359 = vmatpush3.bf16.msra.mxu1 %v820_v54  ;;  %970 = vmatprep.mubr.bf16.mxu0 %v5320_v56  ;;  %v4727_v55 = vld [vmem:[#allocation2 + $0x98] sm:$0xff]  }
 0x22e   : > { %v821_v38 = vpack.c.bf16 %v817_v57, %v816_v31  ;;  %v4728_v31 = vld [vmem:[#allocation2 + $0xa0] sm:$0xff]   ;;  %v4729_v57 = vld [vmem:[#allocation2 + $0xa8] sm:$0xff]  }
 0x230   : > { %4360 = vmatprep.subr.bf16.mxu1 %v821_v38 }
 0x231   : > { %4361 = vmatpush3.bf16.msra.mxu1 %v821_v38 }
 0x232   : > { %4370 = vmatprep.subr.bf16.mxu1 %v5321_v59 }
 0x234   : > { %971 = vmatmul.mubr.bf16.gmra.mrb[8].mxu0 %v820_v54  ;;  %4363 = vmatmul.mubr.msk.bf16.vlgmr.msra.gmra.mrb[0].mxu1 %vm1027_vm0, %v4705_v58  ;;  %v4726_v54 = vld [vmem:[#allocation2 + $0x90] sm:$0xff]   ;;  %v4731_v58 = vld [vmem:[#allocation2 + $0xb8] sm:$0xff]  }
 0x235   : > { %980 = vmatprep.mubr.bf16.mxu0 %v5320_v56  ;;  %4366 = vmatprep.mubr.msk.bf16.mxu1 %vm1027_vm0, %v4706_v39  ;;  %v4732_v39 = vld [vmem:[#allocation2 + $0xc0] sm:$0xff]  }
 0x236   : > { %4371 = vmatpush3.bf16.msra.mxu1 %v4708_v60  ;;  %v4733_v60 = vld [vmem:[#allocation2 + $0xc8] sm:$0xff]  }
 0x237   : > { %4372 = vmatprep.subr.bf16.mxu1 %v5321_v59 }
 0x23a   : > { %4373 = vmatpush3.bf16.msra.mxu1 %v4709_v61  ;;  %v4734_v61 = vld [vmem:[#allocation2 + $0xd0] sm:$0xff]  }
 0x23b   : > { %4374 = vmatprep.subr.bf16.mxu1 %v5321_v59 }
 0x23c   : > { %981 = vmatmul.mubr.bf16.gmra.mrb[12].mxu0 %v821_v38  ;;  %4367 = vmatmul.mubr.msk.bf16.gmra.mrb[4].mxu1 %vm1027_vm0, %v4707_v62  ;;  %v4730_v38 = vld [vmem:[#allocation2 + $0xb0] sm:$0xff]   ;;  %v4735_v62 = vld [vmem:[#allocation2 + $0xd8] sm:$0xff]  }
 0x23d   : > { %1812 = vmatprep.mubr.bf16.mxu0 %v5320_v56  ;;  %4386 = vmatprep.mubr.msk.bf16.mxu1 %vm5322_vm1, %v5321_v59 }
 0x23e   : > { %4375 = vmatpush3.bf16.msra.mxu1 %v4710_v63  ;;  %v4736_v63 = vld [vmem:[#allocation2 + $0xe0] sm:$0xff]  }
 0x23f   : > { %4376 = vmatprep.subr.bf16.mxu1 %v5321_v59 }
 0x242   : > { %4377 = vmatpush3.bf16.msra.mxu1 %v4711_v0  ;;  %v4737_v0 = vld [vmem:[#allocation2 + $0xe8] sm:$0xff]  }
 0x243   : > { %4378 = vmatprep.subr.bf16.mxu1 %v5321_v59 }
 0x246   : > { %4379 = vmatpush3.bf16.msra.mxu1 %v4712_v1  ;;  %v4738_v1 = vld [vmem:[#allocation2 + $0xf0] sm:$0xff]  }
 0x247   : > { %4380 = vmatprep.subr.bf16.mxu1 %v5321_v59 }
 0x24a   : > { %4381 = vmatpush3.bf16.msra.mxu1 %v4713_v2  ;;  %v4739_v2 = vld [vmem:[#allocation2 + $0xf8] sm:$0xff]  }
 0x24b   : > { %4382 = vmatprep.subr.bf16.mxu1 %v5321_v59 }
 0x24e   : > { %4383 = vmatpush3.bf16.msra.mxu1 %v4714_v3  ;;  %v4033_v3 = vld [vmem:[%s6548_s6] ss:$0 sm:$0xff] }
 0x24f   : > { %4384 = vmatprep.subr.bf16.mxu1 %v5321_v59 }
 0x252   : > { %4385 = vmatpush3.bf16.msra.mxu1 %v4715_v4 }
 0x253   : > { %4390 = vmatprep.subr.bf16.mxu1 %v5321_v59 }
 0x2f7   : > { %v5802_v5 = vpop.f32.mrb[0].mxu0 }
 0x2f8   : > { %v5804_v6 = vpop.f32.mrb[1].mxu0 }
 0x2f9   : > { %v5806_v7 = vpop.f32.mrb[2].mxu0 }
 0x2fa   : > { %v991_v8 = vpack.c.bf16 %v5806_v7, %v5802_v5  ;;  %v5810_v9 = vpop.f32.mrb[3].mxu0 }
 0x2fb   : > { %v992_v10 = vpack.c.bf16 %v5810_v9, %v5804_v6 }
 0x2ff   : > { %v5814_v11 = vpop.f32.mrb[4].mxu0 }
 0x300   : > { %v5816_v12 = vpop.f32.mrb[5].mxu0 }
 0x301   : > { %v5818_v13 = vpop.f32.mrb[6].mxu0 }
 0x302   : > { %v993_v14 = vpack.c.bf16 %v5818_v13, %v5814_v11  ;;  %v5822_v17 = vpop.f32.mrb[7].mxu0 }
 0x303   : > { %v994_v18 = vpack.c.bf16 %v5822_v17, %v5816_v12 }
 0x307   : > { %v5826_v19 = vpop.f32.mrb[8].mxu0  ;;  %v4364_v20 = vpop.f32.mrb[0].mxu1 }
 0x308   : > { %v5828_v21 = vpop.f32.mrb[9].mxu0  ;;  %v1074_v24 = vpop.f32.mrb[1].mxu1 }
 0x309   : > { %v5830_v25 = vpop.f32.mrb[10].mxu0  ;;  %v4365_v26 = vpop.f32.mrb[2].mxu1 }
 0x30a   : > { %v995_v27 = vpack.c.bf16 %v5830_v25, %v5826_v19  ;;  %v1220_v28 = vpack.c.bf16 %v4365_v26, %v4364_v20  ;;  %v5834_v29 = vpop.f32.mrb[11].mxu0  ;;  %v1077_v15 = vpop.f32.mrb[3].mxu1 }
 0x30b   : > { %v996_v33 = vpack.c.bf16 %v5834_v29, %v5828_v21  ;;  %v1106_v34 = vpack.c.bf16 %v1077_v15, %v1074_v24  ;;  %v4740_v15 = vld [vmem:[#allocation4] ss:$16 sps:$4 sm:$0xff]  }
 0x30d   : > { %4387 = vmatmul.mubr.bf16.vlgmr.msra.gmra.mrb[8].mxu1 %v1106_v34  ;;  %v4745_v34 = vld [vmem:[#allocation4 + $0x24] ss:$16 sps:$4 sm:$0xff]  }
 0x30e   : > { %4391 = vmatpush3.bf16.msra.mxu1 %v4716_v32  ;;  %4406 = vmatprep.mubr.msk.bf16.mxu1 %vm5322_vm1, %v5321_v59  ;;  %v4742_v32 = vld [vmem:[#allocation4 + $0x4] ss:$16 sps:$4 sm:$0xff]  }
 0x30f   : > { %v5840_v36 = vpop.f32.mrb[12].mxu0  ;;  %4392 = vmatprep.subr.bf16.mxu1 %v5321_v59  ;;  %v5843_v37 = vpop.f32.mrb[4].mxu1  ;;  %1780 = vmatprep.subr.bf16.mxu0 %v4742_v32  ;;  %v4769_v32 = vld [vmem:[#allocation4 + $0x2c] ss:$16 sps:$4 sm:$0xff]  }
 0x310   : > { %v5845_v40 = vpop.f32.mrb[13].mxu0  ;;  %v1090_v41 = vpop.f32.mrb[5].mxu1  ;;  %1781 = vmatpush1.bf16.msra.mxu0 %v4740_v15 }
 0x311   : > { %v5847_v42 = vpop.f32.mrb[14].mxu0  ;;  %v5849_v22 = vpop.f32.mrb[6].mxu1  ;;  %1782 = vmatprep.subr.bf16.mxu0 %v4745_v34  ;;  %v4767_v34 = vld [vmem:[#allocation4 + $0x28] ss:$16 sps:$4 sm:$0xff]  }
 0x312   : > { %v997_v43 = vpack.c.bf16 %v5847_v42, %v5840_v36  ;;  %4393 = vmatpush3.bf16.msra.mxu1 %v4717_v35  ;;  %v5853_v44 = vpop.f32.mrb[15].mxu0  ;;  %v1438_v46 = vpack.c.bf16 %v5849_v22, %v5843_v37  ;;  %v1093_v16 = vpop.f32.mrb[7].mxu1  ;;  %v4743_v35 = vld [vmem:[#allocation4 + $0x20] ss:$16 sps:$4 sm:$0xff]  }
 0x313   : > { %v998_v47 = vpack.c.bf16 %v5853_v44, %v5845_v40  ;;  %4394 = vmatprep.subr.bf16.mxu1 %v5321_v59  ;;  %v1329_v48 = vpack.c.bf16 %v1093_v16, %v1090_v41  ;;  %v4748_v16 = vld [vmem:[#allocation4 + $0x44] ss:$16 sps:$4 sm:$0xff]  }
 0x314   : > { %1783 = vmatpush1.bf16.msra.mxu0 %v4743_v35  ;;  %v4772_v35 = vld [vmem:[#allocation4 + $0x4c] ss:$16 sps:$4 sm:$0xff]  }
 0x315   : > { %1784 = vmatprep.subr.bf16.mxu0 %v4748_v16  ;;  %v4782_v16 = vld [vmem:[#allocation4 + $0xc8] ss:$16 sps:$4 sm:$0xff]  }
 0x316   : > { %4395 = vmatpush3.bf16.msra.mxu1 %v4718_v45 }
 0x317   : > { %4396 = vmatprep.subr.bf16.mxu1 %v5321_v59 }
 0x31a   : > { %4397 = vmatpush3.bf16.msra.mxu1 %v4719_v49  ;;  %v4751_v49 = vld [vmem:[#allocation4 + $0x64] ss:$16 sps:$4 sm:$0xff]  }
 0x31b   : > { %4398 = vmatprep.subr.bf16.mxu1 %v5321_v59 }
 0x31e   : > { %4399 = vmatpush3.bf16.msra.mxu1 %v4720_v23  ;;  %v4749_v23 = vld [vmem:[#allocation4 + $0x60] ss:$16 sps:$4 sm:$0xff]  }
 0x31f   : > { %4400 = vmatprep.subr.bf16.mxu1 %v5321_v59 }
 0x322   : > { %4401 = vmatpush3.bf16.msra.mxu1 %v4721_v50  ;;  %v4754_v50 = vld [vmem:[#allocation4 + $0x84] ss:$16 sps:$4 sm:$0xff]  }
 0x323   : > { %4402 = vmatprep.subr.bf16.mxu1 %v5321_v59 }
 0x326   : > { %4403 = vmatpush3.bf16.msra.mxu1 %v4722_v30  ;;  %v4752_v30 = vld [vmem:[#allocation4 + $0x80] ss:$16 sps:$4 sm:$0xff]  }
 0x327   : > { %4404 = vmatprep.subr.bf16.mxu1 %v5321_v59 }
 0x32a   : > { %4405 = vmatpush3.bf16.msra.mxu1 %v4723_v51  ;;  %v4757_v51 = vld [vmem:[#allocation4 + $0xa4] ss:$16 sps:$4 sm:$0xff]  }
 0x32b   : > { %4410 = vmatprep.subr.bf16.mxu1 %v5321_v59 }
 0x32d   : > { %4407 = vmatmul.mubr.bf16.vlgmr.msra.gmra.mrb[8].mxu1 %v1220_v28 }
 0x32e   : > { %4411 = vmatpush3.bf16.msra.mxu1 %v4724_v52  ;;  %4426 = vmatprep.mubr.msk.bf16.mxu1 %vm5322_vm1, %v5321_v59  ;;  %v4755_v52 = vld [vmem:[#allocation4 + $0xa0] ss:$16 sps:$4 sm:$0xff]  }
 0x32f   : > { %4412 = vmatprep.subr.bf16.mxu1 %v5321_v59 }
 0x332   : > { %4413 = vmatpush3.bf16.msra.mxu1 %v4725_v53  ;;  %v4760_v53 = vld [vmem:[#allocation4 + $0xc4] ss:$16 sps:$4 sm:$0xff]  }
 0x333   : > { %4414 = vmatprep.subr.bf16.mxu1 %v5321_v59 }
 0x336   : > { %4415 = vmatpush3.bf16.msra.mxu1 %v4726_v54  ;;  %v4758_v54 = vld [vmem:[#allocation4 + $0xc0] ss:$16 sps:$4 sm:$0xff]  }
 0x337   : > { %4416 = vmatprep.subr.bf16.mxu1 %v5321_v59 }
 0x33a   : > { %4417 = vmatpush3.bf16.msra.mxu1 %v4727_v55  ;;  %v4763_v55 = vld [vmem:[#allocation4 + $0xe4] ss:$16 sps:$4 sm:$0xff]  }
 0x33b   : > { %4418 = vmatprep.subr.bf16.mxu1 %v5321_v59 }
 0x33e   : > { %4419 = vmatpush3.bf16.msra.mxu1 %v4728_v31  ;;  %v4761_v31 = vld [vmem:[#allocation4 + $0xe0] ss:$16 sps:$4 sm:$0xff]  }
 0x33f   : > { %4420 = vmatprep.subr.bf16.mxu1 %v5321_v59 }
 0x342   : > { %4421 = vmatpush3.bf16.msra.mxu1 %v4729_v57  ;;  %v4766_v57 = vld [vmem:[#allocation4 + $0xc] ss:$16 sps:$4 sm:$0xff]  }
 0x343   : > { %4422 = vmatprep.subr.bf16.mxu1 %v5321_v59 }
 0x346   : > { %4423 = vmatpush3.bf16.msra.mxu1 %v4730_v38 }
 0x347   : > { %4424 = vmatprep.subr.bf16.mxu1 %v5321_v59 }
 0x34a   : > { %4425 = vmatpush3.bf16.msra.mxu1 %v4731_v58 }
 0x34b   : > { %4430 = vmatprep.subr.bf16.mxu1 %v5321_v59 }
 0x34d   : > { %4427 = vmatmul.mubr.bf16.vlgmr.msra.gmra.mrb[8].mxu1 %v1329_v48  ;;  %v4746_v48 = vld [vmem:[#allocation4 + $0x40] ss:$16 sps:$4 sm:$0xff]  }
 0x34e   : > { %4431 = vmatpush3.bf16.msra.mxu1 %v4732_v39  ;;  %4446 = vmatprep.mubr.msk.bf16.mxu1 %vm5322_vm1, %v5321_v59 }
 0x34f   : > { %4432 = vmatprep.subr.bf16.mxu1 %v5321_v59  ;;  %1785 = vmatpush1.bf16.msra.mxu0 %v4746_v48  ;;  %v4787_v48 = vld [vmem:[#allocation4 + $0xec] ss:$16 sps:$4 sm:$0xff]  }
 0x350   : > { %1786 = vmatprep.subr.bf16.mxu0 %v4751_v49  ;;  %v4785_v49 = vld [vmem:[#allocation4 + $0xe8] ss:$16 sps:$4 sm:$0xff]  }
 0x352   : > { %4433 = vmatpush3.bf16.msra.mxu1 %v4733_v60 }
 0x353   : > { %4434 = vmatprep.subr.bf16.mxu1 %v5321_v59  ;;  %1787 = vmatpush1.bf16.msra.mxu0 %v4749_v23 }
 0x354   : > { %1788 = vmatprep.subr.bf16.mxu0 %v4754_v50 }
 0x356   : > { %4435 = vmatpush3.bf16.msra.mxu1 %v4734_v61 }
 0x357   : > { %4436 = vmatprep.subr.bf16.mxu1 %v5321_v59  ;;  %1789 = vmatpush1.bf16.msra.mxu0 %v4752_v30 }
 0x358   : > { %1790 = vmatprep.subr.bf16.mxu0 %v4757_v51 }
 0x35a   : > { %4437 = vmatpush3.bf16.msra.mxu1 %v4735_v62 }
 0x35b   : > { %4438 = vmatprep.subr.bf16.mxu1 %v5321_v59  ;;  %1791 = vmatpush1.bf16.msra.mxu0 %v4755_v52 }
 0x35c   : > { %1792 = vmatprep.subr.bf16.mxu0 %v4760_v53 }
 0x35e   : > { %4439 = vmatpush3.bf16.msra.mxu1 %v4736_v63 }
 0x35f   : > { %4440 = vmatprep.subr.bf16.mxu1 %v5321_v59  ;;  %1793 = vmatpush1.bf16.msra.mxu0 %v4758_v54 }
 0x360   : > { %1794 = vmatprep.subr.bf16.mxu0 %v4763_v55 }
 0x362   : > { %4441 = vmatpush3.bf16.msra.mxu1 %v4737_v0  ;;  %v4058_v0 = vld [vmem:[%s6592_s12] ss:$0 sm:$0xff] }
 0x363   : > { %4442 = vmatprep.subr.bf16.mxu1 %v5321_v59  ;;  %1795 = vmatpush1.bf16.msra.mxu0 %v4761_v31 }
 0x364   : > { %1823 = vmatprep.subr.bf16.mxu0 %v4766_v57 }
 0x366   : > { %4443 = vmatpush3.bf16.msra.mxu1 %v4738_v1 }
 0x367   : > { %4444 = vmatprep.subr.bf16.mxu1 %v5321_v59 }
 0x36a   : > { %4445 = vmatpush3.bf16.msra.mxu1 %v4739_v2 }
 0x36d   : > { %4447 = vmatmul.mubr.bf16.vlgmr.msra.gmra.mrb[8].mxu1 %v1438_v46 }
 0x36e   : > { %4496 = vmatprep.mubr.bf16.mxu1 %v992_v10 }
 0x440   : > { %v1538_v4 = vpop.f32.mrb[8].mxu1 }
 0x441   : > { %v4554_v20 = vadd.f32 %v4033_v3, %v1538_v4  ;;  %v4448_v24 = vpop.f32.mrb[9].mxu1 }
 0x442   : > { %v1541_v26 = vpop.f32.mrb[10].mxu1 }
 0x443   : > { %v4555_v28 = vadd.f32 %v4033_v3, %v1541_v26  ;;  %1549 = vadd.xlane.f32.xlu0 %v4554_v20  ;;  %v4449_v59 = vpop.f32.mrb[11].mxu1 }
 0x444   : > { %v4764_v59 = vld [vmem:[#allocation4 + $0x8] ss:$16 sps:$4 sm:$0xff]  }
 0x445   : > { %1551 = vadd.xlane.f32.xlu1 %v4555_v28 }
 0x4d0   : > { %v1550_v6 = vpop.xlane.xlu0 %1549 }
 0x4d1   : > { %v1553_v9 = vmul.f32 0.0078125, %v1550_v6  ;;  %v4770_v6 = vld [vmem:[#allocation4 + $0x48] ss:$16 sps:$4 sm:$0xff]  }
 0x4d2   : > { %v1552_v10 = vpop.xlane.xlu1 %1551 }
 0x4d3   : > { %v1555_v37 = vsub.f32 %v4554_v20, %v1553_v9  ;;  %v1554_v41 = vmul.f32 0.0078125, %v1552_v10  ;;  %v4059_v20 = vld [vmem:[%s6593_s25] ss:$0 sm:$0xff]  ;;  %v4775_v9 = vld [vmem:[#allocation4 + $0x6c] ss:$16 sps:$4 sm:$0xff]  }
 0x4d4   : > { %v4773_v10 = vld [vmem:[#allocation4 + $0x68] ss:$16 sps:$4 sm:$0xff]  }
 0x4d5   : > { %v1556_v22 = vsub.f32 %v4555_v28, %v1554_v41  ;;  %v1557_v45 = vmul.f32 %v1555_v37, %v1555_v37  ;;  %v4776_v41 = vld [vmem:[#allocation4 + $0x88] ss:$16 sps:$4 sm:$0xff]  }
 0x4d7   : > { %1559 = vadd.xlane.f32.xlu0 %v1557_v45  ;;  %v1558_v46 = vmul.f32 %v1556_v22, %v1556_v22  ;;  %v4779_v45 = vld [vmem:[#allocation4 + $0xa8] ss:$16 sps:$4 sm:$0xff]  }
 0x4d9   : > { %1561 = vadd.xlane.f32.xlu1 %v1558_v46  ;;  %v4784_v46 = vld [vmem:[#allocation4 + $0xcc] ss:$16 sps:$4 sm:$0xff]  }
 0x564   : > { %v1560_v38 = vpop.xlane.xlu0 %1559 }
 0x565   : > { %v1563_v58 = vmul.f32 0.0078125, %v1560_v38 }
 0x566   : > { %v1562_v39 = vpop.xlane.xlu1 %1561 }
 0x567   : > { %v1565_v60 = vadd.f32 1e-05, %v1563_v58  ;;  %v1564_v61 = vmul.f32 0.0078125, %v1562_v39 }
 0x569   : > { %4900 = vrsqrt.f32 %v1565_v60  ;;  %v1566_v62 = vadd.f32 1e-05, %v1564_v61 }
 0x56b   : > { %4902 = vrsqrt.f32 %v1566_v62 }
 0x573   : > { %v4901_v63 = vpop.eup %4900 }
 0x574   : > { %v1569_v1 = vmul.f32 %v4901_v63, %v1555_v37  ;;  %v4778_v37 = vld [vmem:[#allocation4 + $0x8c] ss:$16 sps:$4 sm:$0xff]  }
 0x575   : > { %v4903_v2 = vpop.eup %4902 }
 0x576   : > { %v1577_v3 = vmul.f32 %v4058_v0, %v1569_v1  ;;  %v1570_v4 = vmul.f32 %v4903_v2, %v1556_v22  ;;  %v4781_v22 = vld [vmem:[#allocation4 + $0xac] ss:$16 sps:$4 sm:$0xff]  }
 0x578   : > { %v1578_v24 = vmul.f32 %v4058_v0, %v1570_v4  ;;  %v1585_v26 = vadd.f32 %v4059_v20, %v1577_v3 }
 0x57a   : > { %v1586_v28 = vadd.f32 %v4059_v20, %v1578_v24 }
 0x57c   : > { %v1587_v15 = vpack.c.bf16 %v1586_v28, %v1585_v26 }
 0x57e   : > { %1813 = vmatmul.mubr.bf16.vlgmr.msra.gmra.mrb[16].mxu0 %v1587_v15 }
 0x57f   : > { %1824 = vmatpush1.bf16.msra.mxu0 %v4764_v59  ;;  %1855 = vmatprep.mubr.bf16.mxu0 %v5320_v56 }
 0x580   : > { %1825 = vmatprep.subr.bf16.mxu0 %v4769_v32 }
 0x583   : > { %1826 = vmatpush1.bf16.msra.mxu0 %v4767_v34 }
 0x584   : > { %1827 = vmatprep.subr.bf16.mxu0 %v4772_v35 }
 0x587   : > { %1828 = vmatpush1.bf16.msra.mxu0 %v4770_v6 }
 0x588   : > { %1829 = vmatprep.subr.bf16.mxu0 %v4775_v9 }
 0x58b   : > { %1830 = vmatpush1.bf16.msra.mxu0 %v4773_v10 }
 0x58c   : > { %1831 = vmatprep.subr.bf16.mxu0 %v4778_v37 }
 0x58f   : > { %1832 = vmatpush1.bf16.msra.mxu0 %v4776_v41 }
 0x590   : > { %1833 = vmatprep.subr.bf16.mxu0 %v4781_v22 }
 0x593   : > { %1834 = vmatpush1.bf16.msra.mxu0 %v4779_v45 }
 0x594   : > { %1835 = vmatprep.subr.bf16.mxu0 %v4784_v46 }
 0x597   : > { %1836 = vmatpush1.bf16.msra.mxu0 %v4782_v16 }
 0x598   : > { %1837 = vmatprep.subr.bf16.mxu0 %v4787_v48 }
 0x59b   : > { %1838 = vmatpush1.bf16.msra.mxu0 %v4785_v49 }
 0x59e   : > { %1856 = vmatmul.mubr.bf16.vlgmr.msra.gmra.mrb[20].mxu0 %v1587_v15 }
 0x59f   : > { %4452 = vmatprep.mubr.bf16.mxu0 %v991_v8 }
 0x651   : > { %v1814_v23 = vpop.f32.mrb[16].mxu0 }
 0x652   : > { %v1816_v50 = vpop.f32.mrb[17].mxu0 }
 0x653   : > { %v1818_v30 = vpop.f32.mrb[18].mxu0 }
 0x654   : > { %v1866_v51 = vpack.c.bf16 %v1818_v30, %v1814_v23  ;;  %v1820_v52 = vpop.f32.mrb[19].mxu0 }
 0x655   : > { %v1867_v53 = vpack.c.bf16 %v1820_v52, %v1816_v50 }
 0x656   : > { %4450 = vmatprep.subr.bf16.mxu0 %v1866_v51 }
 0x657   : > { %4451 = vmatpush3.bf16.xpose.msra.mxu0 %v1866_v51  ;;  %4494 = vmatprep.subr.bf16.mxu1 %v1867_v53 }
 0x658   : > { %4495 = vmatpush3.bf16.xpose.msra.mxu1 %v1867_v53 }
 0x65e   : > { %4453 = vmatmul.mubr.bf16.vlgmr.msra.gmra.mrb[24].mxu0 %v993_v14 }
 0x65f   : > { %4456 = vmatprep.mubr.bf16.mxu0 %v995_v27  ;;  %4497 = vmatmul.mubr.bf16.vlgmr.msra.gmra.mrb[12].mxu1 %v994_v18 }
 0x660   : > { %4500 = vmatprep.mubr.bf16.mxu1 %v996_v33 }
 0x666   : > { %4457 = vmatmul.mubr.bf16.gmra.mrb[28].mxu0 %v997_v43 }
 0x667   : > { %4501 = vmatmul.mubr.bf16.gmra.mrb[16].mxu1 %v998_v47 }
 0x668   : > { %3004 = vmatprep.mubr.bf16.mxu1 %v5320_v56 }
 0x671   : > { %v1857_v5 = vpop.f32.mrb[20].mxu0 }
 0x672   : > { %v1859_v7 = vpop.f32.mrb[21].mxu0 }
 0x673   : > { %v1861_v8 = vpop.f32.mrb[22].mxu0 }
 0x674   : > { %v1868_v11 = vpack.c.bf16 %v1861_v8, %v1857_v5  ;;  %v1863_v12 = vpop.f32.mrb[23].mxu0 }
 0x675   : > { %v5923_v13 = vpack.c.bf16 %v1863_v12, %v1859_v7 }
 0x676   : > { %4460 = vmatprep.subr.bf16.mxu0 %v1868_v11 }
 0x677   : > { %4461 = vmatpush3.bf16.msra.mxu0 %v1868_v11 }
 0x731   : > { %v4454_v14 = vpop.f32.mrb[24].mxu0 }
 0x732   : > { %v1919_v17 = vpop.f32.mrb[25].mxu0  ;;  %v5925_v18 = vpop.f32.mrb[12].mxu1  ;;  %v1957_v40 = vsel %vm1950_vm2, %v4454_v14, -inf }
 0x733   : > { %v4455_v19 = vpop.f32.mrb[26].mxu0  ;;  %v5927_v21 = vpop.f32.mrb[13].mxu1  ;;  %v1951_v25 = vsel %vm1950_vm2, %v1919_v17, -inf }
 0x734   : > { %v5930_v27 = vpop.f32.mrb[14].mxu1  ;;  %1952 = vmax.xlane.f32.xlu0 %v1951_v25  ;;  %v1922_v29 = vpop.f32.mrb[27].mxu0  ;;  %v1960_v43 = vsel %vm1950_vm2, %v4455_v19, -inf }
 0x735   : > { %v5932_v33 = vpop.f32.mrb[15].mxu1  ;;  %v1954_v36 = vsel %vm1950_vm2, %v1922_v29, -inf }
 0x736   : > { %1955 = vmax.xlane.f32.xlu1 %v1954_v36  ;;  %v2329_v25 = vsel %vm1950_vm2, %v5932_v33, -inf  ;;  %v2335_v36 = vsel %vm1950_vm2, %v5930_v27, -inf }
 0x738   : > { %1958 = vmax.xlane.f32.xlu0 %v1957_v40 }
 0x739   : > { %v4458_v42 = vpop.f32.mrb[28].mxu0 }
 0x73a   : > { %1961 = vmax.xlane.f32.xlu1 %v1960_v43  ;;  %v1935_v44 = vpop.f32.mrb[29].mxu0  ;;  %v5937_v47 = vpop.f32.mrb[16].mxu1  ;;  %v1969_v60 = vsel %vm1950_vm2, %v4458_v42, -inf }
 0x73b   : > { %v4459_v54 = vpop.f32.mrb[30].mxu0  ;;  %v5939_v55 = vpop.f32.mrb[17].mxu1  ;;  %v1963_v31 = vsel %vm1950_vm2, %v1935_v44, -inf  ;;  %v2344_v43 = vsel %vm1950_vm2, %v5937_v47, -inf }
 0x73c   : > { %1964 = vmax.xlane.f32.xlu0 %v1963_v31  ;;  %v1938_v57 = vpop.f32.mrb[31].mxu0  ;;  %v5942_v38 = vpop.f32.mrb[18].mxu1  ;;  %v1972_v61 = vsel %vm1950_vm2, %v4459_v54, -inf  ;;  %v2338_v40 = vsel %vm1950_vm2, %v5939_v55, -inf }
 0x73d   : > { %v5944_v58 = vpop.f32.mrb[19].mxu1  ;;  %v1966_v39 = vsel %vm1950_vm2, %v1938_v57, -inf }
 0x73e   : > { %1967 = vmax.xlane.f32.xlu1 %v1966_v39 }
 0x740   : > { %1970 = vmax.xlane.f32.xlu0 %v1969_v60 }
 0x742   : > { %1973 = vmax.xlane.f32.xlu1 %v1972_v61 }
 0x7c1   : > { %v1953_v62 = vpop.xlane.xlu0 %1952 }
 0x7c2   : > { %v1975_v63 = vsub.f32 %v1919_v17, %v1953_v62 }
 0x7c3   : > { %v1956_v0 = vpop.xlane.xlu1 %1955 }
 0x7c4   : > { %v1983_v1 = vmul.f32 1.442695, %v1975_v63  ;;  %v1976_v2 = vsub.f32 %v1922_v29, %v1956_v0  ;;  %v2332_v29 = vsel %vm1950_vm2, %v5925_v18, -inf }
 0x7c5   : > { %v1959_v3 = vpop.xlane.xlu0 %1958 }
 0x7c6   : > { %4904 = vpow2.f32 %v1983_v1  ;;  %v1985_v4 = vmul.f32 1.442695, %v1976_v2  ;;  %v1977_v20 = vsub.f32 %v4454_v14, %v1959_v3 }
 0x7c7   : > { %v1962_v24 = vpop.xlane.xlu1 %1961 }
 0x7c8   : > { %4906 = vpow2.f32 %v1985_v4  ;;  %v1987_v26 = vmul.f32 1.442695, %v1977_v20  ;;  %v1978_v28 = vsub.f32 %v4455_v19, %v1962_v24  ;;  %v2326_v19 = vsel %vm1950_vm2, %v5927_v21, -inf }
 0x7c9   : > { %v1965_v59 = vpop.xlane.xlu0 %1964 }
 0x7ca   : > { %4908 = vpow2.f32 %v1987_v26  ;;  %v1989_v15 = vmul.f32 1.442695, %v1978_v28  ;;  %v1979_v32 = vsub.f32 %v1935_v44, %v1965_v59  ;;  %v2347_v44 = vsel %vm1950_vm2, %v5942_v38, -inf }
 0x7cb   : > { %v1968_v34 = vpop.xlane.xlu1 %1967 }
 0x7cc   : > { %4910 = vpow2.f32 %v1989_v15  ;;  %v1991_v35 = vmul.f32 1.442695, %v1979_v32  ;;  %v1980_v6 = vsub.f32 %v1938_v57, %v1968_v34 }
 0x7cd   : > { %v1971_v9 = vpop.xlane.xlu0 %1970 }
 0x7ce   : > { %4912 = vpow2.f32 %v1991_v35  ;;  %v1993_v10 = vmul.f32 1.442695, %v1980_v6  ;;  %v1981_v37 = vsub.f32 %v4458_v42, %v1971_v9  ;;  %v2341_v42 = vsel %vm1950_vm2, %v5944_v58, -inf }
 0x7cf   : > { %v1974_v41 = vpop.xlane.xlu1 %1973 }
 0x7d0   : > { %v5949_v22 = vpop.eup %4904  ;;  %4914 = vpow2.f32 %v1993_v10  ;;  %v1995_v45 = vmul.f32 1.442695, %v1981_v37  ;;  %v1982_v46 = vsub.f32 %v4459_v54, %v1974_v41  ;;  %v4788_v54 = vld [vmem:[#allocation6] sm:$0xff]   ;;  %v4789_v41 = vld [vmem:[#allocation6 + $0x8] sm:$0xff]  }
 0x7d1   : > { %v1999_v16 = vsel %vm1950_vm2, %v5949_v22, 0.0  ;;  %4470 = vmatprep.subr.bf16.mxu0 %v4788_v54 }
 0x7d2   : > { %v4907_v48 = vpop.eup %4906  ;;  %4916 = vpow2.f32 %v1995_v45  ;;  %v1997_v49 = vmul.f32 1.442695, %v1982_v46  ;;  %2000 = vadd.xlane.f32.xlu0 %v1999_v16 }
 0x7d3   : > { %v2002_v23 = vsel %vm1950_vm2, %v4907_v48, 0.0 }
 0x7d4   : > { %v5954_v50 = vpop.eup %4908  ;;  %4918 = vpow2.f32 %v1997_v49  ;;  %2003 = vadd.xlane.f32.xlu1 %v2002_v23 }
 0x7d5   : > { %v2005_v30 = vsel %vm1950_vm2, %v5954_v50, 0.0 }
 0x7d6   : > { %v4911_v51 = vpop.eup %4910  ;;  %2006 = vadd.xlane.f32.xlu0 %v2005_v30 }
 0x7d7   : > { %v2008_v52 = vsel %vm1950_vm2, %v4911_v51, 0.0 }
 0x7d8   : > { %v5959_v53 = vpop.eup %4912  ;;  %2009 = vadd.xlane.f32.xlu1 %v2008_v52 }
 0x7d9   : > { %v2011_v5 = vsel %vm1950_vm2, %v5959_v53, 0.0 }
 0x7da   : > { %v5963_v7 = vpop.eup %4914  ;;  %2012 = vadd.xlane.f32.xlu0 %v2011_v5 }
 0x7db   : > { %v2014_v8 = vsel %vm1950_vm2, %v5963_v7, 0.0 }
 0x7dc   : > { %v5967_v11 = vpop.eup %4916  ;;  %2015 = vadd.xlane.f32.xlu1 %v2014_v8 }
 0x7dd   : > { %v2017_v12 = vsel %vm1950_vm2, %v5967_v11, 0.0 }
 0x7de   : > { %v5971_v14 = vpop.eup %4918  ;;  %2018 = vadd.xlane.f32.xlu0 %v2017_v12 }
 0x7df   : > { %v2020_v17 = vsel %vm1950_vm2, %v5971_v14, 0.0 }
 0x7e0   : > { %2021 = vadd.xlane.f32.xlu1 %v2020_v17 }
 0x7e2   : > { %2327 = vmax.xlane.f32.xlu0 %v2326_v19 }
 0x7e4   : > { %2330 = vmax.xlane.f32.xlu1 %v2329_v25  ;;  %v4791_v25 = vld [vmem:[#allocation6 + $0x18] sm:$0xff]  }
 0x7e6   : > { %2333 = vmax.xlane.f32.xlu0 %v2332_v29 }
 0x7e8   : > { %2336 = vmax.xlane.f32.xlu1 %v2335_v36 }
 0x7ea   : > { %2339 = vmax.xlane.f32.xlu0 %v2338_v40 }
 0x7ec   : > { %2342 = vmax.xlane.f32.xlu1 %v2341_v42  ;;  %v4792_v42 = vld [vmem:[#allocation6 + $0x20] sm:$0xff]  }
 0x7ee   : > { %2345 = vmax.xlane.f32.xlu0 %v2344_v43 }
 0x7f0   : > { %2348 = vmax.xlane.f32.xlu1 %v2347_v44 }
 0x85f   : > { %v2001_v31 = vpop.xlane.xlu0 %2000 }
 0x860   : > { %4920 = vrcp.f32 %v2001_v31  ;;  %v4793_v31 = vld [vmem:[#allocation6 + $0x28] sm:$0xff]  }
 0x861   : > { %v2004_v57 = vpop.xlane.xlu1 %2003 }
 0x862   : > { %4922 = vrcp.f32 %v2004_v57 }
 0x863   : > { %v2007_v39 = vpop.xlane.xlu0 %2006 }
 0x864   : > { %4924 = vrcp.f32 %v2007_v39 }
 0x865   : > { %v2010_v60 = vpop.xlane.xlu1 %2009 }
 0x866   : > { %4926 = vrcp.f32 %v2010_v60 }
 0x867   : > { %v2013_v61 = vpop.xlane.xlu0 %2012 }
 0x868   : > { %4928 = vrcp.f32 %v2013_v61 }
 0x869   : > { %v2016_v62 = vpop.xlane.xlu1 %2015 }
 0x86a   : > { %v4921_v63 = vpop.eup %4920  ;;  %4930 = vrcp.f32 %v2016_v62  ;;  %v4794_v62 = vld [vmem:[#allocation6 + $0x30] sm:$0xff]  }
 0x86b   : > { %v2019_v0 = vpop.xlane.xlu0 %2018  ;;  %v2031_v3 = vmul.f32 %v4921_v63, %v5949_v22 }
 0x86c   : > { %v4923_v1 = vpop.eup %4922  ;;  %4932 = vrcp.f32 %v2019_v0 }
 0x86d   : > { %v2022_v2 = vpop.xlane.xlu1 %2021  ;;  %v2032_v4 = vmul.f32 %v4923_v1, %v4907_v48 }
 0x86e   : > { %v4925_v20 = vpop.eup %4924  ;;  %4934 = vrcp.f32 %v2022_v2 }
 0x86f   : > { %v2328_v24 = vpop.xlane.xlu0 %2327  ;;  %v2039_v26 = vpack.c.bf16 %v2032_v4, %v2031_v3  ;;  %v2033_v15 = vmul.f32 %v4925_v20, %v5954_v50  ;;  %v4795_v3 = vld [vmem:[#allocation6 + $0x38] sm:$0xff]  }
 0x870   : > { %v4927_v28 = vpop.eup %4926  ;;  %v2350_v59 = vsub.f32 %v5927_v21, %v2328_v24 }
 0x871   : > { %v2034_v32 = vmul.f32 %v4927_v28, %v4911_v51  ;;  %4462 = vmatprep.mubr.msk.bf16.mxu0 %vm1950_vm2, %v2039_v26  ;;  %v2331_v34 = vpop.xlane.xlu1 %2330  ;;  %v4790_v51 = vld [vmem:[#allocation6 + $0x10] sm:$0xff]  }
 0x872   : > { %v4929_v35 = vpop.eup %4928  ;;  %v2358_v6 = vmul.f32 1.442695, %v2350_v59  ;;  %v2351_v9 = vsub.f32 %v5932_v33, %v2331_v34 }
 0x873   : > { %v2040_v10 = vpack.c.bf16 %v2034_v32, %v2033_v15  ;;  %v2334_v37 = vpop.xlane.xlu0 %2333  ;;  %v2035_v16 = vmul.f32 %v4929_v35, %v5959_v53 }
 0x874   : > { %v4931_v22 = vpop.eup %4930  ;;  %4936 = vpow2.f32 %v2358_v6  ;;  %v2360_v45 = vmul.f32 1.442695, %v2351_v9  ;;  %v2352_v46 = vsub.f32 %v5925_v18, %v2334_v37 }
 0x875   : > { %4463 = vmatmul.mubr.msk.bf16.vlgmr.msra.gmra.mrb[32].mxu0 %vm1950_vm2, %v2040_v10  ;;  %v2337_v21 = vpop.xlane.xlu1 %2336  ;;  %v2036_v48 = vmul.f32 %v4931_v22, %v5963_v7 }
 0x876   : > { %v4933_v49 = vpop.eup %4932  ;;  %4938 = vpow2.f32 %v2360_v45  ;;  %v2362_v23 = vmul.f32 1.442695, %v2352_v46  ;;  %4471 = vmatpush3.bf16.msra.mxu0 %v4788_v54  ;;  %v2353_v33 = vsub.f32 %v5930_v27, %v2337_v21 }
 0x877   : > { %v2340_v50 = vpop.xlane.xlu0 %2339  ;;  %4472 = vmatprep.subr.bf16.mxu0 %v4789_v41  ;;  %v2041_v30 = vpack.c.bf16 %v2036_v48, %v2035_v16  ;;  %v2037_v7 = vmul.f32 %v4933_v49, %v5967_v11 }
 0x878   : > { %v4935_v52 = vpop.eup %4934  ;;  %4940 = vpow2.f32 %v2362_v23  ;;  %v2364_v18 = vmul.f32 1.442695, %v2353_v33  ;;  %v2354_v5 = vsub.f32 %v5939_v55, %v2340_v50 }
 0x879   : > { %4466 = vmatprep.mubr.msk.bf16.mxu0 %vm1950_vm2, %v2041_v30  ;;  %v2343_v53 = vpop.xlane.xlu1 %2342  ;;  %v2038_v8 = vmul.f32 %v4935_v52, %v5971_v14 }
 0x87a   : > { %4942 = vpow2.f32 %v2364_v18  ;;  %v2366_v12 = vmul.f32 1.442695, %v2354_v5  ;;  %4473 = vmatpush3.bf16.msra.mxu0 %v4789_v41  ;;  %v2355_v27 = vsub.f32 %v5944_v58, %v2343_v53  ;;  %v4796_v41 = vld [vmem:[#allocation6 + $0x40] sm:$0xff]  }
 0x87b   : > { %v2346_v17 = vpop.xlane.xlu0 %2345  ;;  %4474 = vmatprep.subr.bf16.mxu0 %v4790_v51  ;;  %v2042_v19 = vpack.c.bf16 %v2038_v8, %v2037_v7 }
 0x87c   : > { %4944 = vpow2.f32 %v2366_v12  ;;  %v2368_v29 = vmul.f32 1.442695, %v2355_v27  ;;  %v2356_v55 = vsub.f32 %v5937_v47, %v2346_v17 }
 0x87d   : > { %4467 = vmatmul.mubr.msk.bf16.gmra.mrb[36].mxu0 %vm1950_vm2, %v2042_v19  ;;  %v2349_v36 = vpop.xlane.xlu1 %2348  ;;  %v4797_v19 = vld [vmem:[#allocation6 + $0x48] sm:$0xff]  }
 0x87e   : > { %v6008_v40 = vpop.eup %4936  ;;  %4946 = vpow2.f32 %v2368_v29  ;;  %v2370_v11 = vmul.f32 1.442695, %v2356_v55  ;;  %4475 = vmatpush3.bf16.msra.mxu0 %v4790_v51  ;;  %v2357_v14 = vsub.f32 %v5942_v38, %v2349_v36 }
 0x87f   : > { %4476 = vmatprep.subr.bf16.mxu0 %v4791_v25  ;;  %v2374_v58 = vsel %vm1950_vm2, %v6008_v40, 0.0 }
 0x880   : > { %v6013_v43 = vpop.eup %4938  ;;  %4948 = vpow2.f32 %v2370_v11  ;;  %v2372_v44 = vmul.f32 1.442695, %v2357_v14  ;;  %2375 = vadd.xlane.f32.xlu0 %v2374_v58  ;;  %v4799_v58 = vld [vmem:[#allocation6 + $0x58] sm:$0xff]  }
 0x881   : > { %v2377_v47 = vsel %vm1950_vm2, %v6013_v43, 0.0 }
 0x882   : > { %v6017_v54 = vpop.eup %4940  ;;  %4950 = vpow2.f32 %v2372_v44  ;;  %4477 = vmatpush3.bf16.msra.mxu0 %v4791_v25  ;;  %2378 = vadd.xlane.f32.xlu1 %v2377_v47  ;;  %v4802_v44 = vld [vmem:[#allocation6 + $0x70] sm:$0xff]   ;;  %v4803_v47 = vld [vmem:[#allocation6 + $0x78] sm:$0xff]  }
 0x883   : > { %4478 = vmatprep.subr.bf16.mxu0 %v4792_v42  ;;  %v2380_v38 = vsel %vm1950_vm2, %v6017_v54, 0.0 }
 0x884   : > { %v6021_v57 = vpop.eup %4942  ;;  %2381 = vadd.xlane.f32.xlu0 %v2380_v38 }
 0x885   : > { %v2383_v39 = vsel %vm1950_vm2, %v6021_v57, 0.0 }
 0x886   : > { %v6025_v60 = vpop.eup %4944  ;;  %4479 = vmatpush3.bf16.msra.mxu0 %v4792_v42  ;;  %2384 = vadd.xlane.f32.xlu1 %v2383_v39  ;;  %v4800_v42 = vld [vmem:[#allocation6 + $0x60] sm:$0xff]  }
 0x887   : > { %4480 = vmatprep.subr.bf16.mxu0 %v4793_v31  ;;  %v2386_v61 = vsel %vm1950_vm2, %v6025_v60, 0.0 }
 0x888   : > { %v6029_v63 = vpop.eup %4946  ;;  %2387 = vadd.xlane.f32.xlu0 %v2386_v61 }
 0x889   : > { %v2389_v0 = vsel %vm1950_vm2, %v6029_v63, 0.0 }
 0x88a   : > { %v6033_v1 = vpop.eup %4948  ;;  %4481 = vmatpush3.bf16.msra.mxu0 %v4793_v31  ;;  %2390 = vadd.xlane.f32.xlu1 %v2389_v0 }
 0x88b   : > { %4482 = vmatprep.subr.bf16.mxu0 %v4794_v62  ;;  %v2392_v2 = vsel %vm1950_vm2, %v6033_v1, 0.0 }
 0x88c   : > { %v6037_v4 = vpop.eup %4950  ;;  %2393 = vadd.xlane.f32.xlu0 %v2392_v2 }
 0x88d   : > { %v2395_v20 = vsel %vm1950_vm2, %v6037_v4, 0.0 }
 0x88e   : > { %4483 = vmatpush3.bf16.msra.mxu0 %v4794_v62  ;;  %2396 = vadd.xlane.f32.xlu1 %v2395_v20 }
 0x88f   : > { %4484 = vmatprep.subr.bf16.mxu0 %v4795_v3 }
 0x892   : > { %4485 = vmatpush3.bf16.msra.mxu0 %v4795_v3  ;;  %v4092_v3 = vld [vmem:[%s6594_s28] ss:$0 sm:$0xff] }
 0x893   : > { %4504 = vmatprep.subr.bf16.mxu0 %v5923_v13 }
 0x90d   : > { %v2376_v26 = vpop.xlane.xlu0 %2375 }
 0x90f   : > { %v2379_v24 = vpop.xlane.xlu1 %2378 }
 0x910   : > { %4952 = vrcp.f32 %v2379_v24 }
 0x911   : > { %v2382_v59 = vpop.xlane.xlu0 %2381  ;;  %4954 = vrcp.f32 %v2376_v26  ;;  %v5049_v26 = vld [vmem:[%s5666_s2 + $0x8] sm:$0xff] }
 0x913   : > { %v2385_v28 = vpop.xlane.xlu1 %2384 }
 0x914   : > { %4956 = vrcp.f32 %v2385_v28  ;;  %v1878_v28 = vadd.f32 %v5049_v26, %v4092_v3 }
 0x915   : > { %v2388_v10 = vpop.xlane.xlu0 %2387 }
 0x917   : > { %v2391_v34 = vpop.xlane.xlu1 %2390 }
 0x918   : > { %4958 = vrcp.f32 %v2391_v34 }
 0x919   : > { %4960 = vrcp.f32 %v2382_v59  ;;  %v2394_v23 = vpop.xlane.xlu0 %2393 }
 0x91a   : > { %v4953_v22 = vpop.eup %4952  ;;  %4962 = vrcp.f32 %v2388_v10 }
 0x91b   : > { %v4955_v46 = vpop.eup %4954  ;;  %v2397_v21 = vpop.xlane.xlu1 %2396  ;;  %v2407_v49 = vmul.f32 %v4953_v22, %v6013_v43  ;;  %v4801_v43 = vld [vmem:[#allocation6 + $0x68] sm:$0xff]   ;;  %v5052_v22 = vld [vmem:[%s5666_s2 + $0x20] sm:$0xff] }
 0x91c   : > { %4964 = vrcp.f32 %v2397_v21  ;;  %v2406_v51 = vmul.f32 %v4955_v46, %v6008_v40  ;;  %v4798_v40 = vld [vmem:[#allocation6 + $0x50] sm:$0xff]  }
 0x91d   : > { %4966 = vrcp.f32 %v2394_v23  ;;  %v5054_v23 = vld [vmem:[%s5666_s2 + $0x30] sm:$0xff] }
 0x91e   : > { %v4957_v52 = vpop.eup %4956  ;;  %v2414_v18 = vpack.c.bf16 %v2407_v49, %v2406_v51 }
 0x91f   : > { %v2409_v7 = vmul.f32 %v4957_v52, %v6021_v57  ;;  %v5055_v52 = vld [vmem:[%s5666_s2 + $0x38] sm:$0xff] }
 0x948   : > { %v4464_v15 = vpop.f32.mrb[32].mxu0 }
 0x949   : > { %v2089_v32 = vpop.f32.mrb[33].mxu0 }
 0x94a   : > { %v4465_v35 = vpop.f32.mrb[34].mxu0 }
 0x94b   : > { %v2121_v6 = vpack.c.bf16 %v4465_v35, %v4464_v15  ;;  %v2092_v9 = vpop.f32.mrb[35].mxu0  ;;  %v5050_v15 = vld [vmem:[%s5666_s2 + $0x10] sm:$0xff] }
 0x94c   : > { %v2120_v37 = vpack.c.bf16 %v2092_v9, %v2089_v32  ;;  %v1879_v32 = vadd.f32 %v5050_v15, %v4092_v3  ;;  %v5051_v9 = vld [vmem:[%s5666_s2 + $0x18] sm:$0xff]  ;;  %v4810_v15 = vld [vmem:[#allocation9 + $0x40] ss:$16 sps:$4 sm:$0xff]  }
 0x94d   : > { %v1880_v10 = vadd.f32 %v5051_v9, %v4092_v3  ;;  %v4816_v9 = vld [vmem:[#allocation9 + $0x80] ss:$16 sps:$4 sm:$0xff]  }
 0x94e   : > { %4486 = vmatprep.mubr.bf16.mxu0 %v2120_v37 }
 0x94f   : > { %4487 = vmatmul.mubr.bf16.vlgmr.msra.gmra.mrb[40].mxu0 %v2121_v6 }
 0x950   : > { %4505 = vmatpush3.bf16.msra.mxu0 %v5923_v13  ;;  %v4468_v45 = vpop.f32.mrb[36].mxu0  ;;  %v4959_v13 = vpop.eup %4958 }
 0x951   : > { %v2105_v16 = vpop.f32.mrb[37].mxu0  ;;  %4514 = vmatprep.subr.bf16.mxu0 %v4796_v41  ;;  %v4961_v5 = vpop.eup %4960  ;;  %v2411_v8 = vmul.f32 %v4959_v13, %v6029_v63 }
 0x952   : > { %v4469_v48 = vpop.f32.mrb[38].mxu0  ;;  %v4963_v53 = vpop.eup %4962  ;;  %v2408_v12 = vmul.f32 %v4961_v5, %v6017_v54 }
 0x953   : > { %v2123_v33 = vpack.c.bf16 %v4469_v48, %v4468_v45  ;;  %v2108_v50 = vpop.f32.mrb[39].mxu0  ;;  %v2410_v27 = vmul.f32 %v4963_v53, %v6025_v60  ;;  %v4965_v25 = vpop.eup %4964  ;;  %v1881_v45 = vadd.f32 %v5052_v22, %v4092_v3  ;;  %v4819_v22 = vld [vmem:[#allocation9 + $0xa0] ss:$16 sps:$4 sm:$0xff]  }
 0x954   : > { %v2122_v30 = vpack.c.bf16 %v2108_v50, %v2105_v16  ;;  %v2415_v17 = vpack.c.bf16 %v2409_v7, %v2408_v12  ;;  %v4967_v55 = vpop.eup %4966  ;;  %v2413_v36 = vmul.f32 %v4965_v25, %v6037_v4  ;;  %v5048_v4 = vld [vmem:[%s5666_s2] sm:$0xff]  ;;  %v5053_v16 = vld [vmem:[%s5666_s2 + $0x28] sm:$0xff] }
 0x955   : > { %v2416_v29 = vpack.c.bf16 %v2411_v8, %v2410_v27  ;;  %v2412_v11 = vmul.f32 %v4967_v55, %v6033_v1  ;;  %v1877_v20 = vadd.f32 %v5048_v4, %v4092_v3  ;;  %v1882_v48 = vadd.f32 %v5053_v16, %v4092_v3  ;;  %v4804_v7 = vld [vmem:[#allocation9] ss:$16 sps:$4 sm:$0xff]   ;;  %v4806_v8 = vld [vmem:[#allocation9 + $0x4] ss:$16 sps:$4 sm:$0xff]  }
 0x956   : > { %4490 = vmatprep.mubr.bf16.mxu0 %v2122_v30  ;;  %v4809_v12 = vld [vmem:[#allocation9 + $0x24] ss:$16 sps:$4 sm:$0xff]   ;;  %2972 = vmatprep.subr.bf16.mxu1 %v4806_v8  ;;  %v4807_v27 = vld [vmem:[#allocation9 + $0x20] ss:$16 sps:$4 sm:$0xff]  }
 0x957   : > { %4491 = vmatmul.mubr.bf16.gmra.mrb[44].mxu0 %v2123_v33  ;;  %v2417_v14 = vpack.c.bf16 %v2413_v36, %v2412_v11  ;;  %v1883_v33 = vadd.f32 %v5054_v23, %v4092_v3  ;;  %2973 = vmatpush1.bf16.msra.mxu1 %v4804_v7  ;;  %v4825_v16 = vld [vmem:[#allocation9 + $0xe0] ss:$16 sps:$4 sm:$0xff]  }
 0x958   : > { %4506 = vmatprep.mubr.msk.bf16.mxu0 %vm1950_vm2, %v2414_v18  ;;  %v1884_v18 = vadd.f32 %v5055_v52, %v4092_v3  ;;  %2974 = vmatprep.subr.bf16.mxu1 %v4809_v12 }
 0x95b   : > { %2975 = vmatpush1.bf16.msra.mxu1 %v4807_v27 }
 0x95f   : > { %4507 = vmatmul.mubr.msk.bf16.vlgmr.msra.gmra.mrb[48].mxu0 %vm1950_vm2, %v2415_v17 }
 0x960   : > { %4510 = vmatprep.mubr.msk.bf16.mxu0 %vm1950_vm2, %v2416_v29  ;;  %4515 = vmatpush3.bf16.msra.mxu0 %v4796_v41 }
 0x961   : > { %4516 = vmatprep.subr.bf16.mxu0 %v4797_v19 }
 0x964   : > { %4517 = vmatpush3.bf16.msra.mxu0 %v4797_v19 }
 0x965   : > { %4518 = vmatprep.subr.bf16.mxu0 %v4798_v40 }
 0x967   : > { %4511 = vmatmul.mubr.msk.bf16.gmra.mrb[52].mxu0 %vm1950_vm2, %v2417_v14 }
 0x968   : > { %4519 = vmatpush3.bf16.msra.mxu0 %v4798_v40 }
 0x969   : > { %4520 = vmatprep.subr.bf16.mxu0 %v4799_v58 }
 0x96c   : > { %4521 = vmatpush3.bf16.msra.mxu0 %v4799_v58 }
 0x96d   : > { %4522 = vmatprep.subr.bf16.mxu0 %v4800_v42 }
 0x970   : > { %4523 = vmatpush3.bf16.msra.mxu0 %v4800_v42 }
 0x971   : > { %4524 = vmatprep.subr.bf16.mxu0 %v4801_v43 }
 0x974   : > { %4525 = vmatpush3.bf16.msra.mxu0 %v4801_v43 }
 0x975   : > { %4526 = vmatprep.subr.bf16.mxu0 %v4802_v44 }
 0x978   : > { %4527 = vmatpush3.bf16.msra.mxu0 %v4802_v44 }
 0x979   : > { %4528 = vmatprep.subr.bf16.mxu0 %v4803_v47 }
 0x97c   : > { %4529 = vmatpush3.bf16.msra.mxu0 %v4803_v47 }
 0xa32   : > { %v4508_v54 = vpop.f32.mrb[48].mxu0 }
 0xa33   : > { %v2464_v38 = vpop.f32.mrb[49].mxu0 }
 0xa34   : > { %v4509_v31 = vpop.f32.mrb[50].mxu0 }
 0xa35   : > { %v2496_v57 = vpack.c.bf16 %v4509_v31, %v4508_v54  ;;  %v2467_v39 = vpop.f32.mrb[51].mxu0 }
 0xa36   : > { %v2495_v60 = vpack.c.bf16 %v2467_v39, %v2464_v38 }
 0xa38   : > { %4530 = vmatprep.mubr.bf16.mxu0 %v2495_v60 }
 0xa39   : > { %4531 = vmatmul.mubr.bf16.vlgmr.msra.gmra.mrb[40].mxu0 %v2496_v57 }
 0xa3a   : > { %v4512_v61 = vpop.f32.mrb[52].mxu0 }
 0xa3b   : > { %v2480_v62 = vpop.f32.mrb[53].mxu0 }
 0xa3c   : > { %v4513_v63 = vpop.f32.mrb[54].mxu0 }
 0xa3d   : > { %v2498_v0 = vpack.c.bf16 %v4513_v63, %v4512_v61  ;;  %v2483_v1 = vpop.f32.mrb[55].mxu0 }
 0xa3e   : > { %v2497_v2 = vpack.c.bf16 %v2483_v1, %v2480_v62 }
 0xa40   : > { %4534 = vmatprep.mubr.bf16.mxu0 %v2497_v2 }
 0xa41   : > { %4535 = vmatmul.mubr.bf16.gmra.mrb[44].mxu0 %v2498_v0 }
 0xb0c   : > { %v4532_v24 = vpop.f32.mrb[40].mxu0 }
 0xb0d   : > { %v2597_v59 = vpop.f32.mrb[41].mxu0  ;;  %v6067_v41 = vadd.f32 %v4532_v24, %v1879_v32  ;;  %v4815_v32 = vld [vmem:[#allocation9 + $0x64] ss:$16 sps:$4 sm:$0xff]  }
 0xb0e   : > { %v6061_v34 = vadd.f32 %v2597_v59, %v1877_v20  ;;  %v4533_v35 = vpop.f32.mrb[42].mxu0  ;;  %v4812_v59 = vld [vmem:[#allocation9 + $0x44] ss:$16 sps:$4 sm:$0xff]  }
 0xb0f   : > { %v2600_v6 = vpop.f32.mrb[43].mxu0  ;;  %v6071_v46 = vadd.f32 %v4533_v35, %v1880_v10  ;;  %2976 = vmatprep.subr.bf16.mxu1 %v4812_v59  ;;  %v4813_v35 = vld [vmem:[#allocation9 + $0x60] ss:$16 sps:$4 sm:$0xff]   ;;  %v4821_v10 = vld [vmem:[#allocation9 + $0xa4] ss:$16 sps:$4 sm:$0xff]  }
 0xb10   : > { %v6064_v37 = vadd.f32 %v2600_v6, %v1878_v28  ;;  %2638 = vadd.xlane.f32.xlu0 %v6061_v34  ;;  %2977 = vmatpush1.bf16.msra.mxu1 %v4810_v15  ;;  %v4818_v6 = vld [vmem:[#allocation9 + $0x84] ss:$16 sps:$4 sm:$0xff]  }
 0xb11   : > { %2978 = vmatprep.subr.bf16.mxu1 %v4815_v32 }
 0xb12   : > { %2640 = vadd.xlane.f32.xlu1 %v6064_v37 }
 0xb14   : > { %v4536_v21 = vpop.f32.mrb[44].mxu0  ;;  %2642 = vadd.xlane.f32.xlu0 %v6067_v41  ;;  %2979 = vmatpush1.bf16.msra.mxu1 %v4813_v35  ;;  %v4828_v35 = vld [vmem:[#allocation9 + $0x8] ss:$16 sps:$4 sm:$0xff]  }
 0xb15   : > { %v2613_v49 = vpop.f32.mrb[45].mxu0  ;;  %v6083_v5 = vadd.f32 %v4536_v21, %v1883_v33  ;;  %2980 = vmatprep.subr.bf16.mxu1 %v4818_v6  ;;  %v4822_v21 = vld [vmem:[#allocation9 + $0xc0] ss:$16 sps:$4 sm:$0xff]  }
 0xb16   : > { %v6076_v50 = vadd.f32 %v2613_v49, %v1881_v45  ;;  %2644 = vadd.xlane.f32.xlu1 %v6071_v46  ;;  %v4537_v30 = vpop.f32.mrb[46].mxu0  ;;  %v4824_v45 = vld [vmem:[#allocation9 + $0xc4] ss:$16 sps:$4 sm:$0xff]   ;;  %v4830_v49 = vld [vmem:[#allocation9 + $0xc] ss:$16 sps:$4 sm:$0xff]  }
 0xb17   : > { %v2616_v51 = vpop.f32.mrb[47].mxu0  ;;  %v6086_v53 = vadd.f32 %v4537_v30, %v1884_v18 }
 0xb18   : > { %v6080_v13 = vadd.f32 %v2616_v51, %v1882_v48  ;;  %2646 = vadd.xlane.f32.xlu0 %v6076_v50  ;;  %2981 = vmatpush1.bf16.msra.mxu1 %v4816_v9  ;;  %v4827_v48 = vld [vmem:[#allocation9 + $0xe4] ss:$16 sps:$4 sm:$0xff]   ;;  %v4833_v9 = vld [vmem:[#allocation9 + $0x2c] ss:$16 sps:$4 sm:$0xff]  }
 0xb19   : > { %2982 = vmatprep.subr.bf16.mxu1 %v4821_v10 }
 0xb1a   : > { %2648 = vadd.xlane.f32.xlu1 %v6080_v13 }
 0xb1c   : > { %2650 = vadd.xlane.f32.xlu0 %v6083_v5  ;;  %2983 = vmatpush1.bf16.msra.mxu1 %v4819_v22 }
 0xb1d   : > { %2984 = vmatprep.subr.bf16.mxu1 %v4824_v45 }
 0xb1e   : > { %2652 = vadd.xlane.f32.xlu1 %v6086_v53 }
 0xb20   : > { %2985 = vmatpush1.bf16.msra.mxu1 %v4822_v21  ;;  %v4831_v21 = vld [vmem:[#allocation9 + $0x28] ss:$16 sps:$4 sm:$0xff]  }
 0xb21   : > { %2986 = vmatprep.subr.bf16.mxu1 %v4827_v48 }
 0xb24   : > { %2987 = vmatpush1.bf16.msra.mxu1 %v4825_v16  ;;  %v4836_v16 = vld [vmem:[#allocation9 + $0x4c] ss:$16 sps:$4 sm:$0xff]  }
 0xb25   : > { %3045 = vmatprep.subr.bf16.mxu1 %v4830_v49 }
 0xb9d   : > { %v2639_v17 = vpop.xlane.xlu0 %2638 }
 0xb9e   : > { %v2654_v19 = vmul.f32 0.0078125, %v2639_v17 }
 0xb9f   : > { %v2641_v25 = vpop.xlane.xlu1 %2640 }
 0xba0   : > { %v6091_v29 = vsub.f32 %v6061_v34, %v2654_v19  ;;  %v2655_v55 = vmul.f32 0.0078125, %v2641_v25 }
 0xba1   : > { %v2643_v36 = vpop.xlane.xlu0 %2642 }
 0xba2   : > { %v6094_v40 = vsub.f32 %v6064_v37, %v2655_v55  ;;  %v2656_v11 = vmul.f32 0.0078125, %v2643_v36  ;;  %v2670_v14 = vmul.f32 %v6091_v29, %v6091_v29 }
 0xba3   : > { %v2645_v58 = vpop.xlane.xlu1 %2644 }
 0xba4   : > { %v6099_v42 = vsub.f32 %v6067_v41, %v2656_v11  ;;  %v2657_v43 = vmul.f32 0.0078125, %v2645_v58  ;;  %2678 = vadd.xlane.f32.xlu0 %v2670_v14  ;;  %v2671_v44 = vmul.f32 %v6094_v40, %v6094_v40 }
 0xba5   : > { %v2647_v47 = vpop.xlane.xlu0 %2646 }
 0xba6   : > { %v6104_v54 = vsub.f32 %v6071_v46, %v2657_v43  ;;  %v2658_v38 = vmul.f32 0.0078125, %v2647_v47  ;;  %2680 = vadd.xlane.f32.xlu1 %v2671_v44  ;;  %v2672_v31 = vmul.f32 %v6099_v42, %v6099_v42 }
 0xba7   : > { %v2649_v57 = vpop.xlane.xlu1 %2648 }
 0xba8   : > { %v6109_v39 = vsub.f32 %v6076_v50, %v2658_v38  ;;  %v2659_v60 = vmul.f32 0.0078125, %v2649_v57  ;;  %2682 = vadd.xlane.f32.xlu0 %v2672_v31  ;;  %v2673_v61 = vmul.f32 %v6104_v54, %v6104_v54  ;;  %v6133_v38 = vld [vmem:[%s6595_s23] ss:$0 sm:$0xff] }
 0xba9   : > { %v2651_v62 = vpop.xlane.xlu0 %2650 }
 0xbaa   : > { %v6114_v63 = vsub.f32 %v6080_v13, %v2659_v60  ;;  %v2660_v0 = vmul.f32 0.0078125, %v2651_v62  ;;  %2684 = vadd.xlane.f32.xlu1 %v2673_v61  ;;  %v2674_v1 = vmul.f32 %v6109_v39, %v6109_v39 }
 0xbab   : > { %v2653_v2 = vpop.xlane.xlu1 %2652 }
 0xbac   : > { %v6119_v3 = vsub.f32 %v6083_v5, %v2660_v0  ;;  %v2661_v4 = vmul.f32 0.0078125, %v2653_v2  ;;  %2686 = vadd.xlane.f32.xlu0 %v2674_v1  ;;  %v2675_v20 = vmul.f32 %v6114_v63, %v6114_v63 }
 0xbae   : > { %v6124_v24 = vsub.f32 %v6086_v53, %v2661_v4  ;;  %2688 = vadd.xlane.f32.xlu1 %v2675_v20  ;;  %v2676_v26 = vmul.f32 %v6119_v3, %v6119_v3  ;;  %v4118_v4 = vld [vmem:[#allocation7] ss:$0 sm:$0xff] }
 0xbb0   : > { %2690 = vadd.xlane.f32.xlu0 %v2676_v26  ;;  %v2677_v28 = vmul.f32 %v6124_v24, %v6124_v24 }
 0xbb2   : > { %2692 = vadd.xlane.f32.xlu1 %v2677_v28 }
 0xc31   : > { %v2679_v23 = vpop.xlane.xlu0 %2678 }
 0xc32   : > { %v2694_v33 = vmul.f32 0.0078125, %v2679_v23  ;;  %v4834_v23 = vld [vmem:[#allocation9 + $0x48] ss:$16 sps:$4 sm:$0xff]  }
 0xc33   : > { %v2681_v30 = vpop.xlane.xlu1 %2680 }
 0xc34   : > { %v2702_v51 = vadd.f32 1e-05, %v2694_v33  ;;  %v2695_v52 = vmul.f32 0.0078125, %v2681_v30  ;;  %v4839_v30 = vld [vmem:[#allocation9 + $0x6c] ss:$16 sps:$4 sm:$0xff]  }
 0xc35   : > { %v2683_v18 = vpop.xlane.xlu0 %2682 }
 0xc36   : > { %4968 = vrsqrt.f32 %v2702_v51  ;;  %v2703_v7 = vadd.f32 1e-05, %v2695_v52  ;;  %v2696_v8 = vmul.f32 0.0078125, %v2683_v18 }
 0xc37   : > { %v2685_v12 = vpop.xlane.xlu1 %2684 }
 0xc38   : > { %4970 = vrsqrt.f32 %v2703_v7  ;;  %v2704_v27 = vadd.f32 1e-05, %v2696_v8  ;;  %v2697_v17 = vmul.f32 0.0078125, %v2685_v12  ;;  %v4837_v8 = vld [vmem:[#allocation9 + $0x68] ss:$16 sps:$4 sm:$0xff]  }
 0xc39   : > { %v2687_v19 = vpop.xlane.xlu0 %2686  ;;  %v4842_v12 = vld [vmem:[#allocation9 + $0x8c] ss:$16 sps:$4 sm:$0xff]  }
 0xc3a   : > { %4972 = vrsqrt.f32 %v2704_v27  ;;  %v2705_v25 = vadd.f32 1e-05, %v2697_v17  ;;  %v2698_v55 = vmul.f32 0.0078125, %v2687_v19  ;;  %v4840_v19 = vld [vmem:[#allocation9 + $0x88] ss:$16 sps:$4 sm:$0xff]  }
 0xc3b   : > { %v2689_v36 = vpop.xlane.xlu1 %2688 }
 0xc3c   : > { %4974 = vrsqrt.f32 %v2705_v25  ;;  %v2699_v11 = vmul.f32 0.0078125, %v2689_v36  ;;  %v2706_v14 = vadd.f32 1e-05, %v2698_v55  ;;  %v4845_v55 = vld [vmem:[#allocation9 + $0xac] ss:$16 sps:$4 sm:$0xff]  }
 0xc3d   : > { %v2691_v43 = vpop.xlane.xlu0 %2690 }
 0xc3e   : > { %v2707_v58 = vadd.f32 1e-05, %v2699_v11  ;;  %v2700_v61 = vmul.f32 0.0078125, %v2691_v43 }
 0xc3f   : > { %v2693_v44 = vpop.xlane.xlu1 %2692 }
 0xc40   : > { %v4969_v47 = vpop.eup %4968  ;;  %4976 = vrsqrt.f32 %v2707_v58  ;;  %v2701_v31 = vmul.f32 0.0078125, %v2693_v44  ;;  %v2708_v28 = vadd.f32 1e-05, %v2700_v61  ;;  %v4855_v61 = vld [vmem:[#allocation12 + $0x8] sm:$0xff]  }
 0xc41   : > { %v2718_v57 = vmul.f32 %v4969_v47, %v6091_v29  ;;  %4978 = vrsqrt.f32 %v2706_v14  ;;  %v4843_v14 = vld [vmem:[#allocation9 + $0xa8] ss:$16 sps:$4 sm:$0xff]   ;;  %v4851_v47 = vld [vmem:[#allocation9 + $0xec] ss:$16 sps:$4 sm:$0xff]  }
 0xc42   : > { %v4971_v60 = vpop.eup %4970  ;;  %v2709_v2 = vadd.f32 1e-05, %v2701_v31  ;;  %v4849_v31 = vld [vmem:[#allocation9 + $0xe8] ss:$16 sps:$4 sm:$0xff]  }
 0xc43   : > { %v2732_v62 = vmul.f32 %v6133_v38, %v2718_v57  ;;  %v2719_v0 = vmul.f32 %v4971_v60, %v6094_v40  ;;  %v4853_v57 = vld [vmem:[#allocation12] sm:$0xff]   ;;  %v4854_v60 = vld [vmem:[#allocation12 + $0x48] sm:$0xff]  }
 0xc44   : > { %v4973_v1 = vpop.eup %4972  ;;  %4980 = vrsqrt.f32 %v2709_v2  ;;  %v4859_v2 = vld [vmem:[#allocation12 + $0x18] sm:$0xff]  }
 0xc45   : > { %v2733_v20 = vmul.f32 %v6133_v38, %v2719_v0  ;;  %v2746_v59 = vadd.f32 %v4118_v4, %v2732_v62  ;;  %v2720_v32 = vmul.f32 %v4973_v1, %v6099_v42  ;;  %4982 = vrsqrt.f32 %v2708_v28  ;;  %v4856_v62 = vld [vmem:[#allocation12 + $0x50] sm:$0xff]   ;;  %v4858_v1 = vld [vmem:[#allocation12 + $0x58] sm:$0xff]  }
 0xc46   : > { %v4975_v26 = vpop.eup %4974  ;;  %v4857_v0 = vld [vmem:[#allocation12 + $0x10] sm:$0xff]  }
 0xc47   : > { %v2747_v15 = vadd.f32 %v4118_v4, %v2733_v20  ;;  %v2721_v29 = vmul.f32 %v4975_v26, %v6104_v54  ;;  %v2734_v22 = vmul.f32 %v6133_v38, %v2720_v32  ;;  %v4861_v20 = vld [vmem:[#allocation12 + $0x20] sm:$0xff]   ;;  %v4863_v26 = vld [vmem:[#allocation12 + $0x28] sm:$0xff]   ;;  %v4864_v28 = vld [vmem:[#allocation12 + $0x70] sm:$0xff]  }
 0xc48   : > { %v4867_v32 = vld [vmem:[#allocation12 + $0x38] sm:$0xff]  }
 0xc49   : > { %v2754_v6 = vpack.c.bf16 %v2747_v15, %v2746_v59  ;;  %v2735_v10 = vmul.f32 %v6133_v38, %v2721_v29  ;;  %v2748_v48 = vadd.f32 %v4118_v4, %v2734_v22  ;;  %v4865_v59 = vld [vmem:[#allocation12 + $0x30] sm:$0xff]   ;;  %v4866_v15 = vld [vmem:[#allocation12 + $0x78] sm:$0xff]   ;;  %v4868_v29 = vld [vmem:[#allocation12 + $0xc0] sm:$0xff]  }
 0xc4a   : > { %v4977_v40 = vpop.eup %4976  ;;  %v6173_v22 = vld [vmem:[#allocation12 + $0xd8] sm:$0xff]  }
 0xc4b   : > { %3005 = vmatmul.mubr.bf16.vlgmr.msra.gmra.mrb[20].mxu1 %v2754_v6  ;;  %v4979_v45 = vpop.eup %4978  ;;  %v2749_v42 = vadd.f32 %v4118_v4, %v2735_v10  ;;  %v2723_v54 = vmul.f32 %v4977_v40, %v6114_v63  ;;  %v6167_v10 = vld [vmem:[#allocation12 + $0xd0] sm:$0xff]  }
 0xc4c   : > { %3046 = vmatpush1.bf16.msra.mxu1 %v4828_v35  ;;  %3014 = vmatprep.mubr.bf16.mxu1 %v5320_v56  ;;  %v2722_v49 = vmul.f32 %v4979_v45, %v6109_v39  ;;  %v6158_v35 = vld [vmem:[#allocation12 + $0x80] sm:$0xff]   ;;  %v6169_v40 = vld [vmem:[#allocation12 + $0x90] sm:$0xff]   ;;  %v6175_v45 = vld [vmem:[#allocation12 + $0x98] sm:$0xff]  }
 0xc4d   : > { %3047 = vmatprep.subr.bf16.mxu1 %v4833_v9  ;;  %v2755_v33 = vpack.c.bf16 %v2749_v42, %v2748_v48  ;;  %v2737_v51 = vmul.f32 %v6133_v38, %v2723_v54  ;;  %v6163_v9 = vld [vmem:[#allocation12 + $0x88] sm:$0xff]   ;;  %v6181_v42 = vld [vmem:[#allocation12 + $0xa0] sm:$0xff]   ;;  %v6191_v48 = vld [vmem:[#allocation12 + $0xf0] sm:$0xff]  }
 0xc4e   : > { %v4981_v52 = vpop.eup %4980  ;;  %v2736_v18 = vmul.f32 %v6133_v38, %v2722_v49  ;;  %v6188_v54 = vld [vmem:[#allocation12 + $0xa8] sm:$0xff]   ;;  %v6193_v49 = vld [vmem:[#allocation12 + $0xb0] sm:$0xff]  }
 0xc4f   : > { %v4983_v7 = vpop.eup %4982  ;;  %v2751_v63 = vadd.f32 %v4118_v4, %v2737_v51  ;;  %v2725_v39 = vmul.f32 %v4981_v52, %v6124_v24  ;;  %v4848_v24 = vld [vmem:[#allocation9 + $0xcc] ss:$16 sps:$4 sm:$0xff]  }
 0xc50   : > { %3048 = vmatpush1.bf16.msra.mxu1 %v4831_v21  ;;  %v2750_v27 = vadd.f32 %v4118_v4, %v2736_v18  ;;  %v2724_v17 = vmul.f32 %v4983_v7, %v6119_v3  ;;  %v4846_v3 = vld [vmem:[#allocation9 + $0xc8] ss:$16 sps:$4 sm:$0xff]   ;;  %v6206_v18 = vld [vmem:[#allocation10] sm:$0xf] }
 0xc51   : > { %3049 = vmatprep.subr.bf16.mxu1 %v4836_v16  ;;  %v2739_v36 = vmul.f32 %v6133_v38, %v2725_v39  ;;  %v6179_v21 = vld [vmem:[#allocation12 + $0xe0] sm:$0xff]   ;;  %v6183_v16 = vld [vmem:[#allocation12 + $0xe8] sm:$0xff]  }
 0xc52   : > { %v2756_v25 = vpack.c.bf16 %v2751_v63, %v2750_v27  ;;  %v2738_v11 = vmul.f32 %v6133_v38, %v2724_v17  ;;  %v4852_v38 = vld [vmem:[#allocation12 + $0x40] sm:$0xff]  }
 0xc53   : > { %3015 = vmatmul.mubr.bf16.gmra.mrb[24].mxu1 %v2755_v33  ;;  %v2753_v58 = vadd.f32 %v4118_v4, %v2739_v36  ;;  %4274 = vmatprep.subr.bf16.mxu0 %v4852_v38 }
 0xc54   : > { %3050 = vmatpush1.bf16.msra.mxu1 %v4834_v23  ;;  %3024 = vmatprep.mubr.bf16.mxu1 %v5320_v56  ;;  %v2752_v43 = vadd.f32 %v4118_v4, %v2738_v11  ;;  %v4860_v4 = vld [vmem:[#allocation12 + $0x60] sm:$0xff]   ;;  %v6195_v23 = vld [vmem:[#allocation12 + $0xf8] sm:$0xff]  }
 0xc55   : > { %3051 = vmatprep.subr.bf16.mxu1 %v4839_v30  ;;  %4275 = vmatpush3.bf16.msra.mxu0 %v4853_v57  ;;  %v2792_v30 = vlaneseq }
 0xc56   : > { %v2757_v44 = vpack.c.bf16 %v2753_v58, %v2752_v43  ;;  %4276 = vmatprep.subr.bf16.mxu0 %v4854_v60 }
 0xc57   : > { %v6203_v51 = vshrl.u32 %v2792_v30, 7 }
 0xc58   : > { %3052 = vmatpush1.bf16.msra.mxu1 %v4837_v8 }
 0xc59   : > { %3053 = vmatprep.subr.bf16.mxu1 %v4842_v12  ;;  %4277 = vmatpush3.bf16.msra.mxu0 %v4855_v61  ;;  %v2794_v52 = vsub.s32 0, %v6203_v51  ;;  %v2798_v7 = vsub.s32 1, %v6203_v51 }
 0xc5a   : > { %4278 = vmatprep.subr.bf16.mxu0 %v4856_v62 }
 0xc5b   : > { %3025 = vmatmul.mubr.bf16.gmra.mrb[28].mxu1 %v2756_v25  ;;  %v6210_v8 = vrot.slane %v6206_v18, %v2794_v52  ;;  %v6213_v63 = vrot.slane %v6206_v18, %v2798_v7 }
 0xc5c   : > { %3054 = vmatpush1.bf16.msra.mxu1 %v4840_v19  ;;  %3034 = vmatprep.mubr.bf16.mxu1 %v5320_v56 }
 0xc5d   : > { %3055 = vmatprep.subr.bf16.mxu1 %v4845_v55  ;;  %4279 = vmatpush3.bf16.msra.mxu0 %v4857_v0 }
 0xc5e   : > { %4280 = vmatprep.subr.bf16.mxu0 %v4858_v1 }
 0xc60   : > { %3056 = vmatpush1.bf16.msra.mxu1 %v4843_v14 }
 0xc61   : > { %3057 = vmatprep.subr.bf16.mxu1 %v4848_v24  ;;  %4281 = vmatpush3.bf16.msra.mxu0 %v4859_v2 }
 0xc62   : > { %4282 = vmatprep.subr.bf16.mxu0 %v4860_v4 }
 0xc63   : > { %3035 = vmatmul.mubr.bf16.gmra.mrb[32].mxu1 %v2757_v44 }
 0xc64   : > { %3058 = vmatpush1.bf16.msra.mxu1 %v4846_v3  ;;  %3077 = vmatprep.mubr.bf16.mxu1 %v5320_v56 }
 0xc65   : > { %3059 = vmatprep.subr.bf16.mxu1 %v4851_v47  ;;  %4283 = vmatpush3.bf16.msra.mxu0 %v4861_v20  ;;  %v2802_v20 = vsub.s32 2, %v6203_v51 }
 0xc68   : > { %3060 = vmatpush1.bf16.msra.mxu1 %v4849_v31 }
 0xc69   : > { %4538 = vmatprep.subr.bf16.mxu1 %v4868_v29 }
 0xc6b   : > { %3078 = vmatmul.mubr.bf16.vlgmr.msra.gmra.mrb[36].mxu1 %v2754_v6  ;;  %v6161_v6 = vld [vmem:[#allocation12 + $0xc8] sm:$0xff]  }
 0xc6c   : > { %3087 = vmatprep.mubr.bf16.mxu1 %v5320_v56  ;;  %4546 = vmatpush3.bf16.msra.mxu1 %v6158_v35 }
 0xc6d   : > { %4539 = vmatprep.subr.bf16.mxu1 %v6161_v6 }
 0xc70   : > { %4547 = vmatpush3.bf16.msra.mxu1 %v6163_v9 }
 0xc71   : > { %4540 = vmatprep.subr.bf16.mxu1 %v6167_v10 }
 0xc73   : > { %3088 = vmatmul.mubr.bf16.gmra.mrb[40].mxu1 %v2755_v33  ;;  %v6200_v33 = vld [vmem:[#allocation12 + $0xb8] sm:$0xff]  }
 0xc74   : > { %3097 = vmatprep.mubr.bf16.mxu1 %v5320_v56  ;;  %4548 = vmatpush3.bf16.msra.mxu1 %v6169_v40 }
 0xc75   : > { %4541 = vmatprep.subr.bf16.mxu1 %v6173_v22 }
 0xc78   : > { %4549 = vmatpush3.bf16.msra.mxu1 %v6175_v45 }
 0xc79   : > { %4542 = vmatprep.subr.bf16.mxu1 %v6179_v21 }
 0xc7b   : > { %3098 = vmatmul.mubr.bf16.gmra.mrb[44].mxu1 %v2756_v25 }
 0xc7c   : > { %3107 = vmatprep.mubr.bf16.mxu1 %v5320_v56  ;;  %v4862_v56 = vld [vmem:[#allocation12 + $0x68] sm:$0xff]   ;;  %4550 = vmatpush3.bf16.msra.mxu1 %v6181_v42 }
 0xc7d   : > { %4284 = vmatprep.subr.bf16.mxu0 %v4862_v56  ;;  %4543 = vmatprep.subr.bf16.mxu1 %v6183_v16 }
 0xc7e   : > { %4285 = vmatpush3.bf16.msra.mxu0 %v4863_v26 }
 0xc7f   : > { %4286 = vmatprep.subr.bf16.mxu0 %v4864_v28 }
 0xc80   : > { %4551 = vmatpush3.bf16.msra.mxu1 %v6188_v54 }
 0xc81   : > { %4544 = vmatprep.subr.bf16.mxu1 %v6191_v48 }
 0xc82   : > { %4287 = vmatpush3.bf16.msra.mxu0 %v4865_v59 }
 0xc83   : > { %3108 = vmatmul.mubr.bf16.gmra.mrb[48].mxu1 %v2757_v44  ;;  %4288 = vmatprep.subr.bf16.mxu0 %v4866_v15 }
 0xc84   : > { %4552 = vmatpush3.bf16.msra.mxu1 %v6193_v49 }
 0xc85   : > { %4545 = vmatprep.subr.bf16.mxu1 %v6195_v23 }
 0xc86   : > { %4289 = vmatpush3.bf16.msra.mxu0 %v4867_v32 }
 0xc87   : > { %4314 = vmatprep.subr.bf16.mxu0 %v4868_v29 }
 0xc88   : > { %4553 = vmatpush3.bf16.msra.mxu1 %v6200_v33 }
 0xd1e   : > { %v3006_v12 = vpop.f32.mrb[20].mxu1 }
 0xd1f   : > { %v3007_v39 = vadd.f32 %v3006_v12, %v6210_v8  ;;  %v3008_v27 = vpop.f32.mrb[21].mxu1 }
 0xd20   : > { %v3009_v17 = vadd.f32 %v3008_v27, %v6213_v63  ;;  %v3010_v19 = vpop.f32.mrb[22].mxu1 }
 0xd21   : > { %v3150_v25 = vmul.f32 0.044715, %v3007_v39  ;;  %v3011_v55 = vadd.f32 %v3010_v19, %v6210_v8  ;;  %v3012_v36 = vpop.f32.mrb[23].mxu1 }
 0xd22   : > { %v3151_v11 = vmul.f32 0.044715, %v3009_v17  ;;  %v6219_v14 = vadd.f32 %v3012_v36, %v6213_v63 }
 0xd23   : > { %v3182_v58 = vmul.f32 %v3150_v25, %v3007_v39  ;;  %v3154_v24 = vmul.f32 0.044715, %v3011_v55 }
 0xd24   : > { %v3183_v43 = vmul.f32 %v3151_v11, %v3009_v17  ;;  %v3155_v3 = vmul.f32 0.044715, %v6219_v14 }
 0xd25   : > { %v3214_v44 = vmul.f32 %v3182_v58, %v3007_v39  ;;  %v3186_v47 = vmul.f32 %v3154_v24, %v3011_v55 }
 0xd26   : > { %v3215_v31 = vmul.f32 %v3183_v43, %v3009_v17  ;;  %v3187_v38 = vmul.f32 %v3155_v3, %v6219_v14  ;;  %v3016_v57 = vpop.f32.mrb[24].mxu1 }
 0xd27   : > { %v3246_v60 = vadd.f32 %v3214_v44, %v3007_v39  ;;  %v3218_v61 = vmul.f32 %v3186_v47, %v3011_v55  ;;  %v6224_v62 = vadd.f32 %v3016_v57, %v6210_v8  ;;  %v3018_v0 = vpop.f32.mrb[25].mxu1  ;;  %v2806_v47 = vsub.s32 3, %v6203_v51 }
 0xd28   : > { %v3219_v1 = vmul.f32 %v3187_v38, %v6219_v14  ;;  %v3019_v2 = vadd.f32 %v3018_v0, %v6213_v63  ;;  %v3020_v4 = vpop.f32.mrb[26].mxu1  ;;  %v3247_v56 = vadd.f32 %v3215_v31, %v3009_v17  ;;  %v3118_v31 = vmul.f32 0.5, %v3007_v39 }
 0xd29   : > { %v3278_v26 = vmul.f32 0.7978846, %v3246_v60  ;;  %v3250_v28 = vadd.f32 %v3218_v61, %v3011_v55  ;;  %v3158_v59 = vmul.f32 0.044715, %v6224_v62  ;;  %v6231_v15 = vadd.f32 %v3020_v4, %v6210_v8  ;;  %v3022_v32 = vpop.f32.mrb[27].mxu1 }
 0xd2a   : > { %v3159_v29 = vmul.f32 0.044715, %v3019_v2  ;;  %v3023_v30 = vadd.f32 %v3022_v32, %v6213_v63  ;;  %v3251_v52 = vadd.f32 %v3219_v1, %v6219_v14  ;;  %v3279_v7 = vmul.f32 0.7978846, %v3247_v56 }
 0xd2b   : > { %4984 = vtanh.f32 %v3278_v26  ;;  %v3282_v12 = vmul.f32 0.7978846, %v3250_v28  ;;  %v3190_v27 = vmul.f32 %v3158_v59, %v6224_v62  ;;  %v3162_v19 = vmul.f32 0.044715, %v6231_v15 }
 0xd2c   : > { %v3191_v25 = vmul.f32 %v3159_v29, %v3019_v2  ;;  %v3163_v36 = vmul.f32 0.044715, %v3023_v30  ;;  %v3283_v11 = vmul.f32 0.7978846, %v3251_v52  ;;  %4986 = vtanh.f32 %v3279_v7 }
 0xd2d   : > { %4988 = vtanh.f32 %v3282_v12  ;;  %v3222_v58 = vmul.f32 %v3190_v27, %v6224_v62  ;;  %v3194_v24 = vmul.f32 %v3162_v19, %v6231_v15  ;;  %v6245_v61 = vrot.slane %v6206_v18, %v2802_v20 }
 0xd2e   : > { %v3223_v43 = vmul.f32 %v3191_v25, %v3019_v2  ;;  %v3195_v3 = vmul.f32 %v3163_v36, %v3023_v30  ;;  %v3026_v44 = vpop.f32.mrb[28].mxu1  ;;  %4990 = vtanh.f32 %v3283_v11  ;;  %v3122_v51 = vmul.f32 0.5, %v3011_v55 }
 0xd2f   : > { %v3226_v38 = vmul.f32 %v3194_v24, %v6231_v15  ;;  %v6242_v57 = vadd.f32 %v3026_v44, %v6210_v8  ;;  %v3028_v60 = vpop.f32.mrb[29].mxu1  ;;  %v3254_v26 = vadd.f32 %v3222_v58, %v6224_v62  ;;  %v3119_v59 = vmul.f32 0.5, %v3009_v17 }
 0xd30   : > { %v3227_v0 = vmul.f32 %v3195_v3, %v3023_v30  ;;  %v6248_v1 = vadd.f32 %v3028_v60, %v6213_v63  ;;  %v3030_v4 = vpop.f32.mrb[30].mxu1  ;;  %v3255_v56 = vadd.f32 %v3223_v43, %v3019_v2  ;;  %v6261_v27 = vrot.slane %v6206_v18, %v2806_v47 }
 0xd31   : > { %v6252_v39 = vadd.f32 %v3030_v4, %v6210_v8  ;;  %v3032_v28 = vpop.f32.mrb[31].mxu1  ;;  %v3258_v32 = vadd.f32 %v3226_v38, %v6231_v15  ;;  %v3166_v12 = vmul.f32 0.044715, %v6242_v57  ;;  %v3286_v55 = vmul.f32 0.7978846, %v3254_v26 }
 0xd32   : > { %v3167_v29 = vmul.f32 0.044715, %v6248_v1  ;;  %v6257_v20 = vadd.f32 %v3032_v28, %v6213_v63  ;;  %v3259_v52 = vadd.f32 %v3227_v0, %v3023_v30  ;;  %v3287_v7 = vmul.f32 0.7978846, %v3255_v56 }
 0xd33   : > { %v3290_v19 = vmul.f32 0.7978846, %v3258_v32  ;;  %v3123_v58 = vmul.f32 0.5, %v6219_v14  ;;  %v6266_v24 = vmul.f32 0.5, %v3019_v2  ;;  %v6268_v43 = vmul.f32 0.5, %v3023_v30 }
 0xd34   : > { %v3199_v25 = vmul.f32 %v3167_v29, %v6248_v1  ;;  %v3171_v17 = vmul.f32 0.044715, %v6257_v20  ;;  %v3291_v36 = vmul.f32 0.7978846, %v3259_v52  ;;  %4992 = vtanh.f32 %v3287_v7 }
 0xd35   : > { %v4985_v11 = vpop.eup %4984  ;;  %4994 = vtanh.f32 %v3286_v55  ;;  %v3170_v18 = vmul.f32 0.044715, %v6252_v39  ;;  %v6274_v14 = vmul.f32 0.5, %v6224_v62  ;;  %v3198_v30 = vmul.f32 %v3166_v12, %v6242_v57 }
 0xd36   : > { %v4987_v3 = vpop.eup %4986  ;;  %v3203_v44 = vmul.f32 %v3171_v17, %v6257_v20  ;;  %v3036_v47 = vpop.f32.mrb[32].mxu1  ;;  %v3342_v38 = vadd.f32 1.0, %v4985_v11  ;;  %4996 = vtanh.f32 %v3291_v36  ;;  %v3231_v0 = vmul.f32 %v3199_v25, %v6248_v1 }
 0xd37   : > { %v4989_v60 = vpop.eup %4988  ;;  %v3038_v4 = vpop.f32.mrb[33].mxu1  ;;  %v3343_v56 = vadd.f32 1.0, %v4987_v3  ;;  %4998 = vtanh.f32 %v3290_v19  ;;  %v6279_v28 = vadd.f32 %v3036_v47, %v6210_v8  ;;  %v3130_v19 = vmul.f32 0.5, %v6231_v15 }
 0xd38   : > { %v4991_v2 = vpop.eup %4990  ;;  %v3235_v26 = vmul.f32 %v3203_v44, %v6257_v20  ;;  %v3040_v32 = vpop.f32.mrb[34].mxu1  ;;  %v3346_v29 = vadd.f32 1.0, %v4989_v60  ;;  %v6282_v52 = vadd.f32 %v3038_v4, %v6213_v63  ;;  %v3202_v25 = vmul.f32 %v3170_v18, %v6252_v39 }
 0xd39   : > { %v6285_v7 = vadd.f32 %v3040_v32, %v6210_v8  ;;  %v3042_v55 = vpop.f32.mrb[35].mxu1  ;;  %v3347_v62 = vadd.f32 1.0, %v4991_v2  ;;  %v3374_v17 = vmul.f32 %v3342_v38, %v3118_v31  ;;  %v3375_v11 = vmul.f32 %v3343_v56, %v3119_v59 }
 0xd3a   : > { %v6290_v12 = vadd.f32 %v3042_v55, %v6213_v63  ;;  %v3378_v36 = vmul.f32 %v3346_v29, %v3122_v51  ;;  %v3263_v44 = vadd.f32 %v3231_v0, %v6248_v1  ;;  %v6294_v47 = vmul.f32 0.5, %v6242_v57 }
 0xd3b   : > { %v3379_v3 = vmul.f32 %v3347_v62, %v3123_v58  ;;  %v3230_v8 = vmul.f32 %v3198_v30, %v6242_v57  ;;  %v3174_v60 = vmul.f32 0.044715, %v6279_v28  ;;  %v3267_v15 = vadd.f32 %v3235_v26, %v6257_v20 }
 0xd3c   : > { %v3406_v4 = vpack.c.bf16 %v3378_v36, %v3374_v17  ;;  %v3175_v18 = vmul.f32 0.044715, %v6282_v52  ;;  %v3178_v63 = vmul.f32 0.044715, %v6285_v7  ;;  %v3295_v51 = vmul.f32 0.7978846, %v3263_v44 }
 0xd3d   : > { %v3407_v31 = vpack.c.bf16 %v3379_v3, %v3375_v11  ;;  %v3234_v58 = vmul.f32 %v3202_v25, %v6252_v39  ;;  %v3179_v38 = vmul.f32 0.044715, %v6290_v12  ;;  %v6304_v56 = vmul.f32 0.5, %v6248_v1 }
 0xd3e   : > { %v4993_v59 = vpop.eup %4992  ;;  %v3079_v0 = vpop.f32.mrb[36].mxu1  ;;  %v3299_v2 = vmul.f32 0.7978846, %v3267_v15  ;;  %v6308_v55 = vmul.f32 0.5, %v6257_v20  ;;  %5000 = vtanh.f32 %v3295_v51  ;;  %v3206_v25 = vmul.f32 %v3174_v60, %v6279_v28 }
 0xd3f   : > { %v4995_v30 = vpop.eup %4994  ;;  %v3080_v32 = vadd.f32 %v3079_v0, %v6245_v61  ;;  %v3081_v26 = vpop.f32.mrb[37].mxu1  ;;  %3710 = vmatprep.mubr.bf16.mxu0 %v3407_v31  ;;  %v3351_v29 = vadd.f32 1.0, %v4993_v59  ;;  %v3207_v3 = vmul.f32 %v3175_v18, %v6282_v52  ;;  %v3210_v51 = vmul.f32 %v3178_v63, %v6285_v7 }
 0xd40   : > { %v4997_v62 = vpop.eup %4996  ;;  %v6312_v17 = vadd.f32 %v3081_v26, %v6261_v27  ;;  %v3083_v36 = vpop.f32.mrb[38].mxu1  ;;  %3711 = vmatmul.mubr.bf16.vlgmr.msra.gmra.mrb[56].mxu0 %v3406_v4  ;;  %v3350_v1 = vadd.f32 1.0, %v4995_v30  ;;  %5002 = vtanh.f32 %v3299_v2  ;;  %v3211_v60 = vmul.f32 %v3179_v38, %v6290_v12 }
 0xd41   : > { %v4999_v11 = vpop.eup %4998  ;;  %v3152_v44 = vmul.f32 0.044715, %v3080_v32  ;;  %v3084_v15 = vadd.f32 %v3083_v36, %v6245_v61  ;;  %v3085_v31 = vpop.f32.mrb[39].mxu1  ;;  %4315 = vmatpush3.bf16.msra.mxu0 %v6158_v35  ;;  %v3355_v20 = vadd.f32 1.0, %v4997_v62  ;;  %v3383_v18 = vmul.f32 %v3351_v29, %v6266_v24 }
 0xd42   : > { %v6320_v59 = vadd.f32 %v3085_v31, %v6261_v27  ;;  %4316 = vmatprep.subr.bf16.mxu0 %v6161_v6  ;;  %v3354_v4 = vadd.f32 1.0, %v4999_v11  ;;  %v3153_v26 = vmul.f32 0.044715, %v6312_v17  ;;  %v3382_v63 = vmul.f32 %v3350_v1, %v6274_v14 }
 0xd43   : > { %v3184_v0 = vmul.f32 %v3152_v44, %v3080_v32  ;;  %v3156_v2 = vmul.f32 0.044715, %v3084_v15  ;;  %v3387_v30 = vmul.f32 %v3355_v20, %v6268_v43  ;;  %v3262_v6 = vadd.f32 %v3230_v8, %v6242_v57 }
 0xd44   : > { %v3157_v35 = vmul.f32 0.044715, %v6320_v59  ;;  %v3386_v62 = vmul.f32 %v3354_v4, %v3130_v19  ;;  %v6331_v11 = vmul.f32 %v3206_v25, %v6279_v28  ;;  %v6334_v24 = vmul.f32 %v3207_v3, %v6282_v52 }
 0xd45   : > { %v3216_v38 = vmul.f32 %v3184_v0, %v3080_v32  ;;  %v3188_v36 = vmul.f32 %v3156_v2, %v3084_v15  ;;  %4317 = vmatpush3.bf16.msra.mxu0 %v6163_v9  ;;  %v3411_v31 = vpack.c.bf16 %v3387_v30, %v3383_v18  ;;  %v6338_v14 = vmul.f32 0.5, %v6252_v39 }
 0xd46   : > { %v3089_v43 = vpop.f32.mrb[40].mxu1  ;;  %v3410_v29 = vpack.c.bf16 %v3386_v62, %v3382_v63  ;;  %4318 = vmatprep.subr.bf16.mxu0 %v6167_v10  ;;  %v6341_v19 = vmul.f32 %v3210_v51, %v6285_v7  ;;  %v3266_v8 = vadd.f32 %v3234_v58, %v6252_v39  ;;  %v3243_v25 = vmul.f32 %v3211_v60, %v6290_v12 }
 0xd47   : > { %v3220_v9 = vmul.f32 %v3188_v36, %v3084_v15  ;;  %v6344_v1 = vadd.f32 %v3089_v43, %v6245_v61  ;;  %v3091_v57 = vpop.f32.mrb[41].mxu1  ;;  %3718 = vmatprep.mubr.bf16.mxu0 %v3411_v31  ;;  %v3248_v3 = vadd.f32 %v3216_v38, %v3080_v32  ;;  %v3185_v44 = vmul.f32 %v3153_v26, %v6312_v17 }
 0xd48   : > { %v6350_v10 = vadd.f32 %v3091_v57, %v6261_v27  ;;  %v3093_v20 = vpop.f32.mrb[42].mxu1  ;;  %3719 = vmatmul.mubr.bf16.gmra.mrb[60].mxu0 %v3410_v29  ;;  %v5001_v51 = vpop.eup %5000  ;;  %v6352_v4 = vmul.f32 0.5, %v3080_v32  ;;  %v3189_v0 = vmul.f32 %v3157_v35, %v6320_v59  ;;  %v3294_v39 = vmul.f32 0.7978846, %v3262_v6 }
 0xd49   : > { %v3160_v2 = vmul.f32 0.044715, %v6344_v1  ;;  %v3095_v18 = vpop.f32.mrb[43].mxu1  ;;  %4319 = vmatpush3.bf16.msra.mxu0 %v6169_v40  ;;  %v3252_v60 = vadd.f32 %v3220_v9, %v3084_v15  ;;  %v3094_v30 = vadd.f32 %v3093_v20, %v6245_v61  ;;  %v3359_v63 = vadd.f32 1.0, %v5001_v51 }
 0xd4a   : > { %v5003_v58 = vpop.eup %5002  ;;  %v6359_v26 = vadd.f32 %v3095_v18, %v6261_v27  ;;  %4320 = vmatprep.subr.bf16.mxu0 %v6173_v22  ;;  %v6362_v32 = vmul.f32 0.5, %v3084_v15  ;;  %v3298_v38 = vmul.f32 0.7978846, %v3266_v8  ;;  %v3280_v36 = vmul.f32 0.7978846, %v3248_v3 }
 0xd4b   : > { %v3192_v35 = vmul.f32 %v3160_v2, %v6344_v1  ;;  %v3363_v62 = vadd.f32 1.0, %v5003_v58  ;;  %v6366_v40 = vmul.f32 %v3185_v44, %v6312_v17  ;;  %v3161_v31 = vmul.f32 0.044715, %v6350_v10 }
 0xd4c   : > { %v3164_v6 = vmul.f32 0.044715, %v3094_v30  ;;  %v6370_v43 = vmul.f32 %v3189_v0, %v6320_v59  ;;  %v3391_v22 = vmul.f32 %v3359_v63, %v6304_v56  ;;  %v3284_v9 = vmul.f32 0.7978846, %v3252_v60 }
 0xd4d   : > { %v3224_v29 = vmul.f32 %v3192_v35, %v6344_v1  ;;  %4321 = vmatpush3.bf16.msra.mxu0 %v6175_v45  ;;  %v3395_v15 = vmul.f32 %v3363_v62, %v6308_v55  ;;  %v3165_v8 = vmul.f32 0.044715, %v6359_v26  ;;  %5004 = vtanh.f32 %v3294_v39 }
 0xd4e   : > { %v3196_v57 = vmul.f32 %v3164_v6, %v3094_v30  ;;  %v3099_v3 = vpop.f32.mrb[44].mxu1  ;;  %4322 = vmatprep.subr.bf16.mxu0 %v6179_v21  ;;  %5006 = vtanh.f32 %v3298_v38  ;;  %v3193_v45 = vmul.f32 %v3161_v31, %v6350_v10  ;;  %v3271_v60 = vadd.f32 %v6334_v24, %v6282_v52 }
 0xd4f   : > { %v3256_v44 = vadd.f32 %v3224_v29, %v6344_v1  ;;  %v6380_v20 = vadd.f32 %v3099_v3, %v6245_v61  ;;  %v3101_v51 = vpop.f32.mrb[45].mxu1  ;;  %v3415_v0 = vpack.c.bf16 %v3395_v15, %v3391_v22  ;;  %5008 = vtanh.f32 %v3280_v36 }
 0xd50   : > { %v3228_v56 = vmul.f32 %v3196_v57, %v3094_v30  ;;  %v6384_v55 = vadd.f32 %v3101_v51, %v6261_v27  ;;  %v3103_v2 = vpop.f32.mrb[46].mxu1  ;;  %5010 = vtanh.f32 %v3284_v9  ;;  %v3197_v35 = vmul.f32 %v3165_v8, %v6359_v26 }
 0xd51   : > { %v3288_v18 = vmul.f32 0.7978846, %v3256_v44  ;;  %v3168_v39 = vmul.f32 0.044715, %v6380_v20  ;;  %3726 = vmatprep.mubr.bf16.mxu0 %v3415_v0  ;;  %v6388_v21 = vadd.f32 %v3103_v2, %v6245_v61  ;;  %v3105_v58 = vpop.f32.mrb[47].mxu1  ;;  %4323 = vmatpush3.bf16.msra.mxu0 %v6181_v42  ;;  %v3275_v62 = vadd.f32 %v3243_v25, %v6290_v12 }
 0xd52   : > { %v3260_v63 = vadd.f32 %v3228_v56, %v3094_v30  ;;  %4324 = vmatprep.subr.bf16.mxu0 %v6183_v16  ;;  %v3169_v38 = vmul.f32 0.044715, %v6384_v55  ;;  %v6398_v36 = vadd.f32 %v3105_v58, %v6261_v27  ;;  %v6401_v31 = vmul.f32 0.5, %v6282_v52 }
 0xd53   : > { %v3303_v42 = vmul.f32 0.7978846, %v3271_v60  ;;  %5012 = vtanh.f32 %v3288_v18  ;;  %v3200_v24 = vmul.f32 %v3168_v39, %v6380_v20  ;;  %v3307_v29 = vmul.f32 0.7978846, %v3275_v62 }
 0xd54   : > { %v3292_v6 = vmul.f32 0.7978846, %v3260_v63  ;;  %v6405_v22 = vmul.f32 0.5, %v6344_v1  ;;  %v6407_v16 = vmul.f32 0.5, %v3094_v30  ;;  %v3172_v25 = vmul.f32 0.044715, %v6388_v21 }
 0xd55   : > { %4325 = vmatpush3.bf16.msra.mxu0 %v6188_v54  ;;  %5014 = vtanh.f32 %v3303_v42  ;;  %v6412_v15 = vmul.f32 %v3193_v45, %v6350_v10  ;;  %v6415_v52 = vmul.f32 %v3197_v35, %v6359_v26  ;;  %v6418_v57 = vmul.f32 0.5, %v6290_v12 }
 0xd56   : > { %5016 = vtanh.f32 %v3292_v6  ;;  %v3109_v9 = vpop.f32.mrb[48].mxu1  ;;  %4326 = vmatprep.subr.bf16.mxu0 %v6191_v48  ;;  %v3173_v1 = vmul.f32 0.044715, %v6398_v36  ;;  %v3270_v8 = vadd.f32 %v6331_v11, %v6279_v28  ;;  %v6428_v44 = vmul.f32 %v3200_v24, %v6380_v20 }
 0xd57   : > { %v6423_v30 = vadd.f32 %v3109_v9, %v6245_v61  ;;  %v3111_v54 = vpop.f32.mrb[49].mxu1  ;;  %5018 = vtanh.f32 %v3307_v29  ;;  %v5005_v3 = vpop.eup %5004  ;;  %v3201_v51 = vmul.f32 %v3169_v38, %v6384_v55  ;;  %v3274_v0 = vadd.f32 %v6341_v19, %v6285_v7 }
 0xd58   : > { %v6432_v12 = vadd.f32 %v3111_v54, %v6261_v27  ;;  %v3113_v48 = vpop.f32.mrb[50].mxu1  ;;  %v5007_v45 = vpop.eup %5006  ;;  %v3204_v56 = vmul.f32 %v3172_v25, %v6388_v21  ;;  %v3358_v2 = vadd.f32 1.0, %v5005_v3  ;;  %v3302_v11 = vmul.f32 0.7978846, %v3270_v8 }
 0xd59   : > { %v6438_v18 = vadd.f32 %v3113_v48, %v6245_v61  ;;  %v3115_v39 = vpop.f32.mrb[51].mxu1  ;;  %4327 = vmatpush3.bf16.msra.mxu0 %v6193_v49  ;;  %v5009_v58 = vpop.eup %5008  ;;  %v3362_v60 = vadd.f32 1.0, %v5007_v45  ;;  %v3306_v35 = vmul.f32 0.7978846, %v3274_v0  ;;  %v3205_v19 = vmul.f32 %v3173_v1, %v6398_v36 }
 0xd5a   : > { %v3177_v63 = vmul.f32 0.044715, %v6432_v12  ;;  %v6443_v62 = vadd.f32 %v3115_v39, %v6261_v27  ;;  %4328 = vmatprep.subr.bf16.mxu0 %v6195_v23  ;;  %v3176_v38 = vmul.f32 0.044715, %v6423_v30  ;;  %v3142_v61 = vmul.f32 0.5, %v6279_v28  ;;  %v5011_v42 = vpop.eup %5010 }
 0xd5b   : > { %5020 = vtanh.f32 %v3302_v11  ;;  %v3390_v49 = vmul.f32 %v3358_v2, %v6294_v47  ;;  %v3394_v6 = vmul.f32 %v3362_v60, %v6338_v14  ;;  %v3233_v27 = vmul.f32 %v3201_v51, %v6384_v55 }
 0xd5c   : > { %5022 = vtanh.f32 %v3306_v35  ;;  %v3181_v24 = vmul.f32 0.044715, %v6443_v62  ;;  %v3180_v29 = vmul.f32 0.044715, %v6438_v18  ;;  %v3146_v23 = vmul.f32 0.5, %v6285_v7 }
 0xd5d   : > { %4329 = vmatpush3.bf16.msra.mxu0 %v6200_v33  ;;  %v3249_v28 = vadd.f32 %v6366_v40, %v6312_v17  ;;  %v5013_v25 = vpop.eup %5012  ;;  %v3236_v9 = vmul.f32 %v3204_v56, %v6388_v21  ;;  %v3414_v47 = vpack.c.bf16 %v3394_v6, %v3390_v49  ;;  %v3209_v14 = vmul.f32 %v3177_v63, %v6432_v12 }
 0xd5e   : > { %v3253_v1 = vadd.f32 %v6370_v43, %v6320_v59  ;;  %v3237_v8 = vmul.f32 %v3205_v19, %v6398_v36  ;;  %v3344_v51 = vadd.f32 1.0, %v5009_v58  ;;  %v3348_v7 = vadd.f32 1.0, %v5011_v42 }
 0xd5f   : > { %v5015_v54 = vpop.eup %5014  ;;  %v3281_v3 = vmul.f32 0.7978846, %v3249_v28  ;;  %3727 = vmatmul.mubr.bf16.gmra.mrb[64].mxu0 %v3414_v47  ;;  %v3208_v33 = vmul.f32 %v3176_v38, %v6423_v30  ;;  %v3213_v0 = vmul.f32 %v3181_v24, %v6443_v62  ;;  %v3212_v2 = vmul.f32 %v3180_v29, %v6438_v18 }
 0xd60   : > { %v5017_v48 = vpop.eup %5016  ;;  %v3367_v40 = vadd.f32 1.0, %v5015_v54  ;;  %v3285_v45 = vmul.f32 0.7978846, %v3253_v1  ;;  %v6467_v43 = vmul.f32 %v3344_v51, %v6352_v4  ;;  %v6470_v11 = vmul.f32 %v3348_v7, %v6362_v32 }
 0xd61   : > { %v5019_v56 = vpop.eup %5018  ;;  %5024 = vtanh.f32 %v3281_v3  ;;  %v3241_v39 = vmul.f32 %v3209_v14, %v6432_v12  ;;  %v3257_v60 = vadd.f32 %v6412_v15, %v6350_v10  ;;  %v3261_v35 = vadd.f32 %v6415_v52, %v6359_v26 }
 0xd62   : > { %v3371_v58 = vadd.f32 1.0, %v5019_v56  ;;  %5026 = vtanh.f32 %v3285_v45  ;;  %v3408_v63 = vpack.c.bf16 %v6470_v11, %v6467_v43  ;;  %v3352_v19 = vadd.f32 1.0, %v5013_v25 }
 0xd63   : > { %v3356_v38 = vadd.f32 1.0, %v5017_v48  ;;  %v3399_v4 = vmul.f32 %v3367_v40, %v6401_v31  ;;  %v3245_v42 = vmul.f32 %v3213_v0, %v6443_v62  ;;  %v3289_v49 = vmul.f32 0.7978846, %v3257_v60 }
 0xd64   : > { %v3403_v32 = vmul.f32 %v3371_v58, %v6418_v57  ;;  %v3293_v24 = vmul.f32 0.7978846, %v3261_v35  ;;  %v6483_v29 = vmul.f32 %v3352_v19, %v6405_v22  ;;  %v3265_v28 = vadd.f32 %v3233_v27, %v6384_v55 }
 0xd65   : > { %v5021_v6 = vpop.eup %5020  ;;  %v6486_v15 = vmul.f32 %v3356_v38, %v6407_v16  ;;  %5028 = vtanh.f32 %v3289_v49  ;;  %v3269_v31 = vadd.f32 %v3237_v8, %v6398_v36  ;;  %v3240_v22 = vmul.f32 %v3208_v33, %v6423_v30 }
 0xd66   : > { %v5023_v52 = vpop.eup %5022  ;;  %v3419_v25 = vpack.c.bf16 %v3403_v32, %v3399_v4  ;;  %v3366_v47 = vadd.f32 1.0, %v5021_v6  ;;  %5030 = vtanh.f32 %v3293_v24  ;;  %v3297_v1 = vmul.f32 0.7978846, %v3265_v28 }
 0xd67   : > { %v3370_v57 = vadd.f32 1.0, %v5023_v52  ;;  %v3412_v14 = vpack.c.bf16 %v6486_v15, %v6483_v29  ;;  %v3301_v16 = vmul.f32 0.7978846, %v3269_v31  ;;  %v3264_v27 = vadd.f32 %v6428_v44, %v6380_v20 }
 0xd68   : > { %3734 = vmatprep.mubr.bf16.mxu0 %v3419_v25  ;;  %v3398_v54 = vmul.f32 %v3366_v47, %v3142_v61  ;;  %5032 = vtanh.f32 %v3297_v1  ;;  %v3268_v51 = vadd.f32 %v3236_v9, %v6388_v21  ;;  %v3244_v8 = vmul.f32 %v3212_v2, %v6438_v18 }
 0xd69   : > { %v3402_v3 = vmul.f32 %v3370_v57, %v3146_v23  ;;  %5034 = vtanh.f32 %v3301_v16  ;;  %v3273_v7 = vadd.f32 %v3241_v39, %v6432_v12  ;;  %v3296_v0 = vmul.f32 0.7978846, %v3264_v27 }
 0xd6a   : > { %v3300_v45 = vmul.f32 0.7978846, %v3268_v51  ;;  %v3277_v33 = vadd.f32 %v3245_v42, %v6443_v62  ;;  %v3121_v23 = vmul.f32 0.5, %v6312_v17  ;;  %v3125_v56 = vmul.f32 0.5, %v6320_v59 }
 0xd6b   : > { %v5025_v48 = vpop.eup %5024  ;;  %v3418_v40 = vpack.c.bf16 %v3402_v3, %v3398_v54  ;;  %v3305_v44 = vmul.f32 0.7978846, %v3273_v7  ;;  %5036 = vtanh.f32 %v3296_v0  ;;  %v3272_v60 = vadd.f32 %v3240_v22, %v6423_v30 }
 0xd6c   : > { %v5027_v61 = vpop.eup %5026  ;;  %v3345_v58 = vadd.f32 1.0, %v5025_v48  ;;  %v3309_v2 = vmul.f32 0.7978846, %v3277_v33  ;;  %5038 = vtanh.f32 %v3300_v45  ;;  %v3276_v39 = vadd.f32 %v3244_v8, %v6438_v18 }
 0xd6d   : > { %3735 = vmatmul.mubr.bf16.gmra.mrb[68].mxu0 %v3418_v40  ;;  %v3349_v9 = vadd.f32 1.0, %v5027_v61  ;;  %5040 = vtanh.f32 %v3305_v44  ;;  %v3304_v38 = vmul.f32 0.7978846, %v3272_v60  ;;  %v3129_v49 = vmul.f32 0.5, %v6350_v10 }
 0xd6e   : > { %v3377_v35 = vmul.f32 %v3345_v58, %v3121_v23  ;;  %5042 = vtanh.f32 %v3309_v2  ;;  %v3308_v17 = vmul.f32 0.7978846, %v3276_v39  ;;  %v3133_v6 = vmul.f32 0.5, %v6359_v26 }
 0xd6f   : > { %v3381_v19 = vmul.f32 %v3349_v9, %v3125_v56  ;;  %v5029_v4 = vpop.eup %5028  ;;  %5044 = vtanh.f32 %v3304_v38  ;;  %v3137_v47 = vmul.f32 0.5, %v6384_v55  ;;  %v3141_v31 = vmul.f32 0.5, %v6398_v36 }
 0xd70   : > { %v5031_v32 = vpop.eup %5030  ;;  %v3353_v42 = vadd.f32 1.0, %v5029_v4  ;;  %5046 = vtanh.f32 %v3308_v17  ;;  %v3136_v51 = vmul.f32 0.5, %v6380_v20  ;;  %v3140_v43 = vmul.f32 0.5, %v6388_v21 }
 0xd71   : > { %v3409_v59 = vpack.c.bf16 %v3381_v19, %v3377_v35  ;;  %v3357_v24 = vadd.f32 1.0, %v5031_v32  ;;  %v3145_v55 = vmul.f32 0.5, %v6432_v12  ;;  %v3149_v40 = vmul.f32 0.5, %v6443_v62 }
 0xd72   : > { %v5033_v29 = vpop.eup %5032  ;;  %v3385_v28 = vmul.f32 %v3353_v42, %v3129_v49  ;;  %v3148_v33 = vmul.f32 0.5, %v6438_v18 }
 0xd73   : > { %3775 = vmatprep.mubr.bf16.mxu0 %v3409_v59  ;;  %v5035_v15 = vpop.eup %5034  ;;  %v3389_v52 = vmul.f32 %v3357_v24, %v3133_v6  ;;  %v3361_v25 = vadd.f32 1.0, %v5033_v29 }
 0xd74   : > { %v3365_v57 = vadd.f32 1.0, %v5035_v15 }
 0xd75   : > { %3776 = vmatmul.mubr.bf16.vlgmr.msra.gmra.mrb[72].mxu0 %v3408_v63  ;;  %v3413_v10 = vpack.c.bf16 %v3389_v52, %v3385_v28  ;;  %v5037_v1 = vpop.eup %5036  ;;  %v3393_v26 = vmul.f32 %v3361_v25, %v3137_v47 }
 0xd76   : > { %v3397_v22 = vmul.f32 %v3365_v57, %v3141_v31  ;;  %v5039_v54 = vpop.eup %5038  ;;  %v3360_v16 = vadd.f32 1.0, %v5037_v1 }
 0xd77   : > { %3783 = vmatprep.mubr.bf16.mxu1 %v3413_v10  ;;  %v5041_v3 = vpop.eup %5040  ;;  %v3364_v11 = vadd.f32 1.0, %v5039_v54 }
 0xd78   : > { %3784 = vmatmul.mubr.bf16.vlgmr.msra.gmra.mrb[52].mxu1 %v3412_v14  ;;  %v3417_v27 = vpack.c.bf16 %v3397_v22, %v3393_v26  ;;  %v5043_v63 = vpop.eup %5042  ;;  %v3369_v36 = vadd.f32 1.0, %v5041_v3  ;;  %v3392_v7 = vmul.f32 %v3360_v16, %v3136_v51  ;;  %v3144_v14 = vmul.f32 0.5, %v6423_v30 }
 0xd79   : > { %v5045_v8 = vpop.eup %5044  ;;  %v3396_v48 = vmul.f32 %v3364_v11, %v3140_v43  ;;  %v3373_v0 = vadd.f32 1.0, %v5043_v63 }
 0xd7a   : > { %3791 = vmatprep.mubr.bf16.mxu1 %v3417_v27  ;;  %v5047_v45 = vpop.eup %5046  ;;  %v3368_v20 = vadd.f32 1.0, %v5045_v8  ;;  %v3401_v21 = vmul.f32 %v3369_v36, %v3145_v55  ;;  %v4183_v27 = vld [vmem:[#allocation13] ss:$0 sm:$0xff] }
 0xd7b   : > { %v3416_v61 = vpack.c.bf16 %v3396_v48, %v3392_v7  ;;  %v3405_v23 = vmul.f32 %v3373_v0, %v3149_v40  ;;  %v3372_v56 = vadd.f32 1.0, %v5047_v45 }
 0xd7c   : > { %v3400_v12 = vmul.f32 %v3368_v20, %v3144_v14 }
 0xd7d   : > { %v3421_v58 = vpack.c.bf16 %v3405_v23, %v3401_v21  ;;  %v3404_v44 = vmul.f32 %v3372_v56, %v3148_v33 }
 0xd7f   : > { %v3420_v9 = vpack.c.bf16 %v3404_v44, %v3400_v12 }
 0xd80   : > { %3792 = vmatmul.mubr.bf16.gmra.mrb[56].mxu1 %v3416_v61 }
 0xd81   : > { %3799 = vmatprep.mubr.bf16.mxu1 %v3421_v58 }
 0xd88   : > { %3800 = vmatmul.mubr.bf16.gmra.mrb[60].mxu1 %v3420_v9 }
 0xe13   : > { %v4290_v2 = vpop.f32.mrb[56].mxu0 }
 0xe14   : > { %v4291_v62 = vpop.f32.mrb[57].mxu0 }
 0xe15   : > { %v4292_v60 = vadd.f32 %v4291_v62, %v4290_v2  ;;  %v4293_v39 = vpop.f32.mrb[58].mxu0 }
 0xe16   : > { %v4294_v35 = vpop.f32.mrb[59].mxu0 }
 0xe17   : > { %v4295_v30 = vadd.f32 %v4294_v35, %v4293_v39 }
 0xe1b   : > { %v4296_v19 = vpop.f32.mrb[60].mxu0 }
 0xe1c   : > { %v4297_v18 = vpop.f32.mrb[61].mxu0 }
 0xe1d   : > { %v4298_v38 = vadd.f32 %v4297_v18, %v4296_v19  ;;  %v4299_v4 = vpop.f32.mrb[62].mxu0 }
 0xe1e   : > { %v4300_v17 = vpop.f32.mrb[63].mxu0 }
 0xe1f   : > { %v4301_v32 = vadd.f32 %v4300_v17, %v4299_v4 }
 0xe32   : > { %v4302_v59 = vpop.f32.mrb[64].mxu0 }
 0xe33   : > { %v4303_v42 = vpop.f32.mrb[65].mxu0 }
 0xe34   : > { %v4304_v49 = vadd.f32 %v4303_v42, %v4302_v59  ;;  %v4305_v6 = vpop.f32.mrb[66].mxu0 }
 0xe35   : > { %v4306_v24 = vpop.f32.mrb[67].mxu0 }
 0xe36   : > { %v4307_v29 = vadd.f32 %v4306_v24, %v4305_v6 }
 0xe40   : > { %v4308_v15 = vpop.f32.mrb[68].mxu0 }
 0xe41   : > { %v4309_v28 = vpop.f32.mrb[69].mxu0 }
 0xe42   : > { %v4310_v52 = vadd.f32 %v4309_v28, %v4308_v15  ;;  %v4311_v25 = vpop.f32.mrb[70].mxu0 }
 0xe43   : > { %v4312_v47 = vpop.f32.mrb[71].mxu0 }
 0xe44   : > { %v4313_v31 = vadd.f32 %v4312_v47, %v4311_v25 }
 0xe48   : > { %v4330_v57 = vpop.f32.mrb[72].mxu0 }
 0xe49   : > { %v4331_v10 = vpop.f32.mrb[73].mxu0 }
 0xe4a   : > { %v4332_v1 = vadd.f32 %v4331_v10, %v4330_v57  ;;  %v4333_v26 = vpop.f32.mrb[74].mxu0 }
 0xe4b   : > { %v4334_v22 = vpop.f32.mrb[75].mxu0  ;;  %v4336_v3 = vpop.f32.mrb[52].mxu1 }
 0xe4c   : > { %v3778_v54 = vadd.f32 %v4332_v1, %v4292_v60  ;;  %v4335_v16 = vadd.f32 %v4334_v22, %v4333_v26  ;;  %v4337_v51 = vpop.f32.mrb[53].mxu1 }
 0xe4d   : > { %v4338_v63 = vadd.f32 %v4337_v51, %v4336_v3  ;;  %v4339_v55 = vpop.f32.mrb[54].mxu1 }
 0xe4e   : > { %v3808_v43 = vadd.f32 %v6061_v34, %v3778_v54  ;;  %v3781_v11 = vadd.f32 %v4335_v16, %v4295_v30  ;;  %v4340_v36 = vpop.f32.mrb[55].mxu1 }
 0xe4f   : > { %v3786_v48 = vadd.f32 %v4338_v63, %v4298_v38  ;;  %v4341_v40 = vadd.f32 %v4340_v36, %v4339_v55 }
 0xe50   : > { %v3823_v8 = vadd.f32 %v4183_v27, %v3808_v43  ;;  %v3809_v7 = vadd.f32 %v6064_v37, %v3781_v11 }
 0xe51   : > { %v3810_v0 = vadd.f32 %v6067_v41, %v3786_v48  ;;  %v3789_v45 = vadd.f32 %v4341_v40, %v4301_v32 }
 0xe52   : > { %3831 = vst [vmem:[%s6522_s24] sm:$0xff] %v3823_v8  ;;  %v3824_v34 = vadd.f32 %v4183_v27, %v3809_v7 }
 0xe53   : > { %v3825_v14 = vadd.f32 %v4183_v27, %v3810_v0  ;;  %v3811_v33 = vadd.f32 %v6071_v46, %v3789_v45  ;;  %v4342_v20 = vpop.f32.mrb[56].mxu1 }
 0xe54   : > { %3832 = vst [vmem:[%s6522_s24 + $0x8] sm:$0xff] %v3824_v34  ;;  %v4343_v61 = vpop.f32.mrb[57].mxu1 }
 0xe55   : > { %3833 = vst [vmem:[%s6522_s24 + $0x10] sm:$0xff] %v3825_v14  ;;  %v3826_v21 = vadd.f32 %v4183_v27, %v3811_v33  ;;  %v4344_v23 = vadd.f32 %v4343_v61, %v4342_v20  ;;  %v4345_v56 = vpop.f32.mrb[58].mxu1 }
 0xe56   : > { %v4346_v37 = vpop.f32.mrb[59].mxu1 }
 0xe57   : > { %3834 = vst [vmem:[%s6522_s24 + $0x18] sm:$0xff] %v3826_v21  ;;  %v3794_v58 = vadd.f32 %v4344_v23, %v4304_v49  ;;  %v4347_v12 = vadd.f32 %v4346_v37, %v4345_v56 }
 0xe59   : > { %v3812_v44 = vadd.f32 %v6076_v50, %v3794_v58  ;;  %v3797_v41 = vadd.f32 %v4347_v12, %v4307_v29 }
 0xe5b   : > { %v3827_v9 = vadd.f32 %v4183_v27, %v3812_v44  ;;  %v3813_v2 = vadd.f32 %v6080_v13, %v3797_v41  ;;  %v4348_v46 = vpop.f32.mrb[60].mxu1 }
 0xe5c   : > { %v4349_v62 = vpop.f32.mrb[61].mxu1 }
 0xe5d   : > { %3835 = vst [vmem:[%s6522_s24 + $0x20] sm:$0xff] %v3827_v9  ;;  %v3828_v60 = vadd.f32 %v4183_v27, %v3813_v2  ;;  %v4350_v39 = vadd.f32 %v4349_v62, %v4348_v46  ;;  %v4351_v35 = vpop.f32.mrb[62].mxu1 }
 0xe5e   : > { %v4352_v30 = vpop.f32.mrb[63].mxu1 }
 0xe5f   : > { %3836 = vst [vmem:[%s6522_s24 + $0x28] sm:$0xff] %v3828_v60  ;;  %v3802_v19 = vadd.f32 %v4350_v39, %v4310_v52  ;;  %v4353_v18 = vadd.f32 %v4352_v30, %v4351_v35 }
 0xe61   : > { %v3814_v38 = vadd.f32 %v6083_v5, %v3802_v19  ;;  %v3805_v4 = vadd.f32 %v4353_v18, %v4313_v31 }
 0xe63   : > { %v3829_v50 = vadd.f32 %v4183_v27, %v3814_v38  ;;  %v3815_v17 = vadd.f32 %v6086_v53, %v3805_v4 }
 0xe65   : > { %3837 = vst [vmem:[%s6522_s24 + $0x30] sm:$0xff] %v3829_v50  ;;  %v3830_v32 = vadd.f32 %v4183_v27, %v3815_v17 }
 0xe67   : > { %3838 = vst [vmem:[%s6522_s24 + $0x38] sm:$0xff] %v3830_v32 }
 0xe68 PF: > { %s33_s27 = sadd.s32 1, %s5306_s27  }
 0xe69   : > { %p30_p7 = scmp.ge.s32.totalorder %s33_s27, 4  }
 0xe6b   :  { %32 = sbr.rel (!%p30_p7) target bundleno = 15 (0xf), region = 158 }
 0xe72   :  { %3861 = vsyncpa [#allocation3], 1 }
 0xe73   :  { %3863 = vsyncpa [#allocation3 + $0x1], 1 }
 0xe74   :  { %3864 = vsyncpa [#allocation5], 1 }
 0xe75   :  { %3865 = vsyncpa [#allocation8], 1 }
 0xe76   :  { %3866 = vsyncpa [#allocation11], 1 }
 0xe77   :  { %3867 = vsyncpa [#allocation14], 1 }

</bundles_post_ra>
